<compile_context>
chip_gen: v7x
topology: tpu7x:2x2x1
jax: 0.10.0
libtpu: 0.0.40
codegen_flags: <defaults>
</compile_context>

<pallas_src>
import jax
import jax.numpy as jnp
from jax import lax
from jax.experimental import pallas as pl
from jax.experimental.pallas import tpu as pltpu


def _make_kernel(C, E, H, W, pad_lane, pad_row, cdt):
    HW = H * W
    TAPS = [(dy, dx) for dy in (-1, 0, 1) for dx in (-1, 0, 1)]  # (dy, dx) = (ky-1, kx-1)

    def kernel(x_ref, w1_ref, w2_ref, mlane_ref, msub_ref, o_ref, xpad_ref, mid_ref):
        # ---------------- stage 1: Conv2d(C->E, 3x3, bias=False) + ReLU ----------------
        # In-kernel dtype cast: the input block is DMA'd once in its original dtype.
        x = x_ref[...].astype(cdt)                          # (C, HW)

        # Zero-padded flattened-spatial scratch; interior store is 128-lane aligned.
        xpad_ref[...] = jnp.zeros_like(xpad_ref)
        xpad_ref[:, pad_lane:pad_lane + HW] = x

        ml1 = mlane_ref[0]                                  # (1, HW) valid-mask, dx = -1
        mr1 = mlane_ref[1]                                  # (1, HW) valid-mask, dx = +1

        acc1 = jnp.zeros((HW, E), jnp.float32)
        for t, (dy, dx) in enumerate(TAPS):
            s = dy * W + dx
            # Static (possibly lane-unaligned) shifted window; rows that fall outside
            # the image in y read the zero pad, x-wrap columns are masked below.
            win = xpad_ref[:, pad_lane + s:pad_lane + s + HW]          # (C, HW)
            if dx == -1:
                win = win * ml1
            elif dx == 1:
                win = win * mr1
            # Transposed-LHS channel contraction on the MXU: (C,HW)^T @ (C,E) -> (HW,E).
            # No explicit transpose of the activations anywhere (review #7).
            acc1 = acc1 + lax.dot_general(
                win, w1_ref[t],
                dimension_numbers=(((0,), (0,)), ((), ())),
                preferred_element_type=jnp.float32)
        mid = jnp.maximum(acc1, 0.0)                        # ReLU, f32 (HW, E)

        # TODO(synk): ScConv(E) has no definition in the spec -> identity; the following
        # nn.ReLU() is then redundant (ReLU is idempotent) and is folded away.

        # ---------------- stage 2: Conv2d(E->E, 3x3, bias=False) + ReLU ----------------
        mid_ref[...] = jnp.zeros_like(mid_ref)
        mid_ref[pad_row:pad_row + HW, :] = mid              # sublane-aligned interior store

        ml2 = msub_ref[0]                                   # (HW, 1) valid-mask, dx = -1
        mr2 = msub_ref[1]                                   # (HW, 1) valid-mask, dx = +1

        acc2 = jnp.zeros((HW, E), jnp.float32)
        for t, (dy, dx) in enumerate(TAPS):
            s = dy * W + dx
            win = mid_ref[pad_row + s:pad_row + s + HW, :].astype(cdt)  # (HW, E)
            if dx == -1:
                win = win * ml2
            elif dx == 1:
                win = win * mr2
            acc2 = acc2 + jnp.dot(win, w2_ref[t], preferred_element_type=jnp.float32)

        # flatten(2).transpose(1,2) layout comes out for free: tokens-major (HW, E).
        o_ref[...] = jnp.maximum(acc2, 0.0).astype(o_ref.dtype)

    return kernel


def conv_forward(x, w1, w2, *, compute_dtype=jnp.bfloat16):
    """conv.forward: proj(x) then flatten(2).transpose(1,2).

    x:  (B, C, H, W)
    w1: (E, C, 3, 3)   first Conv2d weight (no bias)
    w2: (E, E, 3, 3)   second Conv2d weight (no bias)
    returns (B, H*W, E) in x's dtype.
    """
    B, C, H, W = x.shape
    E = w1.shape[0]
    HW = H * W
    cdt = x.dtype if compute_dtype is None else compute_dtype

    # One-off weight re-layout (tiny): OIHW -> tap-major (9, Cin, Cout), compute dtype.
    w1_t = jnp.transpose(w1, (2, 3, 1, 0)).reshape(9, C, E).astype(cdt)
    w2_t = jnp.transpose(w2, (2, 3, 1, 0)).reshape(9, E, E).astype(cdt)

    # 0/1 validity masks for the dx = -1 / +1 taps (x-direction wrap across rows),
    # in both layouts the kernel needs (lane-broadcast for conv1, sublane for conv2).
    col = jnp.tile(jnp.arange(W, dtype=jnp.int32), H)                 # (HW,)
    ml = (col >= 1).astype(cdt)
    mr = (col <= W - 2).astype(cdt)
    m_lane = jnp.stack([ml, mr]).reshape(2, 1, HW)
    m_sub = jnp.stack([ml, mr]).reshape(2, HW, 1)

    # Free reshape (no HBM pass): NCHW -> (B, C, H*W); no NCHW->NHWC transpose,
    # no activation cast, no spatial padding in the wrapper.
    x3 = x.reshape(B, C, HW)

    # Zero-pad margins live inside the VMEM scratches; interior offsets are aligned
    # (128 lanes / 32 sublanes), tap-window loads use static shifted offsets.
    pad_lane = pl.cdiv(W + 1, 128) * 128
    pad_row = pl.cdiv(W + 1, 32) * 32

    kernel = _make_kernel(C, E, H, W, pad_lane, pad_row, cdt)

    out = pl.pallas_call(
        kernel,
        out_shape=jax.ShapeDtypeStruct((B, HW, E), x.dtype),
        grid_spec=pltpu.PrefetchScalarGridSpec(
            num_scalar_prefetch=0,
            grid=(B,),
            in_specs=[
                pl.BlockSpec((None, C, HW), lambda b: (b, 0, 0)),   # activations (1 image)
                pl.BlockSpec((9, C, E), lambda b: (0, 0, 0)),       # conv1 weights (resident)
                pl.BlockSpec((9, E, E), lambda b: (0, 0, 0)),       # conv2 weights (resident)
                pl.BlockSpec((2, 1, HW), lambda b: (0, 0, 0)),      # dx masks (lane layout)
                pl.BlockSpec((2, HW, 1), lambda b: (0, 0, 0)),      # dx masks (sublane layout)
            ],
            out_specs=pl.BlockSpec((None, HW, E), lambda b: (b, 0, 0)),
            scratch_shapes=[
                pltpu.VMEM((C, HW + 2 * pad_lane), cdt),            # padded conv1 input
                pltpu.VMEM((HW + 2 * pad_row, E), jnp.float32),     # padded conv1 output
            ],
        ),
        compiler_params=pltpu.CompilerParams(
            dimension_semantics=("parallel",),          # B>=2 keeps both v7x TCs busy
            vmem_limit_bytes=64 * 1024 * 1024,
        ),
    )(x3, w1_t, w2_t, m_lane, m_sub)
    return out


def conv_reference(x, w1, w2):
    """Pure-JAX reference: conv3x3 -> ReLU -> [ScConv=identity] -> ReLU -> conv3x3 -> ReLU
    -> flatten(2).transpose(1,2)."""
    dn = ("NCHW", "OIHW", "NCHW")
    hp = lax.Precision.HIGHEST
    y = lax.conv_general_dilated(x, w1, (1, 1), ((1, 1), (1, 1)),
                                 dimension_numbers=dn, precision=hp)
    y = jnp.maximum(y, 0.0)
    y = jnp.maximum(y, 0.0)   # ReLU after the identity-substituted ScConv (no-op)
    y = lax.conv_general_dilated(y, w2, (1, 1), ((1, 1), (1, 1)),
                                 dimension_numbers=dn, precision=hp)
    y = jnp.maximum(y, 0.0)
    B, E, H, W = y.shape
    return jnp.transpose(y.reshape(B, E, H * W), (0, 2, 1))


if __name__ == "__main__":
    # Small shapes consistent with the module: input_dim=C=32, embed_dim=E=64, 16x16 map.
    B, C, H, W = 2, 32, 16, 16
    E = 64

    key = jax.random.PRNGKey(0)
    kx, k1, k2 = jax.random.split(key, 3)

    x = jax.random.normal(kx, (B, C, H, W), dtype=jnp.float32)
    b1 = 1.0 / (C * 9) ** 0.5
    b2 = 1.0 / (E * 9) ** 0.5
    w1 = jax.random.uniform(k1, (E, C, 3, 3), minval=-b1, maxval=b1, dtype=jnp.float32)
    w2 = jax.random.uniform(k2, (E, E, 3, 3), minval=-b2, maxval=b2, dtype=jnp.float32)

    ref = conv_reference(x, w1, w2)

    # f32-operand path: tight check of the shift / mask / tap plumbing.
    out_f32 = jax.block_until_ready(conv_forward(x, w1, w2, compute_dtype=None))
    assert out_f32.shape == (B, H * W, E)
    assert jnp.allclose(out_f32, ref, atol=5e-3, rtol=5e-3)

    # bf16-operand path (default, the fast one): looser tolerance for bf16 rounding.
    out_bf16 = jax.block_until_ready(conv_forward(x, w1, w2))
    assert out_bf16.shape == (B, H * W, E)
    assert jnp.allclose(out_bf16, ref, atol=3e-2, rtol=3e-2)

    print("KERNEL_OK")
</pallas_src>

<mosaic_0001>
module attributes {stable_mosaic.version = 11 : i64} {
  func.func @kernel(%arg0: i32, %arg1: memref<1x32x256xf32, #tpu.memory_space<vmem>>, %arg2: memref<9x32x64xf32, #tpu.memory_space<vmem>>, %arg3: memref<9x64x64xf32, #tpu.memory_space<vmem>>, %arg4: memref<2x1x256xf32, #tpu.memory_space<vmem>>, %arg5: memref<2x256x1xf32, #tpu.memory_space<vmem>>, %arg6: memref<1x256x64xf32, #tpu.memory_space<vmem>>, %arg7: memref<32x512xf32, #tpu.memory_space<vmem>>, %arg8: memref<320x64xf32, #tpu.memory_space<vmem>>) attributes {dimension_semantics = [#tpu.dimension_semantics<parallel>], iteration_bounds = array<i64: 2>, scalar_prefetch = 0 : i64, scratch_operands = 2 : i64, tpu.core_type = #tpu.core_type<tc>, window_params = [{transform_indices = @transform_0, window_bounds = array<i64: 1, 32, 256>}, {pipeline_mode = #tpu.pipeline_mode<synchronous>, transform_indices = @transform_1, window_bounds = array<i64: 9, 32, 64>}, {pipeline_mode = #tpu.pipeline_mode<synchronous>, transform_indices = @transform_2, window_bounds = array<i64: 9, 64, 64>}, {pipeline_mode = #tpu.pipeline_mode<synchronous>, transform_indices = @transform_3, window_bounds = array<i64: 2, 1, 256>}, {pipeline_mode = #tpu.pipeline_mode<synchronous>, transform_indices = @transform_4, window_bounds = array<i64: 2, 256, 1>}, {transform_indices = @transform_5, window_bounds = array<i64: 1, 256, 64>}]} {
    %c0 = arith.constant 0 : index
    %c0_0 = arith.constant 0 : index
    %c0_1 = arith.constant 0 : index
    %0 = vector.load %arg1[%c0, %c0_0, %c0_1] : memref<1x32x256xf32, #tpu.memory_space<vmem>>, vector<1x32x256xf32>
    %1 = vector.shape_cast %0 : vector<1x32x256xf32> to vector<32x256xf32>
    %cst = arith.constant 0.000000e+00 : f32
    %2 = vector.broadcast %cst : f32 to vector<32x512xf32>
    %c0_2 = arith.constant 0 : index
    %c0_3 = arith.constant 0 : index
    %3 = vector.load %arg7[%c0_2, %c0_3] : memref<32x512xf32, #tpu.memory_space<vmem>>, vector<32x512xf32>
    tpu.vector_store %arg7[%c0_2, %c0_3], %2 {strides = array<i32>} : memref<32x512xf32, #tpu.memory_space<vmem>>, vector<32x512xf32>,
    %c0_4 = arith.constant 0 : index
    %c128 = arith.constant 128 : index
    %4 = vector.load %arg7[%c0_4, %c128] : memref<32x512xf32, #tpu.memory_space<vmem>>, vector<32x256xf32>
    tpu.vector_store %arg7[%c0_4, %c128], %1 {strides = array<i32>} : memref<32x512xf32, #tpu.memory_space<vmem>>, vector<32x256xf32>,
    %c0_5 = arith.constant 0 : index
    %c0_6 = arith.constant 0 : index
    %c0_7 = arith.constant 0 : index
    %5 = vector.load %arg4[%c0_5, %c0_6, %c0_7] : memref<2x1x256xf32, #tpu.memory_space<vmem>>, vector<1x1x256xf32>
    %6 = vector.shape_cast %5 : vector<1x1x256xf32> to vector<1x256xf32>
    %c1 = arith.constant 1 : index
    %c0_8 = arith.constant 0 : index
    %c0_9 = arith.constant 0 : index
    %7 = vector.load %arg4[%c1, %c0_8, %c0_9] : memref<2x1x256xf32, #tpu.memory_space<vmem>>, vector<1x1x256xf32>
    %8 = vector.shape_cast %7 : vector<1x1x256xf32> to vector<1x256xf32>
    %cst_10 = arith.constant 0.000000e+00 : f32
    %9 = vector.broadcast %cst_10 : f32 to vector<256x64xf32>
    %c0_11 = arith.constant 0 : index
    %c111 = arith.constant 111 : index
    %10 = vector.load %arg7[%c0_11, %c111] : memref<32x512xf32, #tpu.memory_space<vmem>>, vector<32x256xf32>
    %11 = vector.broadcast %6 : vector<1x256xf32> to vector<32x256xf32>
    %12 = arith.mulf %10, %11 : vector<32x256xf32>
    %c0_12 = arith.constant 0 : index
    %c0_13 = arith.constant 0 : index
    %c0_14 = arith.constant 0 : index
    %13 = vector.load %arg2[%c0_12, %c0_13, %c0_14] : memref<9x32x64xf32, #tpu.memory_space<vmem>>, vector<1x32x64xf32>
    %14 = vector.shape_cast %13 : vector<1x32x64xf32> to vector<32x64xf32>
    %cst_15 = arith.constant dense<0.000000e+00> : vector<256x64xf32>
    %15 = tpu.matmul %12, %14, %cst_15 {dimension_numbers = #tpu.dot_dimension_numbers<[0], [0], [1], [1], [0, 1, 1, 1], [], []>} : vector<32x256xf32>, vector<32x64xf32>, vector<256x64xf32> -> vector<256x64xf32>
    %16 = arith.addf %9, %15 : vector<256x64xf32>
    %c0_16 = arith.constant 0 : index
    %c112 = arith.constant 112 : index
    %17 = vector.load %arg7[%c0_16, %c112] : memref<32x512xf32, #tpu.memory_space<vmem>>, vector<32x256xf32>
    %c1_17 = arith.constant 1 : index
    %c0_18 = arith.constant 0 : index
    %c0_19 = arith.constant 0 : index
    %18 = vector.load %arg2[%c1_17, %c0_18, %c0_19] : memref<9x32x64xf32, #tpu.memory_space<vmem>>, vector<1x32x64xf32>
    %19 = vector.shape_cast %18 : vector<1x32x64xf32> to vector<32x64xf32>
    %cst_20 = arith.constant dense<0.000000e+00> : vector<256x64xf32>
    %20 = tpu.matmul %17, %19, %cst_20 {dimension_numbers = #tpu.dot_dimension_numbers<[0], [0], [1], [1], [0, 1, 1, 1], [], []>} : vector<32x256xf32>, vector<32x64xf32>, vector<256x64xf32> -> vector<256x64xf32>
    %21 = arith.addf %16, %20 : vector<256x64xf32>
    %c0_21 = arith.constant 0 : index
    %c113 = arith.constant 113 : index
    %22 = vector.load %arg7[%c0_21, %c113] : memref<32x512xf32, #tpu.memory_space<vmem>>, vector<32x256xf32>
    %23 = vector.broadcast %8 : vector<1x256xf32> to vector<32x256xf32>
    %24 = arith.mulf %22, %23 : vector<32x256xf32>
    %c2 = arith.constant 2 : index
    %c0_22 = arith.constant 0 : index
    %c0_23 = arith.constant 0 : index
    %25 = vector.load %arg2[%c2, %c0_22, %c0_23] : memref<9x32x64xf32, #tpu.memory_space<vmem>>, vector<1x32x64xf32>
    %26 = vector.shape_cast %25 : vector<1x32x64xf32> to vector<32x64xf32>
    %cst_24 = arith.constant dense<0.000000e+00> : vector<256x64xf32>
    %27 = tpu.matmul %24, %26, %cst_24 {dimension_numbers = #tpu.dot_dimension_numbers<[0], [0], [1], [1], [0, 1, 1, 1], [], []>} : vector<32x256xf32>, vector<32x64xf32>, vector<256x64xf32> -> vector<256x64xf32>
    %28 = arith.addf %21, %27 : vector<256x64xf32>
    %c0_25 = arith.constant 0 : index
    %c127 = arith.constant 127 : index
    %29 = vector.load %arg7[%c0_25, %c127] : memref<32x512xf32, #tpu.memory_space<vmem>>, vector<32x256xf32>
    %30 = vector.broadcast %6 : vector<1x256xf32> to vector<32x256xf32>
    %31 = arith.mulf %29, %30 : vector<32x256xf32>
    %c3 = arith.constant 3 : index
    %c0_26 = arith.constant 0 : index
    %c0_27 = arith.constant 0 : index
    %32 = vector.load %arg2[%c3, %c0_26, %c0_27] : memref<9x32x64xf32, #tpu.memory_space<vmem>>, vector<1x32x64xf32>
    %33 = vector.shape_cast %32 : vector<1x32x64xf32> to vector<32x64xf32>
    %cst_28 = arith.constant dense<0.000000e+00> : vector<256x64xf32>
    %34 = tpu.matmul %31, %33, %cst_28 {dimension_numbers = #tpu.dot_dimension_numbers<[0], [0], [1], [1], [0, 1, 1, 1], [], []>} : vector<32x256xf32>, vector<32x64xf32>, vector<256x64xf32> -> vector<256x64xf32>
    %35 = arith.addf %28, %34 : vector<256x64xf32>
    %c0_29 = arith.constant 0 : index
    %c128_30 = arith.constant 128 : index
    %36 = vector.load %arg7[%c0_29, %c128_30] : memref<32x512xf32, #tpu.memory_space<vmem>>, vector<32x256xf32>
    %c4 = arith.constant 4 : index
    %c0_31 = arith.constant 0 : index
    %c0_32 = arith.constant 0 : index
    %37 = vector.load %arg2[%c4, %c0_31, %c0_32] : memref<9x32x64xf32, #tpu.memory_space<vmem>>, vector<1x32x64xf32>
    %38 = vector.shape_cast %37 : vector<1x32x64xf32> to vector<32x64xf32>
    %cst_33 = arith.constant dense<0.000000e+00> : vector<256x64xf32>
    %39 = tpu.matmul %36, %38, %cst_33 {dimension_numbers = #tpu.dot_dimension_numbers<[0], [0], [1], [1], [0, 1, 1, 1], [], []>} : vector<32x256xf32>, vector<32x64xf32>, vector<256x64xf32> -> vector<256x64xf32>
    %40 = arith.addf %35, %39 : vector<256x64xf32>
    %c0_34 = arith.constant 0 : index
    %c129 = arith.constant 129 : index
    %41 = vector.load %arg7[%c0_34, %c129] : memref<32x512xf32, #tpu.memory_space<vmem>>, vector<32x256xf32>
    %42 = vector.broadcast %8 : vector<1x256xf32> to vector<32x256xf32>
    %43 = arith.mulf %41, %42 : vector<32x256xf32>
    %c5 = arith.constant 5 : index
    %c0_35 = arith.constant 0 : index
    %c0_36 = arith.constant 0 : index
    %44 = vector.load %arg2[%c5, %c0_35, %c0_36] : memref<9x32x64xf32, #tpu.memory_space<vmem>>, vector<1x32x64xf32>
    %45 = vector.shape_cast %44 : vector<1x32x64xf32> to vector<32x64xf32>
    %cst_37 = arith.constant dense<0.000000e+00> : vector<256x64xf32>
    %46 = tpu.matmul %43, %45, %cst_37 {dimension_numbers = #tpu.dot_dimension_numbers<[0], [0], [1], [1], [0, 1, 1, 1], [], []>} : vector<32x256xf32>, vector<32x64xf32>, vector<256x64xf32> -> vector<256x64xf32>
    %47 = arith.addf %40, %46 : vector<256x64xf32>
    %c0_38 = arith.constant 0 : index
    %c143 = arith.constant 143 : index
    %48 = vector.load %arg7[%c0_38, %c143] : memref<32x512xf32, #tpu.memory_space<vmem>>, vector<32x256xf32>
    %49 = vector.broadcast %6 : vector<1x256xf32> to vector<32x256xf32>
    %50 = arith.mulf %48, %49 : vector<32x256xf32>
    %c6 = arith.constant 6 : index
    %c0_39 = arith.constant 0 : index
    %c0_40 = arith.constant 0 : index
    %51 = vector.load %arg2[%c6, %c0_39, %c0_40] : memref<9x32x64xf32, #tpu.memory_space<vmem>>, vector<1x32x64xf32>
    %52 = vector.shape_cast %51 : vector<1x32x64xf32> to vector<32x64xf32>
    %cst_41 = arith.constant dense<0.000000e+00> : vector<256x64xf32>
    %53 = tpu.matmul %50, %52, %cst_41 {dimension_numbers = #tpu.dot_dimension_numbers<[0], [0], [1], [1], [0, 1, 1, 1], [], []>} : vector<32x256xf32>, vector<32x64xf32>, vector<256x64xf32> -> vector<256x64xf32>
    %54 = arith.addf %47, %53 : vector<256x64xf32>
    %c0_42 = arith.constant 0 : index
    %c144 = arith.constant 144 : index
    %55 = vector.load %arg7[%c0_42, %c144] : memref<32x512xf32, #tpu.memory_space<vmem>>, vector<32x256xf32>
    %c7 = arith.constant 7 : index
    %c0_43 = arith.constant 0 : index
    %c0_44 = arith.constant 0 : index
    %56 = vector.load %arg2[%c7, %c0_43, %c0_44] : memref<9x32x64xf32, #tpu.memory_space<vmem>>, vector<1x32x64xf32>
    %57 = vector.shape_cast %56 : vector<1x32x64xf32> to vector<32x64xf32>
    %cst_45 = arith.constant dense<0.000000e+00> : vector<256x64xf32>
    %58 = tpu.matmul %55, %57, %cst_45 {dimension_numbers = #tpu.dot_dimension_numbers<[0], [0], [1], [1], [0, 1, 1, 1], [], []>} : vector<32x256xf32>, vector<32x64xf32>, vector<256x64xf32> -> vector<256x64xf32>
    %59 = arith.addf %54, %58 : vector<256x64xf32>
    %c0_46 = arith.constant 0 : index
    %c145 = arith.constant 145 : index
    %60 = vector.load %arg7[%c0_46, %c145] : memref<32x512xf32, #tpu.memory_space<vmem>>, vector<32x256xf32>
    %61 = vector.broadcast %8 : vector<1x256xf32> to vector<32x256xf32>
    %62 = arith.mulf %60, %61 : vector<32x256xf32>
    %c8 = arith.constant 8 : index
    %c0_47 = arith.constant 0 : index
    %c0_48 = arith.constant 0 : index
    %63 = vector.load %arg2[%c8, %c0_47, %c0_48] : memref<9x32x64xf32, #tpu.memory_space<vmem>>, vector<1x32x64xf32>
    %64 = vector.shape_cast %63 : vector<1x32x64xf32> to vector<32x64xf32>
    %cst_49 = arith.constant dense<0.000000e+00> : vector<256x64xf32>
    %65 = tpu.matmul %62, %64, %cst_49 {dimension_numbers = #tpu.dot_dimension_numbers<[0], [0], [1], [1], [0, 1, 1, 1], [], []>} : vector<32x256xf32>, vector<32x64xf32>, vector<256x64xf32> -> vector<256x64xf32>
    %66 = arith.addf %59, %65 : vector<256x64xf32>
    %cst_50 = arith.constant 0.000000e+00 : f32
    %67 = vector.broadcast %cst_50 : f32 to vector<256x64xf32>
    %68 = arith.maximumf %66, %67 : vector<256x64xf32>
    %cst_51 = arith.constant 0.000000e+00 : f32
    %69 = vector.broadcast %cst_51 : f32 to vector<320x64xf32>
    %c0_52 = arith.constant 0 : index
    %c0_53 = arith.constant 0 : index
    %70 = vector.load %arg8[%c0_52, %c0_53] : memref<320x64xf32, #tpu.memory_space<vmem>>, vector<320x64xf32>
    tpu.vector_store %arg8[%c0_52, %c0_53], %69 {strides = array<i32>} : memref<320x64xf32, #tpu.memory_space<vmem>>, vector<320x64xf32>,
    %c32 = arith.constant 32 : index
    %c0_54 = arith.constant 0 : index
    %71 = vector.load %arg8[%c32, %c0_54] : memref<320x64xf32, #tpu.memory_space<vmem>>, vector<256x64xf32>
    tpu.vector_store %arg8[%c32, %c0_54], %68 {strides = array<i32>} : memref<320x64xf32, #tpu.memory_space<vmem>>, vector<256x64xf32>,
    %c0_55 = arith.constant 0 : index
    %c0_56 = arith.constant 0 : index
    %c0_57 = arith.constant 0 : index
    %72 = vector.load %arg5[%c0_55, %c0_56, %c0_57] : memref<2x256x1xf32, #tpu.memory_space<vmem>>, vector<1x256x1xf32>
    %73 = vector.shape_cast %72 : vector<1x256x1xf32> to vector<256x1xf32>
    %c1_58 = arith.constant 1 : index
    %c0_59 = arith.constant 0 : index
    %c0_60 = arith.constant 0 : index
    %74 = vector.load %arg5[%c1_58, %c0_59, %c0_60] : memref<2x256x1xf32, #tpu.memory_space<vmem>>, vector<1x256x1xf32>
    %75 = vector.shape_cast %74 : vector<1x256x1xf32> to vector<256x1xf32>
    %cst_61 = arith.constant 0.000000e+00 : f32
    %76 = vector.broadcast %cst_61 : f32 to vector<256x64xf32>
    %c15 = arith.constant 15 : index
    %c0_62 = arith.constant 0 : index
    %77 = vector.load %arg8[%c15, %c0_62] : memref<320x64xf32, #tpu.memory_space<vmem>>, vector<256x64xf32>
    %78 = vector.broadcast %73 : vector<256x1xf32> to vector<256x64xf32>
    %79 = arith.mulf %77, %78 : vector<256x64xf32>
    %c0_63 = arith.constant 0 : index
    %c0_64 = arith.constant 0 : index
    %c0_65 = arith.constant 0 : index
    %80 = vector.load %arg3[%c0_63, %c0_64, %c0_65] : memref<9x64x64xf32, #tpu.memory_space<vmem>>, vector<1x64x64xf32>
    %81 = vector.shape_cast %80 : vector<1x64x64xf32> to vector<64x64xf32>
    %cst_66 = arith.constant dense<0.000000e+00> : vector<256x64xf32>
    %82 = tpu.matmul %79, %81, %cst_66 {dimension_numbers = #tpu.dot_dimension_numbers<[1], [0], [0], [1], [0, 0, 1, 1], [], []>} : vector<256x64xf32>, vector<64x64xf32>, vector<256x64xf32> -> vector<256x64xf32>
    %83 = arith.addf %76, %82 : vector<256x64xf32>
    %c16 = arith.constant 16 : index
    %c0_67 = arith.constant 0 : index
    %84 = vector.load %arg8[%c16, %c0_67] : memref<320x64xf32, #tpu.memory_space<vmem>>, vector<256x64xf32>
    %c1_68 = arith.constant 1 : index
    %c0_69 = arith.constant 0 : index
    %c0_70 = arith.constant 0 : index
    %85 = vector.load %arg3[%c1_68, %c0_69, %c0_70] : memref<9x64x64xf32, #tpu.memory_space<vmem>>, vector<1x64x64xf32>
    %86 = vector.shape_cast %85 : vector<1x64x64xf32> to vector<64x64xf32>
    %cst_71 = arith.constant dense<0.000000e+00> : vector<256x64xf32>
    %87 = tpu.matmul %84, %86, %cst_71 {dimension_numbers = #tpu.dot_dimension_numbers<[1], [0], [0], [1], [0, 0, 1, 1], [], []>} : vector<256x64xf32>, vector<64x64xf32>, vector<256x64xf32> -> vector<256x64xf32>
    %88 = arith.addf %83, %87 : vector<256x64xf32>
    %c17 = arith.constant 17 : index
    %c0_72 = arith.constant 0 : index
    %89 = vector.load %arg8[%c17, %c0_72] : memref<320x64xf32, #tpu.memory_space<vmem>>, vector<256x64xf32>
    %90 = vector.broadcast %75 : vector<256x1xf32> to vector<256x64xf32>
    %91 = arith.mulf %89, %90 : vector<256x64xf32>
    %c2_73 = arith.constant 2 : index
    %c0_74 = arith.constant 0 : index
    %c0_75 = arith.constant 0 : index
    %92 = vector.load %arg3[%c2_73, %c0_74, %c0_75] : memref<9x64x64xf32, #tpu.memory_space<vmem>>, vector<1x64x64xf32>
    %93 = vector.shape_cast %92 : vector<1x64x64xf32> to vector<64x64xf32>
    %cst_76 = arith.constant dense<0.000000e+00> : vector<256x64xf32>
    %94 = tpu.matmul %91, %93, %cst_76 {dimension_numbers = #tpu.dot_dimension_numbers<[1], [0], [0], [1], [0, 0, 1, 1], [], []>} : vector<256x64xf32>, vector<64x64xf32>, vector<256x64xf32> -> vector<256x64xf32>
    %95 = arith.addf %88, %94 : vector<256x64xf32>
    %c31 = arith.constant 31 : index
    %c0_77 = arith.constant 0 : index
    %96 = vector.load %arg8[%c31, %c0_77] : memref<320x64xf32, #tpu.memory_space<vmem>>, vector<256x64xf32>
    %97 = vector.broadcast %73 : vector<256x1xf32> to vector<256x64xf32>
    %98 = arith.mulf %96, %97 : vector<256x64xf32>
    %c3_78 = arith.constant 3 : index
    %c0_79 = arith.constant 0 : index
    %c0_80 = arith.constant 0 : index
    %99 = vector.load %arg3[%c3_78, %c0_79, %c0_80] : memref<9x64x64xf32, #tpu.memory_space<vmem>>, vector<1x64x64xf32>
    %100 = vector.shape_cast %99 : vector<1x64x64xf32> to vector<64x64xf32>
    %cst_81 = arith.constant dense<0.000000e+00> : vector<256x64xf32>
    %101 = tpu.matmul %98, %100, %cst_81 {dimension_numbers = #tpu.dot_dimension_numbers<[1], [0], [0], [1], [0, 0, 1, 1], [], []>} : vector<256x64xf32>, vector<64x64xf32>, vector<256x64xf32> -> vector<256x64xf32>
    %102 = arith.addf %95, %101 : vector<256x64xf32>
    %c32_82 = arith.constant 32 : index
    %c0_83 = arith.constant 0 : index
    %103 = vector.load %arg8[%c32_82, %c0_83] : memref<320x64xf32, #tpu.memory_space<vmem>>, vector<256x64xf32>
    %c4_84 = arith.constant 4 : index
    %c0_85 = arith.constant 0 : index
    %c0_86 = arith.constant 0 : index
    %104 = vector.load %arg3[%c4_84, %c0_85, %c0_86] : memref<9x64x64xf32, #tpu.memory_space<vmem>>, vector<1x64x64xf32>
    %105 = vector.shape_cast %104 : vector<1x64x64xf32> to vector<64x64xf32>
    %cst_87 = arith.constant dense<0.000000e+00> : vector<256x64xf32>
    %106 = tpu.matmul %103, %105, %cst_87 {dimension_numbers = #tpu.dot_dimension_numbers<[1], [0], [0], [1], [0, 0, 1, 1], [], []>} : vector<256x64xf32>, vector<64x64xf32>, vector<256x64xf32> -> vector<256x64xf32>
    %107 = arith.addf %102, %106 : vector<256x64xf32>
    %c33 = arith.constant 33 : index
    %c0_88 = arith.constant 0 : index
    %108 = vector.load %arg8[%c33, %c0_88] : memref<320x64xf32, #tpu.memory_space<vmem>>, vector<256x64xf32>
    %109 = vector.broadcast %75 : vector<256x1xf32> to vector<256x64xf32>
    %110 = arith.mulf %108, %109 : vector<256x64xf32>
    %c5_89 = arith.constant 5 : index
    %c0_90 = arith.constant 0 : index
    %c0_91 = arith.constant 0 : index
    %111 = vector.load %arg3[%c5_89, %c0_90, %c0_91] : memref<9x64x64xf32, #tpu.memory_space<vmem>>, vector<1x64x64xf32>
    %112 = vector.shape_cast %111 : vector<1x64x64xf32> to vector<64x64xf32>
    %cst_92 = arith.constant dense<0.000000e+00> : vector<256x64xf32>
    %113 = tpu.matmul %110, %112, %cst_92 {dimension_numbers = #tpu.dot_dimension_numbers<[1], [0], [0], [1], [0, 0, 1, 1], [], []>} : vector<256x64xf32>, vector<64x64xf32>, vector<256x64xf32> -> vector<256x64xf32>
    %114 = arith.addf %107, %113 : vector<256x64xf32>
    %c47 = arith.constant 47 : index
    %c0_93 = arith.constant 0 : index
    %115 = vector.load %arg8[%c47, %c0_93] : memref<320x64xf32, #tpu.memory_space<vmem>>, vector<256x64xf32>
    %116 = vector.broadcast %73 : vector<256x1xf32> to vector<256x64xf32>
    %117 = arith.mulf %115, %116 : vector<256x64xf32>
    %c6_94 = arith.constant 6 : index
    %c0_95 = arith.constant 0 : index
    %c0_96 = arith.constant 0 : index
    %118 = vector.load %arg3[%c6_94, %c0_95, %c0_96] : memref<9x64x64xf32, #tpu.memory_space<vmem>>, vector<1x64x64xf32>
    %119 = vector.shape_cast %118 : vector<1x64x64xf32> to vector<64x64xf32>
    %cst_97 = arith.constant dense<0.000000e+00> : vector<256x64xf32>
    %120 = tpu.matmul %117, %119, %cst_97 {dimension_numbers = #tpu.dot_dimension_numbers<[1], [0], [0], [1], [0, 0, 1, 1], [], []>} : vector<256x64xf32>, vector<64x64xf32>, vector<256x64xf32> -> vector<256x64xf32>
    %121 = arith.addf %114, %120 : vector<256x64xf32>
    %c48 = arith.constant 48 : index
    %c0_98 = arith.constant 0 : index
    %122 = vector.load %arg8[%c48, %c0_98] : memref<320x64xf32, #tpu.memory_space<vmem>>, vector<256x64xf32>
    %c7_99 = arith.constant 7 : index
    %c0_100 = arith.constant 0 : index
    %c0_101 = arith.constant 0 : index
    %123 = vector.load %arg3[%c7_99, %c0_100, %c0_101] : memref<9x64x64xf32, #tpu.memory_space<vmem>>, vector<1x64x64xf32>
    %124 = vector.shape_cast %123 : vector<1x64x64xf32> to vector<64x64xf32>
    %cst_102 = arith.constant dense<0.000000e+00> : vector<256x64xf32>
    %125 = tpu.matmul %122, %124, %cst_102 {dimension_numbers = #tpu.dot_dimension_numbers<[1], [0], [0], [1], [0, 0, 1, 1], [], []>} : vector<256x64xf32>, vector<64x64xf32>, vector<256x64xf32> -> vector<256x64xf32>
    %126 = arith.addf %121, %125 : vector<256x64xf32>
    %c49 = arith.constant 49 : index
    %c0_103 = arith.constant 0 : index
    %127 = vector.load %arg8[%c49, %c0_103] : memref<320x64xf32, #tpu.memory_space<vmem>>, vector<256x64xf32>
    %128 = vector.broadcast %75 : vector<256x1xf32> to vector<256x64xf32>
    %129 = arith.mulf %127, %128 : vector<256x64xf32>
    %c8_104 = arith.constant 8 : index
    %c0_105 = arith.constant 0 : index
    %c0_106 = arith.constant 0 : index
    %130 = vector.load %arg3[%c8_104, %c0_105, %c0_106] : memref<9x64x64xf32, #tpu.memory_space<vmem>>, vector<1x64x64xf32>
    %131 = vector.shape_cast %130 : vector<1x64x64xf32> to vector<64x64xf32>
    %cst_107 = arith.constant dense<0.000000e+00> : vector<256x64xf32>
    %132 = tpu.matmul %129, %131, %cst_107 {dimension_numbers = #tpu.dot_dimension_numbers<[1], [0], [0], [1], [0, 0, 1, 1], [], []>} : vector<256x64xf32>, vector<64x64xf32>, vector<256x64xf32> -> vector<256x64xf32>
    %133 = arith.addf %126, %132 : vector<256x64xf32>
    %cst_108 = arith.constant 0.000000e+00 : f32
    %134 = vector.broadcast %cst_108 : f32 to vector<256x64xf32>
    %135 = arith.maximumf %133, %134 : vector<256x64xf32>
    %c0_109 = arith.constant 0 : index
    %c0_110 = arith.constant 0 : index
    %c0_111 = arith.constant 0 : index
    %136 = vector.load %arg6[%c0_109, %c0_110, %c0_111] : memref<1x256x64xf32, #tpu.memory_space<vmem>>, vector<1x256x64xf32>
    %137 = vector.shape_cast %136 : vector<1x256x64xf32> to vector<256x64xf32>
    %138 = vector.shape_cast %135 : vector<256x64xf32> to vector<1x256x64xf32>
    tpu.vector_store %arg6[%c0_109, %c0_110, %c0_111], %138 {strides = array<i32>} : memref<1x256x64xf32, #tpu.memory_space<vmem>>, vector<1x256x64xf32>,
    return
  }
  func.func @transform_0(%arg0: i32) -> (i32, i32, i32) {
    %c0_i32 = arith.constant 0 : i32
    %c0_i32_0 = arith.constant 0 : i32
    %c0_i32_1 = arith.constant 0 : i32
    return %arg0, %c0_i32, %c0_i32_0 : i32, i32, i32
  }
  func.func @transform_1(%arg0: i32) -> (i32, i32, i32) {
    %c0_i32 = arith.constant 0 : i32
    %c0_i32_0 = arith.constant 0 : i32
    %c0_i32_1 = arith.constant 0 : i32
    %c0_i32_2 = arith.constant 0 : i32
    return %c0_i32, %c0_i32_0, %c0_i32_1 : i32, i32, i32
  }
  func.func @transform_2(%arg0: i32) -> (i32, i32, i32) {
    %c0_i32 = arith.constant 0 : i32
    %c0_i32_0 = arith.constant 0 : i32
    %c0_i32_1 = arith.constant 0 : i32
    %c0_i32_2 = arith.constant 0 : i32
    return %c0_i32, %c0_i32_0, %c0_i32_1 : i32, i32, i32
  }
  func.func @transform_3(%arg0: i32) -> (i32, i32, i32) {
    %c0_i32 = arith.constant 0 : i32
    %c0_i32_0 = arith.constant 0 : i32
    %c0_i32_1 = arith.constant 0 : i32
    %c0_i32_2 = arith.constant 0 : i32
    return %c0_i32, %c0_i32_0, %c0_i32_1 : i32, i32, i32
  }
  func.func @transform_4(%arg0: i32) -> (i32, i32, i32) {
    %c0_i32 = arith.constant 0 : i32
    %c0_i32_0 = arith.constant 0 : i32
    %c0_i32_1 = arith.constant 0 : i32
    %c0_i32_2 = arith.constant 0 : i32
    return %c0_i32, %c0_i32_0, %c0_i32_1 : i32, i32, i32
  }
  func.func @transform_5(%arg0: i32) -> (i32, i32, i32) {
    %c0_i32 = arith.constant 0 : i32
    %c0_i32_0 = arith.constant 0 : i32
    %c0_i32_1 = arith.constant 0 : i32
    return %arg0, %c0_i32, %c0_i32_0 : i32, i32, i32
  }
}

</mosaic_0001>

<bundles_post_ra>
// kernel: tpu_custom_call.1
= control target key start
LH: loop header
LB: loop body
LE: loop exit
PB: predicated region body
PF: predicated region fallthrough
CT: control target
= control target key end

     0   :  { %10 = vsyncpa [#allocation5], 0  ;;  %s15238_s0 = inlined_call_operand.hbm [shape: f32[2,32,256], index: 0, kind: input, shape index: {}]   ;;  %s15239_s1 = inlined_call_operand.hbm [shape: f32[9,32,64], index: 1, kind: input, shape index: {}]   ;;  %s15240_s2 = inlined_call_operand.hbm [shape: f32[9,64,64], index: 2, kind: input, shape index: {}]   ;;  %s15241_s3 = inlined_call_operand.hbm [shape: f32[2,1,256], index: 3, kind: input, shape index: {}]   ;;  %s15242_s4 = inlined_call_operand.hbm [shape: f32[2,256,1], index: 4, kind: input, shape index: {}]   ;;  %s15243_s5 = inlined_call_operand.hbm [shape: f32[2,256,64], index: 5, kind: output, shape index: {}]  }
   0x1   :  { %12 = vsyncpa [#allocation5 + $0x1], 0 }
   0x2   :  { %13 = vsyncpa [#allocation8], 0 }
   0x3   :  { %14 = vsyncpa [#allocation11], 0 }
   0x4   :  { %15 = vsyncpa [#allocation6], 0 }
   0x5   :  { %17 = vsyncpa [#allocation6 + $0x1], 0  ;;  %s12516_s18 = smov 0   ;;  %s12518_s19 = smov 0  }
   0x6   :  { %s12520_s20 = smov 0   ;;  %s12522_s21 = smov 0  }
   0x7 LB: > { %s12537_s22 = sadd.s32 4294967295, %s12460_s21   ;;  %s9008_s23 = sadd.s32 4294967294, %s12460_s21   ;;  %s12460_s21 = sphi %s12522_s21, %s15734_s21   ;;  %s12456_s20 = sphi %s12520_s20, %s15733_s20   ;;  %s12452_s19 = sphi %s12518_s19, %s15732_s19   ;;  %s12448_s18 = sphi %s12516_s18, %s15731_s18  }
   0x8   : > { %p43_p0 = scmp.ne.s32.totalorder %s12452_s19, %s12448_s18  ;;  %p15244_p1 = scmp.eq.s32.totalorder %s12537_s22, 0 }
   0x9   : > { %p157_p3 = scmp.eq.s32.totalorder %s9008_s23, 1  ;;  %p9009_p5 = scmp.ge.s32.totalorder %s12460_s21, 1 }
   0xa   : > { %p12546_p4 = por %p15244_p1, %p43_p0  ;;  %p164_p7 = scmp.lt.s32.totalorder %s12460_s21, 3 }
   0xb   : > { %p12551_p6 = por %p157_p3, %p43_p0  ;;  %s12462_s27 = smov [#allocation7]  }
   0xc   : > { %s15427_s24 = scalar_select %p12546_p4, 1, 0 }
   0xd   : > { %s15428_s25 = scalar_select %p12551_p6, 1, 0 }
   0xe   : > { %p12556_p8 = pnand %p9009_p5, %p164_p7  ;;  %s176_s28 = sshll.u32 %s12462_s27, 4  ;;  %s12560_s28 = int_to_ptr.vmem [resolvable:$true] %s176_s28 }
   0xf   : > { %s12463_s30 = smov [#allocation10]   ;;  %s12244_s9 = scalar_lea.hbm %s15239_s1, 4608 }
  0x10   : > { %s15429_s26 = scalar_select %p12556_p8, 1, 0 }
  0x11   : > { %p12128_p9 = pneg %p12556_p8  ;;  %s202_s6 = sshll.u32 %s12463_s30, 4  ;;  %s12571_s6 = int_to_ptr.vmem [resolvable:$true] %s202_s6 }
  0x12   : > { %p12245_p12 = scmp.ne.s32.totalorder %s15239_s1, %s12244_s9  ;;  %p12251_p5 = scmp.lt.u32.totalorder %s12244_s9, %s15239_s1 }
  0x13   : > { %p12567_p11 = pnand %p12128_p9, %p15244_p1 }
  0x15   : > { %p12581_p13 = pneg %p12567_p11 }
  0x17   : > { %p12247_p0 = pnand %p12581_p13, %p12245_p12 }
  0x19   : > { %p12248_p3 = pneg %p12247_p0 }
  0x1b   : > { %p12253_p7 = pnand %p12251_p5, %p12248_p3 }
  0x1d   : > { %12256 = shalt.err (!%p12253_p7)
}
  0x1e   : > { %s12257_s15 = scalar_lea.vmem %s12560_s28, 4608  ;;  %p12265_p2 = scmp.lt.s32.totalorder %s12560_s28, %s12560_s28 }
  0x1f   : > { %p12258_p9 = scmp.ne.s32.totalorder %s12560_s28, %s12257_s15  ;;  %p12266_p6 = scmp.lt.s32.totalorder %s12257_s15, %s12257_s15 }
  0x21   : > { %p12260_p10 = pnand %p12258_p9, %p12581_p13  ;;  %p12267_p12 = por %p12266_p6, %p12265_p2 }
  0x23   : > { %p12261_p1 = pneg %p12260_p10 }
  0x25   : > { %p12268_p0 = pnand %p12267_p12, %p12261_p1 }
  0x27   : > { %12271 = shalt.err (!%p12268_p0)
}
  0x28   : > { %s15245_s16 = smov 128   ;;  %s12465_s17 = smov 8  }
  0x29   : > { %12131 = dma.hbm_to_vmem [thread:$0]  (!%p12567_p11), %s15239_s1, 4608, %s12560_s28, [#allocation8], %s15245_s16, %s15245_s16, %s12465_s17  }
  0x2a   : > { %s12272_s8 = scalar_lea.hbm %s15241_s3, 64 }
  0x2b   : > { %p12273_p1 = scmp.ne.s32.totalorder %s15241_s3, %s12272_s8  ;;  %p12279_p10 = scmp.lt.u32.totalorder %s12272_s8, %s15241_s3 }
  0x2d   : > { %p12275_p2 = pnand %p12273_p1, %p12581_p13 }
  0x2f   : > { %p12276_p6 = pneg %p12275_p2 }
  0x31   : > { %p12281_p3 = pnand %p12279_p10, %p12276_p6 }
  0x33   : > { %12284 = shalt.err (!%p12281_p3)
}
  0x34   : > { %s12285_s28 = scalar_lea.vmem %s12571_s6, 64  ;;  %p12293_p12 = scmp.lt.s32.totalorder %s12571_s6, %s12571_s6 }
  0x35   : > { %p12286_p5 = scmp.ne.s32.totalorder %s12571_s6, %s12285_s28  ;;  %p12294_p0 = scmp.lt.s32.totalorder %s12285_s28, %s12285_s28 }
  0x37   : > { %p12288_p7 = pnand %p12286_p5, %p12581_p13  ;;  %p12295_p1 = por %p12294_p0, %p12293_p12 }
  0x39   : > { %p12289_p9 = pneg %p12288_p7 }
  0x3b   : > { %p12296_p2 = pnand %p12295_p1, %p12289_p9 }
  0x3d   : > { %12299 = shalt.err (!%p12296_p2)
}
  0x3e   : > { %s12466_s14 = smov 32   ;;  %s12467_s15 = smov 2  }
  0x3f   : > { %12137 = dma.hbm_to_vmem [thread:$0]  (!%p12567_p11), %s15241_s3, 64, %s12571_s6, [#allocation11], %s12466_s14, %s12466_s14, %s12467_s15  }
  0x40   : > { %s12468_s30 = smov [#allocation9]   ;;  %s12469_s8 = smov [#allocation12]  }
  0x41   : > { %s189_s7 = sshll.u32 %s12468_s30, 4  ;;  %s215_s9 = sshll.u32 %s12469_s8, 4  ;;  %s190_s7 = int_to_ptr.vmem [resolvable:$true] %s189_s7  ;;  %s12628_s9 = int_to_ptr.vmem [resolvable:$true] %s215_s9 }
  0x42   : > { %s12300_s13 = scalar_lea.hbm %s15240_s2, 9216 }
  0x43   : > { %p12301_p6 = scmp.ne.s32.totalorder %s15240_s2, %s12300_s13  ;;  %p12307_p5 = scmp.lt.u32.totalorder %s12300_s13, %s15240_s2 }
  0x45   : > { %p12303_p10 = pnand %p12301_p6, %p12581_p13 }
  0x47   : > { %p12304_p3 = pneg %p12303_p10 }
  0x49   : > { %p12309_p7 = pnand %p12307_p5, %p12304_p3 }
  0x4b   : > { %12312 = shalt.err (!%p12309_p7)
}
  0x4c   : > { %s12313_s14 = scalar_lea.vmem %s190_s7, 9216  ;;  %p12321_p1 = scmp.lt.s32.totalorder %s190_s7, %s190_s7 }
  0x4d   : > { %p12314_p9 = scmp.ne.s32.totalorder %s190_s7, %s12313_s14  ;;  %p12322_p2 = scmp.lt.s32.totalorder %s12313_s14, %s12313_s14 }
  0x4f   : > { %p12316_p12 = pnand %p12314_p9, %p12581_p13  ;;  %p12323_p4 = por %p12322_p2, %p12321_p1 }
  0x51   : > { %p12317_p0 = pneg %p12316_p12 }
  0x53   : > { %p12324_p8 = pnand %p12323_p4, %p12317_p0 }
  0x55   : > { %12327 = shalt.err (!%p12324_p8)
}
  0x56   : > { %s15432_s16 = smov 128   ;;  %s12328_s10 = scalar_lea.hbm %s15242_s4, 8192 }
  0x57   : > { %12134 = dma.hbm_to_vmem [thread:$0]  (!%p12567_p11), %s15240_s2, 9216, %s190_s7, [#allocation8], %s15432_s16, %s15432_s16, %s12465_s17  }
  0x58   : > { %p12329_p6 = scmp.ne.s32.totalorder %s15242_s4, %s12328_s10  ;;  %p12335_p10 = scmp.lt.u32.totalorder %s12328_s10, %s15242_s4 }
  0x5a   : > { %p12331_p4 = pnand %p12329_p6, %p12581_p13 }
  0x5c   : > { %p12332_p8 = pneg %p12331_p4 }
  0x5e   : > { %p12337_p3 = pnand %p12335_p10, %p12332_p8 }
  0x60   : > { %12340 = shalt.err (!%p12337_p3)
}
  0x61   : > { %s12341_s7 = scalar_lea.vmem %s12628_s9, 8192  ;;  %p12349_p12 = scmp.lt.s32.totalorder %s12628_s9, %s12628_s9 }
  0x62   : > { %p12342_p5 = scmp.ne.s32.totalorder %s12628_s9, %s12341_s7  ;;  %p12350_p0 = scmp.lt.s32.totalorder %s12341_s7, %s12341_s7 }
  0x64   : > { %p12344_p7 = pnand %p12342_p5, %p12581_p13  ;;  %p12351_p1 = por %p12350_p0, %p12349_p12 }
  0x66   : > { %p12345_p9 = pneg %p12344_p7 }
  0x68   : > { %p12352_p2 = pnand %p12351_p1, %p12345_p9 }
  0x6a   : > { %12355 = shalt.err (!%p12352_p2)
}
  0x6b   : > { %12140 = dma.hbm_to_vmem [thread:$0]  (!%p12567_p11), %s15242_s4, 8192, %s12628_s9, [#allocation11], %s15432_s16, %s15432_s16, %s12465_s17  }
  0x6c   : > { %s12678_s29 = sadd.s32 1, %s12460_s21   ;;  %s30_s15 = sadd.s32 1, %s12456_s20 }
  0x6d   : > { %s27_s12 = ssub.s32 %s12460_s21, %s12678_s29  ;;  %p37_p6 = scmp.ne.s32.totalorder %s12456_s20, %s12452_s19 }
  0x6e   : > { %p28_p13 = scmp.eq.s32.totalorder %s27_s12, 0  ;;  %p38_p4 = scmp.eq.s32.totalorder %s12460_s21, 0 }
  0x6f   : > { %p15433_p10 = scmp.eq.s32.totalorder %s12537_s22, 1  ;;  %p12153_p5 = scmp.lt.s32.totalorder %s12460_s21, 2 }
  0x70   : > { %s12687_s27 = scalar_select %p28_p13, %s12456_s20, %s30_s15  }
  0x71   : > { %p39_p8 = por %p38_p4, %p37_p6  ;;  %p12691_p3 = por %p15433_p10, %p37_p6 }
  0x72   : > { %s229_s8 = sand.u32 1, %s12456_s20   ;;  %s9606_s17 = sshll.u32 %s12460_s21, 10 }
  0x73   : > { %s9015_s10 = sshll.u32 %s229_s8, 6  ;;  %s12701_s11 = scalar_lea.hbm %s15238_s0, %s9606_s17 }
  0x74   : > { %s233_s13 = scalar_lea.vmem [#allocation4], %s9015_s10  ;;  %p12705_p11 = pnand %p12153_p5, %p39_p8 }
  0x75   : > { %s240_s28 = sshll.u32 %s233_s13, 4  ;;  %s12709_s7 = scalar_lea.sflag [#allocation5], %s229_s8  ;;  %s12703_s28 = int_to_ptr.vmem [resolvable:$true] %s240_s28 }
  0x76   : > { %s12356_s6 = scalar_lea.hbm %s12701_s11, 1024  ;;  %p12358_p9 = pneg %p12705_p11 }
  0x77   : > { %p12357_p7 = scmp.ne.s32.totalorder %s12701_s11, %s12356_s6  ;;  %s12361_s15 = scalar_lea.hbm %s15238_s0, 2048 }
  0x78   : > { %p12362_p1 = scmp.lt.u32.totalorder %s12701_s11, %s15238_s0  ;;  %p12363_p2 = scmp.lt.u32.totalorder %s12361_s15, %s12356_s6 }
  0x79   : > { %p12359_p12 = pnand %p12358_p9, %p12357_p7  ;;  %p12365_p6 = scmp.lt.u32.totalorder %s12356_s6, %s12701_s11 }
  0x7a   : > { %p12364_p13 = por %p12363_p2, %p12362_p1 }
  0x7b   : > { %p12360_p0 = pneg %p12359_p12 }
  0x7c   : > { %p12366_p4 = por %p12365_p6, %p12364_p13 }
  0x7e   : > { %p12367_p8 = pnand %p12366_p4, %p12360_p0 }
  0x80   : > { %12370 = shalt.err (!%p12367_p8)
}
  0x81   : > { %s12371_s8 = scalar_lea.vmem %s12703_s28, 1024  ;;  %s12470_s9 = smov [#allocation4]  }
  0x82   : > { %p12372_p10 = scmp.ne.s32.totalorder %s12703_s28, %s12371_s8  ;;  %s12376_s16 = sshll.u32 %s12470_s9, 4  ;;  %s12377_s16 = int_to_ptr.vmem [resolvable:$false] %s12376_s16 }
  0x83   : > { %s12378_s13 = scalar_lea.vmem %s12377_s16, 2048  ;;  %p12379_p12 = scmp.lt.s32.totalorder %s12703_s28, %s12377_s16 }
  0x84   : > { %p12374_p5 = pnand %p12372_p10, %p12358_p9  ;;  %p12380_p1 = scmp.lt.s32.totalorder %s12378_s13, %s12371_s8 }
  0x86   : > { %p12375_p7 = pneg %p12374_p5  ;;  %p12381_p2 = por %p12380_p1, %p12379_p12 }
  0x88   : > { %p12382_p13 = pnand %p12381_p2, %p12375_p7 }
  0x8a   : > { %12385 = shalt.err (!%p12382_p13)
}
  0x8b   : > { %s12471_s6 = smov 256   ;;  %s12472_s14 = smov 16  }
  0x8c   : > { %12144 = dma.hbm_to_vmem [thread:$0]  (!%p12705_p11), %s12701_s11, 1024, %s12703_s28, %s12709_s7, %s12471_s6, %s12471_s6, %s12472_s14  }
  0x8d   : > { %p15436_p9 = scmp.ne.s32.totalorder %s15429_s26, 0 }
  0x8f   : > { %252 = sbr.rel (%p15436_p9) target bundleno = 2646 (0xa56), region = 40 }
  0x96   : > { %s12740_s12 = sand.u32 1, %s12452_s19   ;;  %p15437_p0 = scmp.ne.s32.totalorder %s15427_s24, 0 }
  0x97   : > { %s9019_s15 = sshll.u32 %s12740_s12, 6  ;;  %s255_s10 = scalar_lea.sflag [#allocation5], %s12740_s12 }
  0x98   : > { %s12744_s17 = scalar_lea.vmem [#allocation4], %s9019_s15 }
  0x99   : > { %12431 = dma.done.wait (%p15437_p0), %s255_s10, 1024  }
  0x9a   : > { %12433 = vsyncadd (%p15437_p0), %s255_s10, 4294966272  ;;  %p15438_p11 = scmp.eq.s32.totalorder %s12537_s22, 0 }
  0x9c   : > { %12435 = dma.done.wait (%p15438_p11), [#allocation8], 13824   ;;  %p15439_p6 = pmov %p15438_p11 }
  0x9e   : > { %12437 = vsyncadd (%p15439_p6), [#allocation8], 4294953472  ;;  %p15440_p4 = pmov %p15439_p6 }
  0xa0   : > { %12439 = dma.done.wait (%p15440_p4), [#allocation11], 8256   ;;  %p15441_p8 = pmov %p15440_p4 }
  0xa1   : > { %vm4688_vm0 = vcmask 523264   ;;  %v349_v0 = vlaneseq  ;;  %v15249_v1 = vmov 0.0   ;;  %s12474_s24 = smov 16   ;;  %v12837_v5 = vld [vmem:[%s12744_s17 + $0x10] sm:$0xff]  ;;  %v12840_v6 = vld [vmem:[%s12744_s17] sm:$0xff]  ;;  %s12475_s26 = smov 111  }
  0xa2   : > { %12441 = vsyncadd (%p15441_p8), [#allocation11], 4294959040  ;;  %4690 = vst.msk [vmem:[#allocation3 + $0x8] sm:$0xff] %vm4688_vm0, %v15249_v1  ;;  %12219 = vrot.lane.b32.xlu1 %v15249_v1, %s12474_s24  ;;  %12214 = vrot.lane.b32.xlu0 %v15249_v1, %s12474_s24  ;;  %v333_v7 = vld [vmem:[#allocation10] sm:$0x3]  ;;  %v12853_v10 = vld [vmem:[%s12744_s17 + $0x30] sm:$0xff] }
  0xa3   : > { %4691 = vst.msk [vmem:[#allocation3 + $0x10] sm:$0xff] %vm4688_vm0, %v15249_v1  ;;  %4692 = vst.msk [vmem:[#allocation3 + $0x18] sm:$0xff] %vm4688_vm0, %v15249_v1  ;;  %v350_v2 = vshrl.u32 %v349_v0, 7  ;;  %v12856_v11 = vld [vmem:[%s12744_s17 + $0x20] sm:$0xff]  ;;  %v12861_v12 = vld [vmem:[%s12744_s17 + $0x18] sm:$0xff]  ;;  %s12476_s11 = smov 113  }
  0xa4   : > { %4693 = vst.msk [vmem:[#allocation3 + $0x20] sm:$0xff] %vm4688_vm0, %v15249_v1  ;;  %4694 = vst.msk [vmem:[#allocation3 + $0x28] sm:$0xff] %vm4688_vm0, %v15249_v1  ;;  %v12864_v13 = vld [vmem:[%s12744_s17 + $0x8] sm:$0xff]  ;;  %v12869_v14 = vld [vmem:[%s12744_s17 + $0x38] sm:$0xff]  ;;  %vm423_vm1 = vcmask 130048   ;;  %s12477_s28 = smov 17  }
  0xa5   : > { %4695 = vst.msk [vmem:[#allocation3 + $0x30] sm:$0xff] %vm4688_vm0, %v15249_v1  ;;  %4696 = vst.msk [vmem:[#allocation3 + $0x38] sm:$0xff] %vm4688_vm0, %v15249_v1  ;;  %v351_v3 = vsub.s32 0, %v350_v2  ;;  %v355_v4 = vsub.s32 1, %v350_v2  ;;  %v335_v15 = vld [vmem:[#allocation10 + $0x2] sm:$0x3] }
  0xa6   : > { %4697 = vst.msk [vmem:[#allocation3 + $0x40] sm:$0xff] %vm4688_vm0, %v15249_v1  ;;  %4698 = vst.msk [vmem:[#allocation3 + $0x48] sm:$0xff] %vm4688_vm0, %v15249_v1  ;;  %407 = vrot.lane.b32.xlu1 %v12837_v5, %s12474_s24  ;;  %401 = vrot.lane.b32.xlu0 %v12840_v6, %s12474_s24  ;;  %v12872_v16 = vld [vmem:[%s12744_s17 + $0x28] sm:$0xff]  ;;  %vm361_vm2 = vcmask 908288   ;;  %vm1277_vm3 = vcmask 924672   ;;  %s12478_s23 = smov 15  }
  0xa7   : > { %4699 = vst.msk [vmem:[#allocation3 + $0x50] sm:$0xff] %vm4688_vm0, %v15249_v1  ;;  %4700 = vst.msk [vmem:[#allocation3 + $0x58] sm:$0xff] %vm4688_vm0, %v15249_v1  ;;  %v12844_v8 = vrot.slane %v333_v7, %v351_v3  ;;  %v12846_v9 = vrot.slane %v333_v7, %v355_v4  ;;  %v12875_v17 = vrot.slane %v335_v15, %v351_v3  ;;  %s12479_s7 = smov 127   ;;  %vm862_vm4 = vcmask 138240   ;;  %s12480_s8 = smov 1  }
  0xa8   : > { %4701 = vst.msk [vmem:[#allocation3 + $0x60] sm:$0xff] %vm4688_vm0, %v15249_v1  ;;  %4702 = vst.msk [vmem:[#allocation3 + $0x68] sm:$0xff] %vm4688_vm0, %v15249_v1  ;;  %v12880_v18 = vrot.slane %v335_v15, %v355_v4  ;;  %vm1335_vm5 = vcmask 121856   ;;  %vm1773_vm6 = vcmask 1039360   ;;  %vm1831_vm7 = vcmask 7168   ;;  %s12481_s9 = smov 112  }
  0xa9   : > { %4703 = vst.msk [vmem:[#allocation3 + $0x70] sm:$0xff] %vm4688_vm0, %v15249_v1  ;;  %4704 = vst.msk [vmem:[#allocation3 + $0x78] sm:$0xff] %vm4688_vm0, %v15249_v1  ;;  %vm3728_vm8 = vcmask 916480   ;;  %vm504_vm9 = vcmask 261120   ;;  %s9024_s16 = sshll.u32 %s12740_s12, 8  ;;  %s9607_s6 = sshll.u32 %s12537_s22, 12 }
  0xaa   : > { %4705 = vst.msk [vmem:[#allocation3 + $0x80] sm:$0xff] %vm4688_vm0, %v15249_v1  ;;  %4706 = vst.msk [vmem:[#allocation3 + $0x88] sm:$0xff] %vm4688_vm0, %v15249_v1  ;;  %357 = vrot.lane.b32.xlu1 %v12844_v8, %s12475_s26  ;;  %359 = vrot.lane.b32.xlu0 %v12846_v9, %s12475_s26  ;;  %s15121_s13 = scalar_lea.vmem [#allocation13], %s9024_s16  ;;  %s8884_s22 = scalar_lea.sflag [#allocation6], %s12740_s12 }
  0xab   : > { %4707 = vst.msk [vmem:[#allocation3 + $0x90] sm:$0xff] %vm4688_vm0, %v15249_v1  ;;  %4708 = vst.msk [vmem:[#allocation3 + $0x98] sm:$0xff] %vm4688_vm0, %v15249_v1  ;;  %s8897_s14 = sshll.u32 %s15121_s13, 4  ;;  %s15190_s14 = int_to_ptr.vmem [resolvable:$true] %s8897_s14 }
  0xac   : > { %4709 = vst.msk [vmem:[#allocation3 + $0xa0] sm:$0xff] %vm4688_vm0, %v15249_v1  ;;  %4710 = vst.msk [vmem:[#allocation3 + $0xa8] sm:$0xff] %vm4688_vm0, %v15249_v1 }
  0xad   : > { %4711 = vst.msk [vmem:[#allocation3 + $0xb0] sm:$0xff] %vm4688_vm0, %v15249_v1  ;;  %4712 = vst.msk [vmem:[#allocation3 + $0xb8] sm:$0xff] %vm4688_vm0, %v15249_v1 }
  0xae   : > { %4713 = vst.msk [vmem:[#allocation3 + $0xc0] sm:$0xff] %vm4688_vm0, %v15249_v1  ;;  %4714 = vst.msk [vmem:[#allocation3 + $0xc8] sm:$0xff] %vm4688_vm0, %v15249_v1  ;;  %419 = vrot.lane.b32.xlu1 %v12853_v10, %s12474_s24  ;;  %413 = vrot.lane.b32.xlu0 %v12856_v11, %s12474_s24 }
  0xaf   : > { %4715 = vst.msk [vmem:[#allocation3 + $0xd0] sm:$0xff] %vm4688_vm0, %v15249_v1  ;;  %4716 = vst.msk [vmem:[#allocation3 + $0xd8] sm:$0xff] %vm4688_vm0, %v15249_v1 }
  0xb0   : > { %4717 = vst.msk [vmem:[#allocation3 + $0xe0] sm:$0xff] %vm4688_vm0, %v15249_v1  ;;  %4718 = vst.msk [vmem:[#allocation3 + $0xe8] sm:$0xff] %vm4688_vm0, %v15249_v1 }
  0xb1   : > { %4719 = vst.msk [vmem:[#allocation3 + $0xf0] sm:$0xff] %vm4688_vm0, %v15249_v1  ;;  %4720 = vst.msk [vmem:[#allocation3 + $0xf8] sm:$0xff] %vm4688_vm0, %v15249_v1 }
  0xb2   : > { %4721 = vst.msk [vmem:[#allocation3 + $0x100] sm:$0xff] %vm4688_vm0, %v15249_v1  ;;  %4722 = vst.msk [vmem:[#allocation3 + $0x108] sm:$0xff] %vm4688_vm0, %v15249_v1  ;;  %409 = vrot.lane.b32.xlu1 %v12861_v12, %s12474_s24  ;;  %403 = vrot.lane.b32.xlu0 %v12864_v13, %s12474_s24 }
  0xb3   : > { %4723 = vst.msk [vmem:[#allocation3 + $0x110] sm:$0xff] %vm4688_vm0, %v15249_v1  ;;  %4724 = vst.msk [vmem:[#allocation3 + $0x118] sm:$0xff] %vm4688_vm0, %v15249_v1 }
  0xb4   : > { %4725 = vst.msk [vmem:[#allocation3 + $0x120] sm:$0xff] %vm4688_vm0, %v15249_v1  ;;  %4726 = vst.msk [vmem:[#allocation3 + $0x128] sm:$0xff] %vm4688_vm0, %v15249_v1 }
  0xb5   : > { %4727 = vst.msk [vmem:[#allocation3 + $0x130] sm:$0xff] %vm4688_vm0, %v15249_v1 }
  0xb6   : > { %421 = vrot.lane.b32.xlu1 %v12869_v14, %s12474_s24  ;;  %415 = vrot.lane.b32.xlu0 %v12872_v16, %s12474_s24  ;;  %s12386_s24 = scalar_lea.vmem %s15190_s14, 4096 }
  0xb7   : > { %p12387_p10 = scmp.ne.s32.totalorder %s15190_s14, %s12386_s24 }
  0xb9   : > { %p12388_p5 = pnand %p12387_p10, %p12691_p3 }
  0xba   : > { %1273 = vrot.lane.b32.xlu1 %v12875_v17, %s12476_s11 }
  0xbb   : > { %p12389_p7 = pneg %p12388_p5 }
  0xbe   : > { %1275 = vrot.lane.b32.xlu1 %v12880_v18, %s12476_s11 }
 0x114   : > { %v12884_v19 = vpop.permute.xlu1 %12219  ;;  %v12886_v20 = vpop.permute.xlu0 %12214 }
 0x115   : > { %v12216_v21 = vunpack.i.l.bf16 %v12886_v20 }
 0x118   : > { %v12889_v22 = vpop.permute.xlu1 %407  ;;  %v402_v23 = vpop.permute.xlu0 %401 }
 0x119   : > { %v12892_v24 = vsel %vm423_vm1, %v12216_v21, %v402_v23 }
 0x11c   : > { %v358_v25 = vpop.permute.xlu1 %357  ;;  %v360_v26 = vpop.permute.xlu0 %359 }
 0x11d   : > { %v366_v27 = vmul.f32 0.0, %v358_v25  ;;  %v371_v28 = vmul.f32 %v360_v26, %v12861_v12  ;;  %v377_v31 = vmul.f32 %v360_v26, %v12869_v14  ;;  %v368_v35 = vmul.f32 %v360_v26, %v12864_v13 }
 0x11e   : > { %v362_v38 = vsel %vm361_vm2, %v358_v25, %v360_v26  ;;  %v374_v51 = vmul.f32 %v360_v26, %v12872_v16 }
 0x11f   : > { %844 = vrot.lane.b32.xlu1 %v366_v27, %s12477_s28  ;;  %838 = vrot.lane.b32.xlu0 %v366_v27, %s12477_s28  ;;  %v367_v40 = vmul.f32 %v362_v38, %v12840_v6  ;;  %v370_v43 = vmul.f32 %v362_v38, %v12837_v5  ;;  %v373_v47 = vmul.f32 %v362_v38, %v12856_v11 }
 0x120   : > { %v12897_v29 = vpop.permute.xlu1 %419  ;;  %v12899_v30 = vpop.permute.xlu0 %413  ;;  %v376_v49 = vmul.f32 %v362_v38, %v12853_v10 }
 0x123   : > { %850 = vrot.lane.b32.xlu1 %v366_v27, %s12477_s28  ;;  %848 = vrot.lane.b32.xlu0 %v371_v28, %s12477_s28 }
 0x124   : > { %v12904_v32 = vpop.permute.xlu1 %409  ;;  %v404_v33 = vpop.permute.xlu0 %403 }
 0x125   : > { %v12907_v34 = vsel %vm423_vm1, %v402_v23, %v404_v33 }
 0x127   : > { %856 = vrot.lane.b32.xlu1 %v366_v27, %s12477_s28  ;;  %860 = vrot.lane.b32.xlu0 %v377_v31, %s12477_s28 }
 0x128   : > { %v422_v36 = vpop.permute.xlu1 %421  ;;  %v12953_v56 = vpop.permute.xlu0 %415 }
 0x129   : > { %v12914_v37 = vsel %vm423_vm1, %v12897_v29, %v422_v36 }
 0x12b   : > { %842 = vrot.lane.b32.xlu1 %v368_v35, %s12477_s28 }
 0x12c   : > { %v1274_v39 = vpop.permute.xlu1 %1273 }
 0x12d   : > { %v1282_v41 = vmul.f32 0.0, %v1274_v39 }
 0x12f   : > { %840 = vrot.lane.b32.xlu1 %v367_v40, %s12477_s28  ;;  %1311 = vrot.lane.b32.xlu0 %v1282_v41, %s12478_s23 }
 0x130   : > { %v1276_v42 = vpop.permute.xlu1 %1275 }
 0x131   : > { %v1278_v44 = vsel %vm1277_vm3, %v1274_v39, %v1276_v42  ;;  %v1290_v48 = vmul.f32 %v1276_v42, %v12872_v16  ;;  %v1293_v50 = vmul.f32 %v1276_v42, %v12869_v14  ;;  %v1284_v54 = vmul.f32 %v1276_v42, %v12864_v13 }
 0x132   : > { %v1283_v45 = vmul.f32 %v1278_v44, %v12840_v6  ;;  %v1289_v46 = vmul.f32 %v1278_v44, %v12856_v11  ;;  %v1286_v52 = vmul.f32 %v1278_v44, %v12837_v5  ;;  %v1292_v53 = vmul.f32 %v1278_v44, %v12853_v10 }
 0x133   : > { %846 = vrot.lane.b32.xlu1 %v370_v43, %s12477_s28  ;;  %v1287_v55 = vmul.f32 %v1276_v42, %v12861_v12 }
 0x134   : > { %1313 = vrot.lane.b32.xlu0 %v1283_v45, %s12478_s23 }
 0x137   : > { %852 = vrot.lane.b32.xlu1 %v373_v47, %s12477_s28 }
 0x138   : > { %1325 = vrot.lane.b32.xlu0 %v1289_v46, %s12478_s23 }
 0x13b   : > { %858 = vrot.lane.b32.xlu1 %v376_v49, %s12477_s28 }
 0x13c   : > { %1327 = vrot.lane.b32.xlu0 %v1290_v48, %s12478_s23 }
 0x13f   : > { %854 = vrot.lane.b32.xlu1 %v374_v51, %s12477_s28 }
 0x140   : > { %1333 = vrot.lane.b32.xlu0 %v1293_v50, %s12478_s23 }
 0x143   : > { %1317 = vrot.lane.b32.xlu1 %v1282_v41, %s12478_s23 }
 0x147   : > { %1319 = vrot.lane.b32.xlu1 %v1286_v52, %s12478_s23 }
 0x14b   : > { %1769 = vrot.lane.b32.xlu1 %v12844_v8, %s12479_s7 }
 0x14f   : > { %1771 = vrot.lane.b32.xlu1 %v12846_v9, %s12479_s7 }
 0x153   : > { %1323 = vrot.lane.b32.xlu1 %v1282_v41, %s12478_s23 }
 0x157   : > { %1329 = vrot.lane.b32.xlu1 %v1282_v41, %s12478_s23 }
 0x15b   : > { %1331 = vrot.lane.b32.xlu1 %v1292_v53, %s12478_s23 }
 0x15f   : > { %1315 = vrot.lane.b32.xlu1 %v1284_v54, %s12478_s23 }
 0x163   : > { %1321 = vrot.lane.b32.xlu1 %v1287_v55, %s12478_s23 }
 0x191   : > { %v845_v57 = vpop.permute.xlu1 %844  ;;  %v12955_v58 = vpop.permute.xlu0 %838 }
 0x195   : > { %v851_v59 = vpop.permute.xlu1 %850  ;;  %v849_v60 = vpop.permute.xlu0 %848 }
 0x199   : > { %v857_v61 = vpop.permute.xlu1 %856  ;;  %v861_v63 = vpop.permute.xlu0 %860 }
 0x19d   : > { %v843_v62 = vpop.permute.xlu1 %842 }
 0x1a1   : > { %v12957_v0 = vpop.permute.xlu1 %840  ;;  %v1312_v2 = vpop.permute.xlu0 %1311 }
 0x1a2   : > { %v12961_v3 = vsel %vm862_vm4, %v12957_v0, %v843_v62 }
 0x1a5   : > { %v847_v4 = vpop.permute.xlu1 %846 }
 0x1a6   : > { %v1314_v7 = vpop.permute.xlu0 %1313  ;;  %v12964_v15 = vsel %vm862_vm4, %v845_v57, %v847_v4  ;;  %v12967_v21 = vsel %vm862_vm4, %v847_v4, %v849_v60 }
 0x1a7   : > { %v12970_v23 = vsel %vm1335_vm5, %v1312_v2, %v1314_v7 }
 0x1a9   : > { %v853_v25 = vpop.permute.xlu1 %852 }
 0x1aa   : > { %v1326_v26 = vpop.permute.xlu0 %1325  ;;  %v12973_v27 = vsel %vm862_vm4, %v851_v59, %v853_v25 }
 0x1ad   : > { %v859_v28 = vpop.permute.xlu1 %858 }
 0x1ae   : > { %v1328_v31 = vpop.permute.xlu0 %1327  ;;  %v12976_v33 = vsel %vm862_vm4, %v857_v61, %v859_v28  ;;  %v12979_v35 = vsel %vm862_vm4, %v859_v28, %v861_v63 }
 0x1af   : > { %v12982_v36 = vsel %vm1335_vm5, %v1326_v26, %v1328_v31 }
 0x1b1   : > { %v855_v38 = vpop.permute.xlu1 %854 }
 0x1b2   : > { %v12985_v39 = vsel %vm862_vm4, %v853_v25, %v855_v38  ;;  %v13028_v63 = vpop.permute.xlu0 %1333 }
 0x1b5   : > { %v12987_v40 = vpop.permute.xlu1 %1317 }
 0x1b9   : > { %v12989_v41 = vpop.permute.xlu1 %1319 }
 0x1bd   : > { %v1770_v42 = vpop.permute.xlu1 %1769 }
 0x1be   : > { %v1778_v43 = vmul.f32 0.0, %v1770_v42 }
 0x1c0   : > { %1813 = vrot.lane.b32.xlu1 %v1778_v43, %s12480_s8  ;;  %1807 = vrot.lane.b32.xlu0 %v1778_v43, %s12480_s8 }
 0x1c1   : > { %v1772_v44 = vpop.permute.xlu1 %1771 }
 0x1c2   : > { %v1774_v45 = vsel %vm1773_vm6, %v1770_v42, %v1772_v44  ;;  %v1786_v52 = vmul.f32 %v1772_v44, %v12872_v16  ;;  %v1789_v57 = vmul.f32 %v1772_v44, %v12869_v14  ;;  %v1780_v60 = vmul.f32 %v1772_v44, %v12864_v13 }
 0x1c3   : > { %v1779_v46 = vmul.f32 %v1774_v45, %v12840_v6  ;;  %v1785_v48 = vmul.f32 %v1774_v45, %v12856_v11  ;;  %v1782_v50 = vmul.f32 %v1774_v45, %v12837_v5  ;;  %v1788_v54 = vmul.f32 %v1774_v45, %v12853_v10 }
 0x1c4   : > { %1819 = vrot.lane.b32.xlu1 %v1778_v43, %s12480_s8  ;;  %v1783_v62 = vmul.f32 %v1772_v44, %v12861_v12 }
 0x1c5   : > { %v1324_v47 = vpop.permute.xlu1 %1323  ;;  %1809 = vrot.lane.b32.xlu0 %v1779_v46, %s12480_s8 }
 0x1c6   : > { %v12999_v49 = vsel %vm1335_vm5, %v1324_v47, %v1326_v26 }
 0x1c8   : > { %1821 = vrot.lane.b32.xlu1 %v1785_v48, %s12480_s8 }
 0x1c9   : > { %v1330_v51 = vpop.permute.xlu1 %1329  ;;  %1815 = vrot.lane.b32.xlu0 %v1782_v50, %s12480_s8 }
 0x1cc   : > { %1825 = vrot.lane.b32.xlu1 %v1778_v43, %s12480_s8 }
 0x1cd   : > { %v13006_v53 = vpop.permute.xlu1 %1331  ;;  %1823 = vrot.lane.b32.xlu0 %v1786_v52, %s12480_s8 }
 0x1ce   : > { %v13012_v55 = vsel %vm1335_vm5, %v1330_v51, %v13006_v53 }
 0x1d0   : > { %1827 = vrot.lane.b32.xlu1 %v1788_v54, %s12480_s8 }
 0x1d1   : > { %v1316_v59 = vpop.permute.xlu1 %1315  ;;  %1829 = vrot.lane.b32.xlu0 %v1789_v57, %s12480_s8 }
 0x1d2   : > { %v13019_v61 = vsel %vm1335_vm5, %v1314_v7, %v1316_v59 }
 0x1d4   : > { %1811 = vrot.lane.b32.xlu1 %v1780_v60, %s12480_s8 }
 0x1d5   : > { %2699 = vrot.lane.b32.xlu0 %v12875_v17, %s12480_s8  ;;  %v13030_v2 = vpop.permute.xlu1 %1321 }
 0x1d8   : > { %1817 = vrot.lane.b32.xlu1 %v1783_v62, %s12480_s8 }
 0x1dc   : > { %2701 = vrot.lane.b32.xlu1 %v12880_v18, %s12480_s8 }
 0x232   : > { %v1814_v4 = vpop.permute.xlu1 %1813  ;;  %v1808_v25 = vpop.permute.xlu0 %1807 }
 0x236   : > { %v1820_v7 = vpop.permute.xlu1 %1819 }
 0x237   : > { %v1810_v26 = vpop.permute.xlu0 %1809 }
 0x238   : > { %v13033_v28 = vsel %vm1831_vm7, %v1808_v25, %v1810_v26 }
 0x23a   : > { %v1822_v31 = vpop.permute.xlu1 %1821 }
 0x23b   : > { %v1816_v38 = vpop.permute.xlu0 %1815  ;;  %v13036_v42 = vsel %vm1831_vm7, %v1820_v7, %v1822_v31 }
 0x23c   : > { %v13039_v43 = vsel %vm1831_vm7, %v1814_v4, %v1816_v38 }
 0x23e   : > { %v1826_v44 = vpop.permute.xlu1 %1825 }
 0x23f   : > { %v1824_v45 = vpop.permute.xlu0 %1823 }
 0x240   : > { %v13042_v46 = vsel %vm1831_vm7, %v1822_v31, %v1824_v45 }
 0x242   : > { %v1828_v47 = vpop.permute.xlu1 %1827 }
 0x243   : > { %v1830_v48 = vpop.permute.xlu0 %1829  ;;  %v13045_v50 = vsel %vm1831_vm7, %v1826_v44, %v1828_v47 }
 0x244   : > { %v13048_v51 = vsel %vm1831_vm7, %v1828_v47, %v1830_v48 }
 0x246   : > { %v1812_v52 = vpop.permute.xlu1 %1811 }
 0x247   : > { %v2700_v54 = vpop.permute.xlu0 %2699  ;;  %v13051_v57 = vsel %vm1831_vm7, %v1810_v26, %v1812_v52 }
 0x248   : > { %v2707_v59 = vmul.f32 %v2700_v54, %v12840_v6  ;;  %v2710_v26 = vmul.f32 %v2700_v54, %v12837_v5  ;;  %v2713_v44 = vmul.f32 %v2700_v54, %v12856_v11 }
 0x24a   : > { %v1818_v60 = vpop.permute.xlu1 %1817  ;;  %2736 = vrot.lane.b32.xlu1 %v2707_v59, %s12479_s7 }
 0x24b   : > { %v13056_v62 = vsel %vm1831_vm7, %v1816_v38, %v1818_v60 }
 0x24e   : > { %v2702_v4 = vpop.permute.xlu1 %2701 }
 0x24f   : > { %v2703_v25 = vsel %vm1831_vm7, %v2700_v54, %v2702_v4  ;;  %v2709_v38 = vmul.f32 0.0, %v2702_v4 }
 0x250   : > { %v2711_v7 = vmul.f32 %v2703_v25, %v12861_v12  ;;  %v2708_v31 = vmul.f32 %v2703_v25, %v12864_v13  ;;  %v2714_v45 = vmul.f32 %v2703_v25, %v12872_v16 }
 0x252   : > { %2744 = vrot.lane.b32.xlu1 %v2711_v7, %s12479_s7  ;;  %2738 = vrot.lane.b32.xlu0 %v2708_v31, %s12479_s7 }
 0x256   : > { %3193 = vrot.lane.b32.xlu1 %v12844_v8, %s12478_s23  ;;  %2742 = vrot.lane.b32.xlu0 %v2710_v26, %s12479_s7  ;;  %v2716_v8 = vmul.f32 %v2700_v54, %v12853_v10 }
 0x25a   : > { %3195 = vrot.lane.b32.xlu1 %v12846_v9, %s12478_s23  ;;  %2746 = vrot.lane.b32.xlu0 %v2709_v38, %s12479_s7  ;;  %v2717_v9 = vmul.f32 %v2703_v25, %v12869_v14 }
 0x25e   : > { %2748 = vrot.lane.b32.xlu1 %v2713_v44, %s12479_s7  ;;  %2752 = vrot.lane.b32.xlu0 %v2709_v38, %s12479_s7 }
 0x262   : > { %2750 = vrot.lane.b32.xlu1 %v2714_v45, %s12479_s7  ;;  %2758 = vrot.lane.b32.xlu0 %v2709_v38, %s12479_s7 }
 0x266   : > { %2754 = vrot.lane.b32.xlu1 %v2716_v8, %s12479_s7 }
 0x26a   : > { %2756 = vrot.lane.b32.xlu1 %v2717_v9, %s12479_s7 }
 0x26e   : > { %2740 = vrot.lane.b32.xlu1 %v2709_v38, %s12479_s7 }
 0x2bc   : > { %v13081_v47 = vpop.permute.xlu1 %2736 }
 0x2c4   : > { %v13083_v48 = vpop.permute.xlu1 %2744  ;;  %v13085_v52 = vpop.permute.xlu0 %2738 }
 0x2c5   : > { %15442 = vst [vmem:[#allocation18_spill] sm:$0xff] %v13083_v48 }
 0x2c8   : > { %v3194_v59 = vpop.permute.xlu1 %3193  ;;  %v2743_v60 = vpop.permute.xlu0 %2742 }
 0x2c9   : > { %v3201_v4 = vmul.f32 %v3194_v59, %v12840_v6  ;;  %v13090_v54 = vsel %vm1773_vm6, %v2743_v60, %v13083_v48  ;;  %v3207_v45 = vmul.f32 %v3194_v59, %v12856_v11  ;;  %v3204_v8 = vmul.f32 %v3194_v59, %v12837_v5 }
 0x2cb   : > { %3230 = vrot.lane.b32.xlu1 %v3201_v4, %s12476_s11 }
 0x2cc   : > { %v3196_v25 = vpop.permute.xlu1 %3195  ;;  %v13094_v31 = vpop.permute.xlu0 %2746 }
 0x2cd   : > { %v3197_v7 = vsel %vm1335_vm5, %v3194_v59, %v3196_v25  ;;  %15443 = vst [vmem:[#allocation19_spill] sm:$0xff] %v13094_v31  ;;  %v3210_v31 = vmul.f32 %v3194_v59, %v12853_v10 }
 0x2ce   : > { %v3205_v26 = vmul.f32 %v3197_v7, %v12861_v12  ;;  %v3202_v38 = vmul.f32 %v3197_v7, %v12864_v13  ;;  %v3208_v48 = vmul.f32 %v3197_v7, %v12872_v16 }
 0x2d0   : > { %3238 = vrot.lane.b32.xlu1 %v3205_v26, %s12476_s11  ;;  %v2749_v44 = vpop.permute.xlu1 %2748  ;;  %3232 = vrot.lane.b32.xlu0 %v3202_v38, %s12476_s11  ;;  %v2753_v9 = vpop.permute.xlu0 %2752  ;;  %v3203_v26 = vmul.f32 0.0, %v3196_v25  ;;  %v3211_v25 = vmul.f32 %v3197_v7, %v12869_v14 }
 0x2d4   : > { %3242 = vrot.lane.b32.xlu1 %v3207_v45, %s12476_s11  ;;  %v2751_v60 = vpop.permute.xlu1 %2750  ;;  %3236 = vrot.lane.b32.xlu0 %v3204_v8, %s12476_s11  ;;  %v385_v8 = vld [vmem:[#allocation7 + $0x30] sm:$0xff] }
 0x2d5   : > { %v13105_v4 = vsel %vm1773_vm6, %v2749_v44, %v2751_v60  ;;  %v13108_v1 = vsel %vm1773_vm6, %v2751_v60, %v2753_v9  ;;  %v386_v9 = vld [vmem:[#allocation7 + $0x38] sm:$0xff] }
 0x2d6   : > { %v11376_v60 = vpack.c.bf16 %v386_v9, %v385_v8 }
 0x2d8   : > { %3244 = vrot.lane.b32.xlu1 %v3208_v48, %s12476_s11  ;;  %v2755_v38 = vpop.permute.xlu1 %2754  ;;  %3240 = vrot.lane.b32.xlu0 %v3203_v26, %s12476_s11  ;;  %v15444_v48 = vmov 0.0  }
 0x2dc   : > { %3248 = vrot.lane.b32.xlu1 %v3210_v31, %s12476_s11  ;;  %v13115_v45 = vpop.permute.xlu1 %2756  ;;  %3246 = vrot.lane.b32.xlu0 %v3203_v26, %s12476_s11 }
 0x2dd   : > { %v13120_v44 = vsel %vm1773_vm6, %v2755_v38, %v13115_v45  ;;  %v13160_v38 = vpop.permute.xlu0 %2758 }
 0x2e0   : > { %3250 = vrot.lane.b32.xlu1 %v3211_v25, %s12476_s11  ;;  %3252 = vrot.lane.b32.xlu0 %v3203_v26, %s12476_s11 }
 0x2e4   : > { %3234 = vrot.lane.b32.xlu1 %v3203_v26, %s12476_s11  ;;  %3704 = vrot.lane.b32.xlu0 %v12840_v6, %s12481_s9 }
 0x2e8   : > { %3706 = vrot.lane.b32.xlu0 %v12864_v13, %s12481_s9  ;;  %12229 = vrot.lane.b32.xlu1 %v15444_v48, %s12481_s9 }
 0x2ec   : > { %3710 = vrot.lane.b32.xlu0 %v12837_v5, %s12481_s9 }
 0x2f0   : > { %3712 = vrot.lane.b32.xlu0 %v12861_v12, %s12481_s9  ;;  %v12217_v12 = vunpack.i.h.bf16 %v12886_v20  ;;  %v384_v20 = vld [vmem:[#allocation7 + $0x28] sm:$0xff] }
 0x2f4   : > { %4162 = vrot.lane.b32.xlu0 %v12875_v17, %s12477_s28  ;;  %v426_v17 = vsel %vm423_vm1, %v12217_v12, %v12889_v22 }
 0x2f8   : > { %4164 = vrot.lane.b32.xlu0 %v12880_v18, %s12477_s28  ;;  %v12221_v18 = vunpack.i.l.bf16 %v12884_v19 }
 0x2fa   : > { %v428_v59 = vsel %vm423_vm1, %v12221_v18, %v12899_v30 }
 0x2fc   : > { %3716 = vrot.lane.b32.xlu0 %v12856_v11, %s12481_s9 }
 0x300   : > { %3718 = vrot.lane.b32.xlu0 %v12872_v16, %s12481_s9  ;;  %v12222_v16 = vunpack.i.h.bf16 %v12884_v19 }
 0x302   : > { %v430_v7 = vsel %vm423_vm1, %v12222_v16, %v12897_v29 }
 0x304   : > { %3722 = vrot.lane.b32.xlu0 %v12853_v10, %s12481_s9 }
 0x308   : > { %3724 = vrot.lane.b32.xlu0 %v12869_v14, %s12481_s9  ;;  %v383_v14 = vld [vmem:[#allocation7 + $0x20] sm:$0xff] }
 0x309   : > { %v11372_v31 = vpack.c.bf16 %v384_v20, %v383_v14 }
 0x30b   : > { %11373 = vmatprep.subr.bf16.mxu0 %v11372_v31 }
 0x30c   : > { %11375 = vmatpush3.bf16.msra.mxu0 %v11372_v31 }
 0x30d   : > { %11377 = vmatprep.subr.bf16.mxu0 %v11376_v60 }
 0x310   : > { %11379 = vmatpush3.bf16.msra.mxu0 %v11376_v60 }
 0x326   : > { %440 = vxpose.xlu0.b32.start [1/4] (short) %v12892_v24, 128  ;;  %v13158_v24 = vpop.permute.xlu1 %2740 }
 0x32a   : > { %441 = vxpose.xlu0.b32.cont [2/4] (short) %v426_v17, 128 }
 0x32e   : > { %442 = vxpose.xlu0.b32.cont [3/4] (short) %v428_v59, 128 }
 0x332   : > { %443 = vxpose.xlu0.b32.end [4/4] (short) %v430_v7, 128 }
 0x33d   : > { %v3231_v26 = vpop.permute.xlu1 %3230 }
 0x342   : > { %v3239_v19 = vpop.permute.xlu1 %3238  ;;  %v3233_v25 = vpop.permute.xlu0 %3232 }
 0x343   : > { %v13163_v29 = vsel %vm1277_vm3, %v3231_v26, %v3233_v25 }
 0x344   : > { %15445 = vst [vmem:[#allocation20_spill] sm:$0xff] %v13163_v29 }
 0x346   : > { %v3243_v12 = vpop.permute.xlu1 %3242  ;;  %v3237_v17 = vpop.permute.xlu0 %3236 }
 0x347   : > { %v13166_v18 = vsel %vm1277_vm3, %v3237_v17, %v3239_v19 }
 0x348   : > { %15446 = vst [vmem:[#allocation21_spill] sm:$0xff] %v13166_v18 }
 0x34a   : > { %v3245_v59 = vpop.permute.xlu1 %3244  ;;  %v3241_v16 = vpop.permute.xlu0 %3240 }
 0x34b   : > { %v13169_v7 = vsel %vm1277_vm3, %v3239_v19, %v3241_v16  ;;  %v13172_v14 = vsel %vm1277_vm3, %v3243_v12, %v3245_v59 }
 0x34e   : > { %v3249_v20 = vpop.permute.xlu1 %3248  ;;  %v3247_v31 = vpop.permute.xlu0 %3246 }
 0x34f   : > { %v13175_v8 = vsel %vm1277_vm3, %v3245_v59, %v3247_v31  ;;  %v863_v31 = vsel %vm862_vm4, %v12955_v58, %v12957_v0 }
 0x352   : > { %v3251_v9 = vpop.permute.xlu1 %3250  ;;  %v3253_v60 = vpop.permute.xlu0 %3252 }
 0x353   : > { %v13178_v26 = vsel %vm1277_vm3, %v3251_v9, %v3253_v60  ;;  %v13181_v17 = vsel %vm1277_vm3, %v3249_v20, %v3251_v9 }
 0x356   : > { %v3235_v18 = vpop.permute.xlu1 %3234  ;;  %v13183_v29 = vpop.permute.xlu0 %3704 }
 0x357   : > { %v13186_v19 = vsel %vm1277_vm3, %v3233_v25, %v3235_v18 }
 0x35a   : > { %v13188_v12 = vpop.permute.xlu0 %3706 }
 0x35e   : > { %v13190_v16 = vpop.permute.xlu0 %3710 }
 0x362   : > { %v13192_v59 = vpop.permute.xlu0 %3712 }
 0x363   : > { %879 = vxpose.xlu0.b32.start [1/4] (short) %v863_v31, 128 }
 0x366   : > { %v13197_v60 = vpop.permute.xlu0 %4162 }
 0x367   : > { %880 = vxpose.xlu0.b32.cont [2/4] (short) %v12964_v15, 128 }
 0x36a   : > { %v13200_v20 = vpop.permute.xlu0 %4164 }
 0x36b   : > { %v13205_v25 = vsel %vm862_vm4, %v13197_v60, %v13200_v20  ;;  %881 = vxpose.xlu0.b32.cont [3/4] (short) %v12973_v27, 128 }
 0x36c   : > { %v4171_v18 = vmul.f32 %v13205_v25, %v12864_v13  ;;  %v427_v13 = vsel %vm423_vm1, %v12889_v22, %v12904_v32 }
 0x36e   : > { %4201 = vrot.lane.b32.xlu1 %v4171_v18, %s12475_s26  ;;  %v3717_v58 = vpop.permute.xlu0 %3716  ;;  %v1338_v18 = vsel %vm1335_vm5, %v12987_v40, %v12989_v41 }
 0x36f   : > { %882 = vxpose.xlu0.b32.end [4/4] (short) %v12976_v33, 128  ;;  %v429_v33 = vsel %vm423_vm1, %v12899_v30, %v12953_v56 }
 0x372   : > { %v13212_v0 = vpop.permute.xlu0 %3718 }
 0x373   : > { %15447 = vst [vmem:[#allocation22_spill] sm:$0xff] %v13212_v0  ;;  %v13216_v15 = vsel %vm3728_vm8, %v3717_v58, %v13212_v0 }
 0x376   : > { %v3723_v9 = vpop.permute.xlu0 %3722 }
 0x37a   : > { %v13218_v31 = vpop.permute.xlu0 %3724 }
 0x37b   : > { %15448 = vst [vmem:[#allocation23_spill] sm:$0xff] %v13218_v31  ;;  %v13222_v27 = vsel %vm3728_vm8, %v3723_v9, %v13218_v31  ;;  %v378_v9 = vld [vmem:[#allocation7] sm:$0xff] }
 0x37c   : > { %15449 = vst [vmem:[#allocation24_spill] sm:$0xff] %v13222_v27  ;;  %v1791_v27 = vld [vmem:[#allocation7 + $0x60] sm:$0xff] }
 0x397   : > { %472 = vxpose.xlu1.b32.start [1/4] (short) %v12907_v34, 128 }
 0x39b   : > { %473 = vxpose.xlu1.b32.cont [2/4] (short) %v427_v13, 128  ;;  %v379_v13 = vld [vmem:[#allocation7 + $0x8] sm:$0xff] }
 0x39f   : > { %474 = vxpose.xlu1.b32.cont [3/4] (short) %v429_v33, 128  ;;  %v11380_v33 = vpack.c.bf16 %v379_v13, %v378_v9  ;;  %v1295_v9 = vld [vmem:[#allocation7 + $0x40] sm:$0xff]  ;;  %v1296_v13 = vld [vmem:[#allocation7 + $0x48] sm:$0xff] }
 0x3a0   : > { %1352 = vxpose.xlu0.b32.start [1/4] (short) %v12970_v23, 128 }
 0x3a1   : > { %11381 = vmatprep.subr.bf16.mxu0 %v11380_v33 }
 0x3a3   : > { %475 = vxpose.xlu1.b32.end [4/4] (short) %v12914_v37, 128 }
 0x3a4   : > { %1353 = vxpose.xlu0.b32.cont [2/4] (short) %v1338_v18, 128 }
 0x3a6   : > { %v456_v34 = vpop.trf.xlu0 }
 0x3a7   : > { %10300 = vmatprep.mubr.msk.f32.mxu0 %vm504_vm9, %v456_v34  ;;  %v380_v34 = vld [vmem:[#allocation7 + $0x10] sm:$0xff] }
 0x3a8   : > { %1354 = vxpose.xlu0.b32.cont [3/4] (short) %v12999_v49, 128 }
 0x3aa   : > { %v457_v22 = vpop.trf.xlu0 }
 0x3ab   : > { %10301 = vmatmul.mubr.msk.f32.vlgmr.msra.gmra.mrb[0].mxu0 %vm504_vm9, %v457_v22  ;;  %v381_v22 = vld [vmem:[#allocation7 + $0x18] sm:$0xff] }
 0x3ac   : > { %1355 = vxpose.xlu0.b32.end [4/4] (short) %v13012_v55, 128  ;;  %11383 = vmatpush3.bf16.msra.mxu0 %v11380_v33  ;;  %v13286_v33 = vpack.c.bf16 %v1296_v13, %v1295_v9 }
 0x3ae   : > { %v458_v30 = vpop.trf.xlu0 }
 0x3af   : > { %10303 = vmatprep.mubr.msk.f32.mxu0 %vm504_vm9, %v458_v30  ;;  %v11384_v30 = vpack.c.bf16 %v381_v22, %v380_v34  ;;  %v1339_v22 = vsel %vm1335_vm5, %v12989_v41, %v13030_v2 }
 0x3b1   : > { %11385 = vmatprep.subr.bf16.mxu0 %v11384_v30 }
 0x3b2   : > { %v459_v32 = vpop.trf.xlu0  ;;  %11387 = vmatpush3.bf16.msra.mxu0 %v11384_v30 }
 0x3b3   : > { %10304 = vmatmul.mubr.msk.f32.gmra.mrb[2].mxu0 %vm504_vm9, %v459_v32  ;;  %11389 = vmatprep.subr.bf16.mxu0 %v13286_v33 }
 0x3b6   : > { %v460_v37 = vpop.trf.xlu0 }
 0x3b7   : > { %10306 = vmatprep.mubr.msk.f32.mxu0 %vm504_vm9, %v460_v37 }
 0x3ba   : > { %v461_v56 = vpop.trf.xlu0 }
 0x3bb   : > { %10307 = vmatmul.mubr.msk.f32.gmra.mrb[4].mxu0 %vm504_vm9, %v461_v56 }
 0x3be   : > { %v462_v23 = vpop.trf.xlu0 }
 0x3bf   : > { %10309 = vmatprep.mubr.msk.f32.mxu0 %vm504_vm9, %v462_v23 }
 0x3c2   : > { %v463_v40 = vpop.trf.xlu0 }
 0x3c3   : > { %10310 = vmatmul.mubr.msk.f32.gmra.mrb[6].mxu0 %vm504_vm9, %v463_v40 }
 0x3c6   : > { %v464_v49 = vpop.trf.xlu0 }
 0x3c7   : > { %10312 = vmatprep.mubr.msk.f32.mxu0 %vm504_vm9, %v464_v49 }
 0x3ca   : > { %v465_v55 = vpop.trf.xlu0 }
 0x3cb   : > { %10313 = vmatmul.mubr.msk.f32.gmra.mrb[8].mxu0 %vm504_vm9, %v465_v55 }
 0x3ce   : > { %v466_v58 = vpop.trf.xlu0 }
 0x3cf   : > { %10315 = vmatprep.mubr.msk.f32.mxu0 %vm504_vm9, %v466_v58 }
 0x3d2   : > { %v467_v18 = vpop.trf.xlu0 }
 0x3d3   : > { %10316 = vmatmul.mubr.msk.f32.gmra.mrb[10].mxu0 %vm504_vm9, %v467_v18 }
 0x3d4   : > { %911 = vxpose.xlu1.b32.start [1/4] (short) %v12961_v3, 128 }
 0x3d6   : > { %v468_v32 = vpop.trf.xlu0 }
 0x3d7   : > { %10318 = vmatprep.mubr.msk.f32.mxu0 %vm504_vm9, %v468_v32 }
 0x3d8   : > { %912 = vxpose.xlu1.b32.cont [2/4] (short) %v12967_v21, 128 }
 0x3da   : > { %v469_v37 = vpop.trf.xlu0 }
 0x3db   : > { %10319 = vmatmul.mubr.msk.f32.gmra.mrb[12].mxu0 %vm504_vm9, %v469_v37 }
 0x3dc   : > { %913 = vxpose.xlu1.b32.cont [3/4] (short) %v12985_v39, 128 }
 0x3de   : > { %v470_v56 = vpop.trf.xlu0  ;;  %1848 = vxpose.xlu0.b32.start [1/4] (short) %v13033_v28, 128 }
 0x3df   : > { %10321 = vmatprep.mubr.msk.f32.mxu0 %vm504_vm9, %v470_v56  ;;  %v1343_v56 = vsel %vm1335_vm5, %v13006_v53, %v13028_v63 }
 0x3e0   : > { %914 = vxpose.xlu1.b32.end [4/4] (short) %v12979_v35, 128 }
 0x3e2   : > { %1849 = vxpose.xlu0.b32.cont [2/4] (short) %v13039_v43, 128  ;;  %v471_v3 = vpop.trf.xlu0 }
 0x3e3   : > { %10322 = vmatmul.mubr.msk.f32.gmra.mrb[14].mxu0 %vm504_vm9, %v471_v3 }
 0x3e6   : > { %1850 = vxpose.xlu0.b32.cont [3/4] (short) %v13036_v42, 128  ;;  %v13261_v21 = vpop.trf.xlu0 }
 0x3ea   : > { %1851 = vxpose.xlu0.b32.end [4/4] (short) %v13045_v50, 128  ;;  %v13264_v23 = vpop.trf.xlu0  ;;  %v13284_v50 = vpop.permute.xlu1 %12229 }
 0x3eb   : > { %15450 = vst [vmem:[#allocation25_spill] sm:$0xff] %v13284_v50  ;;  %v1297_v50 = vld [vmem:[#allocation7 + $0x50] sm:$0xff] }
 0x3ee   : > { %v13266_v39 = vpop.trf.xlu0  ;;  %v13292_v34 = vpop.permute.xlu1 %4201 }
 0x3ef   : > { %15451 = vst [vmem:[#allocation26_spill] sm:$0xff] %v13292_v34  ;;  %v1298_v34 = vld [vmem:[#allocation7 + $0x58] sm:$0xff] }
 0x3f2   : > { %v13268_v28 = vpop.trf.xlu0 }
 0x3f6   : > { %v13270_v40 = vpop.trf.xlu0 }
 0x3fa   : > { %v13272_v35 = vpop.trf.xlu0 }
 0x3fe   : > { %v13274_v43 = vpop.trf.xlu0 }
 0x402   : > { %v13276_v49 = vpop.trf.xlu0 }
 0x406   : > { %v13278_v55 = vpop.trf.xlu0 }
 0x40a   : > { %v13280_v42 = vpop.trf.xlu0 }
 0x40e   : > { %v13282_v58 = vpop.trf.xlu0 }
 0x411   : > { %1384 = vxpose.xlu1.b32.start [1/4] (short) %v13019_v61, 128 }
 0x412   : > { %v13289_v18 = vpop.trf.xlu0 }
 0x415   : > { %1385 = vxpose.xlu1.b32.cont [2/4] (short) %v1339_v22, 128 }
 0x416   : > { %v13297_v30 = vpop.trf.xlu0 }
 0x417   : > { %v488_v32 = vpop.trf.xlu1 }
 0x418   : > { %10324 = vmatprep.mubr.msk.f32.mxu0 %vm504_vm9, %v488_v32 }
 0x419   : > { %1386 = vxpose.xlu1.b32.cont [3/4] (short) %v12982_v36, 128 }
 0x41a   : > { %v13301_v37 = vpop.trf.xlu0 }
 0x41b   : > { %v489_v61 = vpop.trf.xlu1 }
 0x41c   : > { %10325 = vmatmul.mubr.msk.f32.gmra.mrb[16].mxu0 %vm504_vm9, %v489_v61 }
 0x41d   : > { %1387 = vxpose.xlu1.b32.end [4/4] (short) %v1343_v56, 128 }
 0x41e   : > { %v13307_v3 = vpop.trf.xlu0  ;;  %2270 = vxpose.xlu0.b32.start [1/4] (short) %v12840_v6, 128 }
 0x41f   : > { %v490_v41 = vpop.trf.xlu1 }
 0x420   : > { %10327 = vmatprep.mubr.msk.f32.mxu0 %vm504_vm9, %v490_v41 }
 0x422   : > { %v13311_v2 = vpop.trf.xlu0  ;;  %2271 = vxpose.xlu0.b32.cont [2/4] (short) %v12837_v5, 128 }
 0x423   : > { %v491_v36 = vpop.trf.xlu1 }
 0x424   : > { %10328 = vmatmul.mubr.msk.f32.gmra.mrb[18].mxu0 %vm504_vm9, %v491_v36 }
 0x426   : > { %v13315_v9 = vpop.trf.xlu0  ;;  %2272 = vxpose.xlu0.b32.cont [3/4] (short) %v12856_v11, 128 }
 0x427   : > { %v492_v53 = vpop.trf.xlu1 }
 0x428   : > { %10330 = vmatprep.mubr.msk.f32.mxu0 %vm504_vm9, %v492_v53 }
 0x42a   : > { %v13319_v63 = vpop.trf.xlu0  ;;  %2273 = vxpose.xlu0.b32.end [4/4] (short) %v12853_v10, 128 }
 0x42b   : > { %v493_v6 = vpop.trf.xlu1 }
 0x42c   : > { %10331 = vmatmul.mubr.msk.f32.gmra.mrb[20].mxu0 %vm504_vm9, %v493_v6 }
 0x42e   : > { %v13323_v13 = vpop.trf.xlu0 }
 0x42f   : > { %v494_v5 = vpop.trf.xlu1 }
 0x430   : > { %10333 = vmatprep.mubr.msk.f32.mxu0 %vm504_vm9, %v494_v5 }
 0x432   : > { %v13326_v22 = vpop.trf.xlu0 }
 0x433   : > { %v495_v32 = vpop.trf.xlu1 }
 0x434   : > { %10334 = vmatmul.mubr.msk.f32.gmra.mrb[22].mxu0 %vm504_vm9, %v495_v32 }
 0x436   : > { %v13329_v11 = vpop.trf.xlu0 }
 0x437   : > { %v496_v61 = vpop.trf.xlu1 }
 0x438   : > { %10336 = vmatprep.mubr.msk.f32.mxu0 %vm504_vm9, %v496_v61 }
 0x43a   : > { %v13332_v56 = vpop.trf.xlu0 }
 0x43b   : > { %v497_v10 = vpop.trf.xlu1 }
 0x43c   : > { %10337 = vmatmul.mubr.msk.f32.gmra.mrb[24].mxu0 %vm504_vm9, %v497_v10 }
 0x43e   : > { %v13335_v41 = vpop.trf.xlu0 }
 0x43f   : > { %v498_v36 = vpop.trf.xlu1 }
 0x440   : > { %10339 = vmatprep.mubr.msk.f32.mxu0 %vm504_vm9, %v498_v36 }
 0x442   : > { %v13338_v53 = vpop.trf.xlu0 }
 0x443   : > { %v499_v6 = vpop.trf.xlu1 }
 0x444   : > { %10340 = vmatmul.mubr.msk.f32.gmra.mrb[26].mxu0 %vm504_vm9, %v499_v6 }
 0x446   : > { %v13341_v5 = vpop.trf.xlu0 }
 0x447   : > { %v500_v32 = vpop.trf.xlu1 }
 0x448   : > { %10342 = vmatprep.mubr.msk.f32.mxu0 %vm504_vm9, %v500_v32  ;;  %v11392_v32 = vpack.c.bf16 %v1298_v34, %v1297_v50 }
 0x44a   : > { %v13344_v61 = vpop.trf.xlu0 }
 0x44b   : > { %v501_v31 = vpop.trf.xlu1 }
 0x44c   : > { %10343 = vmatmul.mubr.msk.f32.gmra.mrb[28].mxu0 %vm504_vm9, %v501_v31 }
 0x44e   : > { %v13347_v10 = vpop.trf.xlu0 }
 0x44f   : > { %v502_v0 = vpop.trf.xlu1  ;;  %1880 = vxpose.xlu1.b32.start [1/4] (short) %v13051_v57, 128 }
 0x450   : > { %10345 = vmatprep.mubr.msk.f32.mxu0 %vm504_vm9, %v502_v0  ;;  %v1792_v0 = vld [vmem:[#allocation7 + $0x68] sm:$0xff] }
 0x452   : > { %v13351_v36 = vpop.trf.xlu0 }
 0x453   : > { %1881 = vxpose.xlu1.b32.cont [2/4] (short) %v13056_v62, 128  ;;  %v503_v6 = vpop.trf.xlu1 }
 0x454   : > { %10346 = vmatmul.mubr.msk.f32.gmra.mrb[30].mxu0 %vm504_vm9, %v503_v6 }
 0x455   : > { %10356 = vmatprep.mubr.msk.f32.mxu0 %vm504_vm9, %v13261_v21  ;;  %v13367_v21 = vpack.c.bf16 %v1792_v0, %v1791_v27  ;;  %v12235_v0 = vld [vmem:[%s12744_s17 + $0x8] sm:$0xff] }
 0x456   : > { %v13357_v31 = vpop.trf.xlu0 }
 0x457   : > { %1882 = vxpose.xlu1.b32.cont [3/4] (short) %v13042_v46, 128  ;;  %v927_v57 = vpop.trf.xlu1  ;;  %v2760_v46 = vsel %vm1773_vm6, %v13081_v47, %v13085_v52 }
 0x458   : > { %10357 = vmatmul.mubr.msk.f32.vlgmr.msra.gmra.mrb[0].mxu0 %vm504_vm9, %v13264_v23 }
 0x459   : > { %10359 = vmatprep.mubr.msk.f32.mxu0 %vm504_vm9, %v13266_v39  ;;  %11391 = vmatpush3.bf16.msra.mxu0 %v13286_v33 }
 0x45a   : > { %v13365_v62 = vpop.trf.xlu0  ;;  %11393 = vmatprep.subr.bf16.mxu0 %v11392_v32 }
 0x45b   : > { %1883 = vxpose.xlu1.b32.end [4/4] (short) %v13048_v51, 128  ;;  %v928_v50 = vpop.trf.xlu1 }
 0x45c   : > { %10360 = vmatmul.mubr.msk.f32.gmra.mrb[2].mxu0 %vm504_vm9, %v13268_v28 }
 0x45d   : > { %10362 = vmatprep.mubr.msk.f32.mxu0 %vm504_vm9, %v13270_v40  ;;  %11395 = vmatpush3.bf16.msra.mxu0 %v11392_v32 }
 0x45e   : > { %v13377_v23 = vpop.trf.xlu0  ;;  %2776 = vxpose.xlu0.b32.start [1/4] (short) %v2760_v46, 128  ;;  %11397 = vmatprep.subr.bf16.mxu0 %v13367_v21 }
 0x45f   : > { %v929_v27 = vpop.trf.xlu1 }
 0x460   : > { %10363 = vmatmul.mubr.msk.f32.gmra.mrb[4].mxu0 %vm504_vm9, %v13272_v35 }
 0x461   : > { %10365 = vmatprep.mubr.msk.f32.mxu0 %vm504_vm9, %v13274_v43 }
 0x462   : > { %2777 = vxpose.xlu0.b32.cont [2/4] (short) %v13090_v54, 128  ;;  %v13385_v51 = vpop.trf.xlu0 }
 0x463   : > { %v930_v39 = vpop.trf.xlu1 }
 0x464   : > { %10366 = vmatmul.mubr.msk.f32.gmra.mrb[6].mxu0 %vm504_vm9, %v13276_v49 }
 0x465   : > { %10368 = vmatprep.mubr.msk.f32.mxu0 %vm504_vm9, %v13278_v55 }
 0x466   : > { %2778 = vxpose.xlu0.b32.cont [3/4] (short) %v13105_v4, 128  ;;  %v13392_v47 = vpop.trf.xlu0 }
 0x467   : > { %v931_v28 = vpop.trf.xlu1 }
 0x468   : > { %10369 = vmatmul.mubr.msk.f32.gmra.mrb[8].mxu0 %vm504_vm9, %v13280_v42 }
 0x469   : > { %10371 = vmatprep.mubr.msk.f32.mxu0 %vm504_vm9, %v13282_v58 }
 0x46a   : > { %2779 = vxpose.xlu0.b32.end [4/4] (short) %v13120_v44, 128  ;;  %v13399_v54 = vpop.trf.xlu0 }
 0x46b   : > { %v932_v40 = vpop.trf.xlu1 }
 0x46c   : > { %10372 = vmatmul.mubr.msk.f32.gmra.mrb[10].mxu0 %vm504_vm9, %v13289_v18 }
 0x46d   : > { %10374 = vmatprep.mubr.msk.f32.mxu0 %vm504_vm9, %v13297_v30 }
 0x46e   : > { %v13405_v4 = vpop.trf.xlu0 }
 0x46f   : > { %v933_v35 = vpop.trf.xlu1 }
 0x470   : > { %10375 = vmatmul.mubr.msk.f32.gmra.mrb[12].mxu0 %vm504_vm9, %v13301_v37 }
 0x471   : > { %10377 = vmatprep.mubr.msk.f32.mxu0 %vm504_vm9, %v13307_v3 }
 0x472   : > { %v13411_v43 = vpop.trf.xlu0 }
 0x473   : > { %v934_v44 = vpop.trf.xlu1 }
 0x474   : > { %10378 = vmatmul.mubr.msk.f32.gmra.mrb[14].mxu0 %vm504_vm9, %v13311_v2 }
 0x475   : > { %10380 = vmatprep.mubr.msk.f32.mxu0 %vm504_vm9, %v927_v57 }
 0x476   : > { %v13416_v49 = vpop.trf.xlu0 }
 0x477   : > { %v935_v55 = vpop.trf.xlu1 }
 0x478   : > { %10381 = vmatmul.mubr.msk.f32.gmra.mrb[16].mxu0 %vm504_vm9, %v928_v50 }
 0x479   : > { %10383 = vmatprep.mubr.msk.f32.mxu0 %vm504_vm9, %v929_v27  ;;  %v13448_v27 = vld [vmem:[%s12744_s17 + $0x18] sm:$0xff] }
 0x47a   : > { %v13420_v42 = vpop.trf.xlu0 }
 0x47b   : > { %v936_v58 = vpop.trf.xlu1 }
 0x47c   : > { %10384 = vmatmul.mubr.msk.f32.gmra.mrb[18].mxu0 %vm504_vm9, %v930_v39  ;;  %v1793_v39 = vld [vmem:[#allocation7 + $0x70] sm:$0xff] }
 0x47d   : > { %10386 = vmatprep.mubr.msk.f32.mxu0 %vm504_vm9, %v931_v28  ;;  %v1794_v28 = vld [vmem:[#allocation7 + $0x78] sm:$0xff] }
 0x47e   : > { %v13424_v33 = vpop.trf.xlu0 }
 0x47f   : > { %v937_v18 = vpop.trf.xlu1 }
 0x480   : > { %10387 = vmatmul.mubr.msk.f32.gmra.mrb[20].mxu0 %vm504_vm9, %v932_v40 }
 0x481   : > { %10389 = vmatprep.mubr.msk.f32.mxu0 %vm504_vm9, %v933_v35  ;;  %v11400_v35 = vpack.c.bf16 %v1794_v28, %v1793_v39  ;;  %v2761_v28 = vsel %vm1773_vm6, %v13085_v52, %v13158_v24 }
 0x482   : > { %v13428_v34 = vpop.trf.xlu0 }
 0x483   : > { %v938_v30 = vpop.trf.xlu1 }
 0x484   : > { %10390 = vmatmul.mubr.msk.f32.gmra.mrb[22].mxu0 %vm504_vm9, %v934_v44 }
 0x485   : > { %10392 = vmatprep.mubr.msk.f32.mxu0 %vm504_vm9, %v935_v55  ;;  %v13457_v55 = vld [vmem:[%s12744_s17 + $0x28] sm:$0xff] }
 0x486   : > { %v13432_v37 = vpop.trf.xlu0 }
 0x487   : > { %v939_v3 = vpop.trf.xlu1 }
 0x488   : > { %10393 = vmatmul.mubr.msk.f32.gmra.mrb[24].mxu0 %vm504_vm9, %v936_v58  ;;  %v2266_v58 = vld [vmem:[#allocation7 + $0x80] sm:$0xff] }
 0x489   : > { %10395 = vmatprep.mubr.msk.f32.mxu0 %vm504_vm9, %v937_v18  ;;  %v2267_v18 = vld [vmem:[#allocation7 + $0x88] sm:$0xff] }
 0x48a   : > { %v13436_v2 = vpop.trf.xlu0 }
 0x48b   : > { %v940_v6 = vpop.trf.xlu1 }
 0x48c   : > { %10396 = vmatmul.mubr.msk.f32.gmra.mrb[26].mxu0 %vm504_vm9, %v938_v30 }
 0x48d   : > { %10398 = vmatprep.mubr.msk.f32.mxu0 %vm504_vm9, %v939_v3 }
 0x48e   : > { %v13440_v32 = vpop.trf.xlu0 }
 0x48f   : > { %v941_v57 = vpop.trf.xlu1  ;;  %2302 = vxpose.xlu1.b32.start [1/4] (short) %v12235_v0, 128 }
 0x490   : > { %10399 = vmatmul.mubr.msk.f32.gmra.mrb[28].mxu0 %vm504_vm9, %v940_v6  ;;  %v13470_v6 = vld [vmem:[%s12744_s17 + $0x38] sm:$0xff] }
 0x491   : > { %10401 = vmatprep.mubr.msk.f32.mxu0 %vm504_vm9, %v941_v57 }
 0x492   : > { %v13445_v50 = vpop.trf.xlu0 }
 0x493   : > { %v942_v46 = vpop.trf.xlu1  ;;  %2303 = vxpose.xlu1.b32.cont [2/4] (short) %v13448_v27, 128 }
 0x494   : > { %10402 = vmatmul.mubr.msk.f32.gmra.mrb[30].mxu0 %vm504_vm9, %v942_v46 }
 0x495   : > { %10412 = vmatprep.mubr.msk.f32.mxu0 %vm504_vm9, %v13315_v9  ;;  %v13467_v9 = vpack.c.bf16 %v2267_v18, %v2266_v58  ;;  %v15452_v58 = vld [vmem:[#allocation19_spill] sm:$0xff]  ;;  %v15453_v18 = vld [vmem:[#allocation18_spill] sm:$0xff] }
 0x496   : > { %v13454_v40 = vpop.trf.xlu0 }
 0x497   : > { %v1400_v44 = vpop.trf.xlu1  ;;  %2304 = vxpose.xlu1.b32.cont [3/4] (short) %v13457_v55, 128 }
 0x498   : > { %10413 = vmatmul.mubr.msk.f32.vlgmr.msra.gmra.mrb[0].mxu0 %vm504_vm9, %v13319_v63 }
 0x499   : > { %10415 = vmatprep.mubr.msk.f32.mxu0 %vm504_vm9, %v13323_v13  ;;  %11399 = vmatpush3.bf16.msra.mxu0 %v13367_v21 }
 0x49a   : > { %v13465_v30 = vpop.trf.xlu0  ;;  %11401 = vmatprep.subr.bf16.mxu0 %v11400_v35 }
 0x49b   : > { %v1401_v3 = vpop.trf.xlu1  ;;  %2305 = vxpose.xlu1.b32.end [4/4] (short) %v13470_v6, 128 }
 0x49c   : > { %10416 = vmatmul.mubr.msk.f32.gmra.mrb[2].mxu0 %vm504_vm9, %v13326_v22 }
 0x49d   : > { %10418 = vmatprep.mubr.msk.f32.mxu0 %vm504_vm9, %v13329_v11  ;;  %11403 = vmatpush3.bf16.msra.mxu0 %v11400_v35 }
 0x49e   : > { %v13477_v63 = vpop.trf.xlu0  ;;  %3302 = vxpose.xlu0.b32.start [1/4] (short) %v13186_v19, 128  ;;  %11405 = vmatprep.subr.bf16.mxu0 %v13467_v9 }
 0x49f   : > { %v1402_v13 = vpop.trf.xlu1 }
 0x4a0   : > { %10419 = vmatmul.mubr.msk.f32.gmra.mrb[4].mxu0 %vm504_vm9, %v13332_v56 }
 0x4a1   : > { %10421 = vmatprep.mubr.msk.f32.mxu0 %vm504_vm9, %v13335_v41 }
 0x4a2   : > { %3303 = vxpose.xlu0.b32.cont [2/4] (short) %v13169_v7, 128  ;;  %v13486_v22 = vpop.trf.xlu0 }
 0x4a3   : > { %v1403_v21 = vpop.trf.xlu1 }
 0x4a4   : > { %10422 = vmatmul.mubr.msk.f32.gmra.mrb[6].mxu0 %vm504_vm9, %v13338_v53 }
 0x4a5   : > { %10424 = vmatprep.mubr.msk.f32.mxu0 %vm504_vm9, %v13341_v5 }
 0x4a6   : > { %3304 = vxpose.xlu0.b32.cont [3/4] (short) %v13175_v8, 128  ;;  %v13493_v19 = vpop.trf.xlu0 }
 0x4a7   : > { %v1404_v11 = vpop.trf.xlu1 }
 0x4a8   : > { %10425 = vmatmul.mubr.msk.f32.gmra.mrb[8].mxu0 %vm504_vm9, %v13344_v61 }
 0x4a9   : > { %10427 = vmatprep.mubr.msk.f32.mxu0 %vm504_vm9, %v13347_v10 }
 0x4aa   : > { %3305 = vxpose.xlu0.b32.end [4/4] (short) %v13178_v26, 128  ;;  %v13500_v7 = vpop.trf.xlu0 }
 0x4ab   : > { %v1405_v56 = vpop.trf.xlu1 }
 0x4ac   : > { %10428 = vmatmul.mubr.msk.f32.gmra.mrb[10].mxu0 %vm504_vm9, %v13351_v36 }
 0x4ad   : > { %10430 = vmatprep.mubr.msk.f32.mxu0 %vm504_vm9, %v13357_v31 }
 0x4ae   : > { %v13506_v8 = vpop.trf.xlu0 }
 0x4af   : > { %v1406_v41 = vpop.trf.xlu1 }
 0x4b0   : > { %10431 = vmatmul.mubr.msk.f32.gmra.mrb[12].mxu0 %vm504_vm9, %v13365_v62 }
 0x4b1   : > { %10433 = vmatprep.mubr.msk.f32.mxu0 %vm504_vm9, %v13377_v23 }
 0x4b2   : > { %v13512_v53 = vpop.trf.xlu0 }
 0x4b3   : > { %v1407_v26 = vpop.trf.xlu1 }
 0x4b4   : > { %10434 = vmatmul.mubr.msk.f32.gmra.mrb[14].mxu0 %vm504_vm9, %v13385_v51 }
 0x4b5   : > { %10436 = vmatprep.mubr.msk.f32.mxu0 %vm504_vm9, %v1400_v44 }
 0x4b6   : > { %v13517_v5 = vpop.trf.xlu0 }
 0x4b7   : > { %v1408_v61 = vpop.trf.xlu1 }
 0x4b8   : > { %10437 = vmatmul.mubr.msk.f32.gmra.mrb[16].mxu0 %vm504_vm9, %v1401_v3  ;;  %v2763_v3 = vsel %vm1773_vm6, %v15453_v18, %v15452_v58  ;;  %v12240_v18 = vld [vmem:[%s12744_s17 + $0x10] sm:$0xff] }
 0x4b9   : > { %10439 = vmatprep.mubr.msk.f32.mxu0 %vm504_vm9, %v1402_v13 }
 0x4ba   : > { %v13521_v10 = vpop.trf.xlu0 }
 0x4bb   : > { %v1409_v36 = vpop.trf.xlu1 }
 0x4bc   : > { %10440 = vmatmul.mubr.msk.f32.gmra.mrb[18].mxu0 %vm504_vm9, %v1403_v21 }
 0x4bd   : > { %10442 = vmatprep.mubr.msk.f32.mxu0 %vm504_vm9, %v1404_v11  ;;  %v2268_v11 = vld [vmem:[#allocation7 + $0x90] sm:$0xff] }
 0x4be   : > { %v13525_v31 = vpop.trf.xlu0 }
 0x4bf   : > { %v1410_v62 = vpop.trf.xlu1 }
 0x4c0   : > { %10443 = vmatmul.mubr.msk.f32.gmra.mrb[20].mxu0 %vm504_vm9, %v1405_v56  ;;  %v2269_v56 = vld [vmem:[#allocation7 + $0x98] sm:$0xff] }
 0x4c1   : > { %10445 = vmatprep.mubr.msk.f32.mxu0 %vm504_vm9, %v1406_v41  ;;  %v11408_v24 = vpack.c.bf16 %v2269_v56, %v2268_v11  ;;  %v4174_v11 = vmul.f32 %v13448_v27, %v13205_v25 }
 0x4c2   : > { %v13529_v23 = vpop.trf.xlu0 }
 0x4c3   : > { %v1411_v51 = vpop.trf.xlu1 }
 0x4c4   : > { %10446 = vmatmul.mubr.msk.f32.gmra.mrb[22].mxu0 %vm504_vm9, %v1407_v26  ;;  %v2720_v26 = vld [vmem:[#allocation7 + $0xa0] sm:$0xff] }
 0x4c5   : > { %10448 = vmatprep.mubr.msk.f32.mxu0 %vm504_vm9, %v1408_v61  ;;  %v2721_v61 = vld [vmem:[#allocation7 + $0xa8] sm:$0xff] }
 0x4c6   : > { %v13533_v57 = vpop.trf.xlu0 }
 0x4c7   : > { %v1412_v0 = vpop.trf.xlu1 }
 0x4c8   : > { %10449 = vmatmul.mubr.msk.f32.gmra.mrb[24].mxu0 %vm504_vm9, %v1409_v36 }
 0x4c9   : > { %10451 = vmatprep.mubr.msk.f32.mxu0 %vm504_vm9, %v1410_v62  ;;  %v13569_v62 = vpack.c.bf16 %v2721_v61, %v2720_v26  ;;  %v12241_v26 = vld [vmem:[%s12744_s17 + $0x20] sm:$0xff] }
 0x4ca   : > { %v13537_v46 = vpop.trf.xlu0  ;;  %v4176_v61 = vmul.f32 %v12241_v26, %v13197_v60 }
 0x4cb   : > { %v1413_v39 = vpop.trf.xlu1 }
 0x4cc   : > { %10452 = vmatmul.mubr.msk.f32.gmra.mrb[26].mxu0 %vm504_vm9, %v1411_v51 }
 0x4cd   : > { %10454 = vmatprep.mubr.msk.f32.mxu0 %vm504_vm9, %v1412_v0 }
 0x4ce   : > { %v13544_v35 = vpop.trf.xlu0 }
 0x4cf   : > { %v1414_v44 = vpop.trf.xlu1  ;;  %2808 = vxpose.xlu1.b32.start [1/4] (short) %v2761_v28, 128 }
 0x4d0   : > { %10455 = vmatmul.mubr.msk.f32.gmra.mrb[28].mxu0 %vm504_vm9, %v1413_v39  ;;  %v12239_v39 = vld [vmem:[%s12744_s17] sm:$0xff] }
 0x4d1   : > { %10457 = vmatprep.mubr.msk.f32.mxu0 %vm504_vm9, %v1414_v44  ;;  %v4170_v28 = vmul.f32 %v12239_v39, %v13197_v60 }
 0x4d2   : > { %v13551_v13 = vpop.trf.xlu0 }
 0x4d3   : > { %2809 = vxpose.xlu1.b32.cont [2/4] (short) %v2763_v3, 128  ;;  %v1415_v21 = vpop.trf.xlu1 }
 0x4d4   : > { %10458 = vmatmul.mubr.msk.f32.gmra.mrb[30].mxu0 %vm504_vm9, %v1415_v21 }
 0x4d5   : > { %10468 = vmatprep.mubr.msk.f32.mxu0 %vm504_vm9, %v13392_v47  ;;  %v2767_v47 = vsel %vm1773_vm6, %v13115_v45, %v13160_v38 }
 0x4d6   : > { %v13556_v52 = vpop.trf.xlu0 }
 0x4d7   : > { %2810 = vxpose.xlu1.b32.cont [3/4] (short) %v13108_v1, 128  ;;  %v1896_v41 = vpop.trf.xlu1 }
 0x4d8   : > { %10469 = vmatmul.mubr.msk.f32.vlgmr.msra.gmra.mrb[0].mxu0 %vm504_vm9, %v13399_v54 }
 0x4d9   : > { %10471 = vmatprep.mubr.msk.f32.mxu0 %vm504_vm9, %v13405_v4  ;;  %11407 = vmatpush3.bf16.msra.mxu0 %v13467_v9 }
 0x4da   : > { %v13567_v36 = vpop.trf.xlu0  ;;  %11409 = vmatprep.subr.bf16.mxu0 %v11408_v24 }
 0x4db   : > { %2811 = vxpose.xlu1.b32.end [4/4] (short) %v2767_v47, 128  ;;  %v1897_v1 = vpop.trf.xlu1 }
 0x4dc   : > { %10472 = vmatmul.mubr.msk.f32.gmra.mrb[2].mxu0 %vm504_vm9, %v13411_v43 }
 0x4dd   : > { %10474 = vmatprep.mubr.msk.f32.mxu0 %vm504_vm9, %v13416_v49  ;;  %11411 = vmatpush3.bf16.msra.mxu0 %v11408_v24 }
 0x4de   : > { %v13575_v54 = vpop.trf.xlu0  ;;  %11413 = vmatprep.subr.bf16.mxu0 %v13569_v62 }
 0x4df   : > { %v1898_v4 = vpop.trf.xlu1 }
 0x4e0   : > { %10475 = vmatmul.mubr.msk.f32.gmra.mrb[4].mxu0 %vm504_vm9, %v13420_v42 }
 0x4e1   : > { %10477 = vmatprep.mubr.msk.f32.mxu0 %vm504_vm9, %v13424_v33 }
 0x4e2   : > { %v13582_v45 = vpop.trf.xlu0 }
 0x4e3   : > { %v1899_v38 = vpop.trf.xlu1 }
 0x4e4   : > { %10478 = vmatmul.mubr.msk.f32.gmra.mrb[6].mxu0 %vm504_vm9, %v13428_v34 }
 0x4e5   : > { %10480 = vmatprep.mubr.msk.f32.mxu0 %vm504_vm9, %v13432_v37 }
 0x4e6   : > { %v13588_v43 = vpop.trf.xlu0 }
 0x4e7   : > { %v1900_v49 = vpop.trf.xlu1 }
 0x4e8   : > { %10481 = vmatmul.mubr.msk.f32.gmra.mrb[8].mxu0 %vm504_vm9, %v13436_v2 }
 0x4e9   : > { %10483 = vmatprep.mubr.msk.f32.mxu0 %vm504_vm9, %v13440_v32 }
 0x4ea   : > { %v13594_v42 = vpop.trf.xlu0 }
 0x4eb   : > { %v1901_v33 = vpop.trf.xlu1 }
 0x4ec   : > { %10484 = vmatmul.mubr.msk.f32.gmra.mrb[10].mxu0 %vm504_vm9, %v13445_v50 }
 0x4ed   : > { %10486 = vmatprep.mubr.msk.f32.mxu0 %vm504_vm9, %v13454_v40 }
 0x4ee   : > { %v13600_v34 = vpop.trf.xlu0 }
 0x4ef   : > { %v1902_v37 = vpop.trf.xlu1 }
 0x4f0   : > { %10487 = vmatmul.mubr.msk.f32.gmra.mrb[12].mxu0 %vm504_vm9, %v13465_v30 }
 0x4f1   : > { %10489 = vmatprep.mubr.msk.f32.mxu0 %vm504_vm9, %v13477_v63 }
 0x4f2   : > { %v13606_v2 = vpop.trf.xlu0 }
 0x4f3   : > { %v1903_v32 = vpop.trf.xlu1 }
 0x4f4   : > { %10490 = vmatmul.mubr.msk.f32.gmra.mrb[14].mxu0 %vm504_vm9, %v13486_v22 }
 0x4f5   : > { %10492 = vmatprep.mubr.msk.f32.mxu0 %vm504_vm9, %v1896_v41  ;;  %v15454_v41 = vld [vmem:[#allocation20_spill] sm:$0xff] }
 0x4f6   : > { %v13611_v50 = vpop.trf.xlu0 }
 0x4f7   : > { %v1904_v40 = vpop.trf.xlu1 }
 0x4f8   : > { %10493 = vmatmul.mubr.msk.f32.gmra.mrb[16].mxu0 %vm504_vm9, %v1897_v1  ;;  %v15455_v1 = vld [vmem:[#allocation21_spill] sm:$0xff] }
 0x4f9   : > { %10495 = vmatprep.mubr.msk.f32.mxu0 %vm504_vm9, %v1898_v4  ;;  %v2722_v4 = vld [vmem:[#allocation7 + $0xb0] sm:$0xff] }
 0x4fa   : > { %v13615_v30 = vpop.trf.xlu0 }
 0x4fb   : > { %v1905_v9 = vpop.trf.xlu1 }
 0x4fc   : > { %10496 = vmatmul.mubr.msk.f32.gmra.mrb[18].mxu0 %vm504_vm9, %v1899_v38  ;;  %v2723_v38 = vld [vmem:[#allocation7 + $0xb8] sm:$0xff] }
 0x4fd   : > { %10498 = vmatprep.mubr.msk.f32.mxu0 %vm504_vm9, %v1900_v49  ;;  %v4177_v49 = vmul.f32 %v13457_v55, %v13205_v25  ;;  %v12242_v55 = vld [vmem:[%s12744_s17 + $0x30] sm:$0xff]  ;;  %s15188_s17 = scalar_lea.hbm %s15243_s5, %s9607_s6 }
 0x4fe   : > { %v13619_v63 = vpop.trf.xlu0 }
 0x4ff   : > { %v1906_v22 = vpop.trf.xlu1 }
 0x500   : > { %10499 = vmatmul.mubr.msk.f32.gmra.mrb[20].mxu0 %vm504_vm9, %v1901_v33 }
 0x501   : > { %10501 = vmatprep.mubr.msk.f32.mxu0 %vm504_vm9, %v1902_v37  ;;  %v11416_v37 = vpack.c.bf16 %v2723_v38, %v2722_v4  ;;  %v3688_v38 = vld [vmem:[#allocation7 + $0xe0] sm:$0xff] }
 0x502   : > { %v13623_v51 = vpop.trf.xlu0 }
 0x503   : > { %v1907_v0 = vpop.trf.xlu1  ;;  %12224 = vrot.lane.b32.xlu0 %v15444_v48, %s12481_s9  ;;  %v4173_v48 = vmul.f32 %v12240_v18, %v13197_v60 }
 0x504   : > { %10502 = vmatmul.mubr.msk.f32.gmra.mrb[22].mxu0 %vm504_vm9, %v1903_v32 }
 0x505   : > { %10504 = vmatprep.mubr.msk.f32.mxu0 %vm504_vm9, %v1904_v40  ;;  %v3214_v40 = vld [vmem:[#allocation7 + $0xc0] sm:$0xff] }
 0x506   : > { %v13631_v44 = vpop.trf.xlu0 }
 0x507   : > { %v1908_v58 = vpop.trf.xlu1  ;;  %4199 = vrot.lane.b32.xlu0 %v4170_v28, %s12475_s26 }
 0x508   : > { %10505 = vmatmul.mubr.msk.f32.gmra.mrb[24].mxu0 %vm504_vm9, %v1905_v9  ;;  %v3215_v9 = vld [vmem:[#allocation7 + $0xc8] sm:$0xff] }
 0x509   : > { %10507 = vmatprep.mubr.msk.f32.mxu0 %vm504_vm9, %v1906_v22  ;;  %v4179_v22 = vmul.f32 %v12242_v55, %v13197_v60 }
 0x50a   : > { %v13638_v3 = vpop.trf.xlu0 }
 0x50b   : > { %v1909_v21 = vpop.trf.xlu1  ;;  %4205 = vrot.lane.b32.xlu0 %v4173_v48, %s12475_s26 }
 0x50c   : > { %10508 = vmatmul.mubr.msk.f32.gmra.mrb[26].mxu0 %vm504_vm9, %v1907_v0 }
 0x50d   : > { %10510 = vmatprep.mubr.msk.f32.mxu0 %vm504_vm9, %v1908_v58 }
 0x50e   : > { %v13645_v56 = vpop.trf.xlu0 }
 0x50f   : > { %v1910_v24 = vpop.trf.xlu1  ;;  %3270 = vxpose.xlu1.b32.start [1/4] (short) %v15454_v41, 128  ;;  %4207 = vrot.lane.b32.xlu0 %v4174_v11, %s12475_s26  ;;  %v3731_v41 = vsel %vm3728_vm8, %v13190_v16, %v13192_v59 }
 0x510   : > { %10511 = vmatmul.mubr.msk.f32.gmra.mrb[28].mxu0 %vm504_vm9, %v1909_v21  ;;  %v3729_v21 = vsel %vm3728_vm8, %v13183_v29, %v13188_v12 }
 0x511   : > { %10513 = vmatprep.mubr.msk.f32.mxu0 %vm504_vm9, %v1910_v24 }
 0x512   : > { %v13653_v47 = vpop.trf.xlu0 }
 0x513   : > { %3271 = vxpose.xlu1.b32.cont [2/4] (short) %v15455_v1, 128  ;;  %v1911_v27 = vpop.trf.xlu1  ;;  %4211 = vrot.lane.b32.xlu0 %v4176_v61, %s12475_s26  ;;  %v3216_v61 = vld [vmem:[#allocation7 + $0xd0] sm:$0xff]  ;;  %v3217_v1 = vld [vmem:[#allocation7 + $0xd8] sm:$0xff] }
 0x514   : > { %10514 = vmatmul.mubr.msk.f32.gmra.mrb[30].mxu0 %vm504_vm9, %v1911_v27  ;;  %v11424_v29 = vpack.c.bf16 %v3217_v1, %v3216_v61  ;;  %v3691_v61 = vld [vmem:[#allocation7 + $0xf8] sm:$0xff]  ;;  %v15460_v1 = vld [vmem:[#allocation23_spill] sm:$0xff] }
 0x515   : > { %10524 = vmatprep.mubr.msk.f32.mxu0 %vm504_vm9, %v13493_v19 }
 0x516   : > { %v13662_v33 = vpop.trf.xlu0 }
 0x517   : > { %3272 = vxpose.xlu1.b32.cont [3/4] (short) %v13172_v14, 128  ;;  %v2318_v32 = vpop.trf.xlu1  ;;  %4213 = vrot.lane.b32.xlu0 %v4177_v49, %s12475_s26  ;;  %v13675_v14 = vpack.c.bf16 %v3215_v9, %v3214_v40  ;;  %v3689_v49 = vld [vmem:[#allocation7 + $0xe8] sm:$0xff] }
 0x518   : > { %10525 = vmatmul.mubr.msk.f32.vlgmr.msra.gmra.mrb[0].mxu0 %vm504_vm9, %v13500_v7  ;;  %v4180_v7 = vmul.f32 %v13470_v6, %v13205_v25  ;;  %v13772_v16 = vpack.c.bf16 %v3689_v49, %v3688_v38  ;;  %v4183_v38 = vld [vmem:[#allocation7 + $0x100] sm:$0xff]  ;;  %v4184_v49 = vld [vmem:[#allocation7 + $0x108] sm:$0xff] }
 0x519   : > { %10527 = vmatprep.mubr.msk.f32.mxu0 %vm504_vm9, %v13506_v8  ;;  %11415 = vmatpush3.bf16.msra.mxu0 %v13569_v62 }
 0x51a   : > { %v13673_v19 = vpop.trf.xlu0  ;;  %11417 = vmatprep.subr.bf16.mxu0 %v11416_v37 }
 0x51b   : > { %3273 = vxpose.xlu1.b32.end [4/4] (short) %v13181_v17, 128  ;;  %v2319_v0 = vpop.trf.xlu1  ;;  %4217 = vrot.lane.b32.xlu0 %v4179_v22, %s12475_s26  ;;  %v4172_v17 = vmul.f32 0.0, %v13200_v20 }
 0x51c   : > { %10528 = vmatmul.mubr.msk.f32.gmra.mrb[2].mxu0 %vm504_vm9, %v13512_v53 }
 0x51d   : > { %10530 = vmatprep.mubr.msk.f32.mxu0 %vm504_vm9, %v13517_v5  ;;  %11419 = vmatpush3.bf16.msra.mxu0 %v11416_v37  ;;  %v15456_v37 = vld [vmem:[#allocation24_spill] sm:$0xff] }
 0x51e   : > { %v13685_v60 = vpop.trf.xlu0  ;;  %11421 = vmatprep.subr.bf16.mxu0 %v13675_v14 }
 0x51f   : > { %v2320_v8 = vpop.trf.xlu1  ;;  %4219 = vrot.lane.b32.xlu0 %v4180_v7, %s12475_s26 }
 0x520   : > { %10531 = vmatmul.mubr.msk.f32.gmra.mrb[4].mxu0 %vm504_vm9, %v13521_v10 }
 0x521   : > { %10533 = vmatprep.mubr.msk.f32.mxu0 %vm504_vm9, %v13525_v31 }
 0x522   : > { %v13694_v25 = vpop.trf.xlu0 }
 0x523   : > { %v2321_v6 = vpop.trf.xlu1  ;;  %4203 = vrot.lane.b32.xlu0 %v4172_v17, %s12475_s26 }
 0x524   : > { %10534 = vmatmul.mubr.msk.f32.gmra.mrb[6].mxu0 %vm504_vm9, %v13529_v23 }
 0x525   : > { %10536 = vmatprep.mubr.msk.f32.mxu0 %vm504_vm9, %v13533_v57 }
 0x526   : > { %v13701_v53 = vpop.trf.xlu0 }
 0x527   : > { %v2322_v5 = vpop.trf.xlu1  ;;  %4209 = vrot.lane.b32.xlu0 %v4172_v17, %s12475_s26 }
 0x528   : > { %10537 = vmatmul.mubr.msk.f32.gmra.mrb[8].mxu0 %vm504_vm9, %v13537_v46 }
 0x529   : > { %10539 = vmatprep.mubr.msk.f32.mxu0 %vm504_vm9, %v13544_v35 }
 0x52a   : > { %v13708_v20 = vpop.trf.xlu0 }
 0x52b   : > { %v2323_v10 = vpop.trf.xlu1  ;;  %4215 = vrot.lane.b32.xlu0 %v4172_v17, %s12475_s26 }
 0x52c   : > { %10540 = vmatmul.mubr.msk.f32.gmra.mrb[10].mxu0 %vm504_vm9, %v13551_v13 }
 0x52d   : > { %10542 = vmatprep.mubr.msk.f32.mxu0 %vm504_vm9, %v13556_v52 }
 0x52e   : > { %v13715_v31 = vpop.trf.xlu0 }
 0x52f   : > { %v2324_v23 = vpop.trf.xlu1  ;;  %4221 = vrot.lane.b32.xlu0 %v4172_v17, %s12475_s26  ;;  %s12483_s26 = smov [#allocation13]  }
 0x530   : > { %10543 = vmatmul.mubr.msk.f32.gmra.mrb[12].mxu0 %vm504_vm9, %v13567_v36  ;;  %s12390_s11 = sshll.u32 %s12483_s26, 4  ;;  %s12391_s11 = int_to_ptr.vmem [resolvable:$false] %s12390_s11 }
 0x531   : > { %10545 = vmatprep.mubr.msk.f32.mxu0 %vm504_vm9, %v13575_v54  ;;  %s12392_s28 = scalar_lea.vmem %s12391_s11, 8192  ;;  %p12393_p12 = scmp.lt.s32.totalorder %s15190_s14, %s12391_s11 }
 0x532   : > { %v13722_v57 = vpop.trf.xlu0  ;;  %p12394_p1 = scmp.lt.s32.totalorder %s12392_s28, %s12386_s24 }
 0x533   : > { %v2325_v46 = vpop.trf.xlu1 }
 0x534   : > { %10546 = vmatmul.mubr.msk.f32.gmra.mrb[14].mxu0 %vm504_vm9, %v13582_v45  ;;  %p12395_p2 = por %p12394_p1, %p12393_p12 }
 0x535   : > { %10548 = vmatprep.mubr.msk.f32.mxu0 %vm504_vm9, %v2318_v32 }
 0x536   : > { %v13727_v35 = vpop.trf.xlu0  ;;  %p12396_p13 = pnand %p12395_p2, %p12389_p7 }
 0x537   : > { %v2326_v13 = vpop.trf.xlu1 }
 0x538   : > { %10549 = vmatmul.mubr.msk.f32.gmra.mrb[16].mxu0 %vm504_vm9, %v2319_v0 }
 0x539   : > { %10551 = vmatprep.mubr.msk.f32.mxu0 %vm504_vm9, %v2320_v8 }
 0x53a   : > { %v13731_v52 = vpop.trf.xlu0 }
 0x53b   : > { %v2327_v36 = vpop.trf.xlu1 }
 0x53c   : > { %10552 = vmatmul.mubr.msk.f32.gmra.mrb[18].mxu0 %vm504_vm9, %v2321_v6 }
 0x53d   : > { %10554 = vmatprep.mubr.msk.f32.mxu0 %vm504_vm9, %v2322_v5 }
 0x53e   : > { %v13735_v62 = vpop.trf.xlu0 }
 0x53f   : > { %v2328_v54 = vpop.trf.xlu1 }
 0x540   : > { %10555 = vmatmul.mubr.msk.f32.gmra.mrb[20].mxu0 %vm504_vm9, %v2323_v10 }
 0x541   : > { %10557 = vmatprep.mubr.msk.f32.mxu0 %vm504_vm9, %v2324_v23 }
 0x542   : > { %v13739_v45 = vpop.trf.xlu0 }
 0x543   : > { %v2329_v39 = vpop.trf.xlu1 }
 0x544   : > { %10558 = vmatmul.mubr.msk.f32.gmra.mrb[22].mxu0 %vm504_vm9, %v2325_v46 }
 0x545   : > { %10560 = vmatprep.mubr.msk.f32.mxu0 %vm504_vm9, %v2326_v13 }
 0x546   : > { %v13743_v28 = vpop.trf.xlu0 }
 0x547   : > { %v2330_v58 = vpop.trf.xlu1 }
 0x548   : > { %10561 = vmatmul.mubr.msk.f32.gmra.mrb[24].mxu0 %vm504_vm9, %v2327_v36  ;;  %v15458_v36 = vld [vmem:[#allocation25_spill] sm:$0xff] }
 0x549   : > { %10563 = vmatprep.mubr.msk.f32.mxu0 %vm504_vm9, %v2328_v54  ;;  %v12231_v54 = vunpack.i.l.bf16 %v15458_v36 }
 0x54a   : > { %v13747_v48 = vpop.trf.xlu0 }
 0x54b   : > { %v2331_v18 = vpop.trf.xlu1 }
 0x54c   : > { %10564 = vmatmul.mubr.msk.f32.gmra.mrb[26].mxu0 %vm504_vm9, %v2329_v39 }
 0x54d   : > { %10566 = vmatprep.mubr.msk.f32.mxu0 %vm504_vm9, %v2330_v58 }
 0x54e   : > { %v13756_v24 = vpop.trf.xlu0 }
 0x54f   : > { %v2332_v11 = vpop.trf.xlu1  ;;  %3745 = vxpose.xlu1.b32.start [1/4] (short) %v3729_v21, 128  ;;  %v15459_v21 = vld [vmem:[#allocation22_spill] sm:$0xff] }
 0x550   : > { %10567 = vmatmul.mubr.msk.f32.gmra.mrb[28].mxu0 %vm504_vm9, %v2331_v18 }
 0x551   : > { %10569 = vmatprep.mubr.msk.f32.mxu0 %vm504_vm9, %v2332_v11  ;;  %v3734_v11 = vsel %vm3728_vm8, %v15459_v21, %v12231_v54 }
 0x552   : > { %v13765_v4 = vpop.trf.xlu0 }
 0x553   : > { %3746 = vxpose.xlu1.b32.cont [2/4] (short) %v3731_v41, 128  ;;  %v2333_v26 = vpop.trf.xlu1 }
 0x554   : > { %10570 = vmatmul.mubr.msk.f32.gmra.mrb[30].mxu0 %vm504_vm9, %v2333_v26  ;;  %v3690_v26 = vld [vmem:[#allocation7 + $0xf0] sm:$0xff] }
 0x555   : > { %10580 = vmatprep.mubr.msk.f32.mxu0 %vm504_vm9, %v13588_v43 }
 0x557   : > { %v2824_v27 = vpop.trf.xlu1  ;;  %3747 = vxpose.xlu1.b32.cont [3/4] (short) %v13216_v15, 128  ;;  %v13779_v15 = vpop.trf.xlu0 }
 0x558   : > { %10581 = vmatmul.mubr.msk.f32.vlgmr.msra.gmra.mrb[0].mxu0 %vm504_vm9, %v13594_v42 }
 0x559   : > { %10583 = vmatprep.mubr.msk.f32.mxu0 %vm504_vm9, %v13600_v34  ;;  %11423 = vmatpush3.bf16.msra.mxu0 %v13675_v14 }
 0x55a   : > { %11425 = vmatprep.subr.bf16.mxu0 %v11424_v29 }
 0x55b   : > { %v2825_v43 = vpop.trf.xlu1  ;;  %3748 = vxpose.xlu1.b32.end [4/4] (short) %v15456_v37, 128  ;;  %v13786_v32 = vpop.trf.xlu0 }
 0x55c   : > { %10584 = vmatmul.mubr.msk.f32.gmra.mrb[2].mxu0 %vm504_vm9, %v13606_v2 }
 0x55d   : > { %10586 = vmatprep.mubr.msk.f32.mxu0 %vm504_vm9, %v13611_v50  ;;  %11427 = vmatpush3.bf16.msra.mxu0 %v11424_v29 }
 0x55e   : > { %11429 = vmatprep.subr.bf16.mxu0 %v13772_v16 }
 0x55f   : > { %v2826_v42 = vpop.trf.xlu1  ;;  %v13796_v50 = vpop.trf.xlu0 }
 0x560   : > { %10587 = vmatmul.mubr.msk.f32.gmra.mrb[4].mxu0 %vm504_vm9, %v13615_v30 }
 0x561   : > { %10589 = vmatprep.mubr.msk.f32.mxu0 %vm504_vm9, %v13619_v63 }
 0x563   : > { %v2827_v34 = vpop.trf.xlu1 }
 0x564   : > { %10590 = vmatmul.mubr.msk.f32.gmra.mrb[6].mxu0 %vm504_vm9, %v13623_v51  ;;  %v13802_v51 = vpop.trf.xlu0 }
 0x565   : > { %10592 = vmatprep.mubr.msk.f32.mxu0 %vm504_vm9, %v13631_v44 }
 0x567   : > { %v2828_v2 = vpop.trf.xlu1 }
 0x568   : > { %10593 = vmatmul.mubr.msk.f32.gmra.mrb[8].mxu0 %vm504_vm9, %v13638_v3 }
 0x569   : > { %10595 = vmatprep.mubr.msk.f32.mxu0 %vm504_vm9, %v13645_v56 }
 0x56b   : > { %v2829_v30 = vpop.trf.xlu1 }
 0x56c   : > { %10596 = vmatmul.mubr.msk.f32.gmra.mrb[10].mxu0 %vm504_vm9, %v13653_v47 }
 0x56d   : > { %10598 = vmatprep.mubr.msk.f32.mxu0 %vm504_vm9, %v13662_v33  ;;  %v15457_v33 = vld [vmem:[#allocation26_spill] sm:$0xff] }
 0x56f   : > { %v2830_v63 = vpop.trf.xlu1 }
 0x570   : > { %10599 = vmatmul.mubr.msk.f32.gmra.mrb[12].mxu0 %vm504_vm9, %v13673_v19 }
 0x571   : > { %10601 = vmatprep.mubr.msk.f32.mxu0 %vm504_vm9, %v13685_v60 }
 0x573   : > { %v2831_v44 = vpop.trf.xlu1 }
 0x574   : > { %10602 = vmatmul.mubr.msk.f32.gmra.mrb[14].mxu0 %vm504_vm9, %v13694_v25 }
 0x575   : > { %10604 = vmatprep.mubr.msk.f32.mxu0 %vm504_vm9, %v2824_v27  ;;  %v12225_v3 = vpop.permute.xlu0 %12224 }
 0x576   : > { %v12226_v17 = vunpack.i.l.bf16 %v12225_v3  ;;  %v12227_v10 = vunpack.i.h.bf16 %v12225_v3 }
 0x577   : > { %v2832_v56 = vpop.trf.xlu1 }
 0x578   : > { %10605 = vmatmul.mubr.msk.f32.gmra.mrb[16].mxu0 %vm504_vm9, %v2825_v43  ;;  %v3730_v23 = vsel %vm3728_vm8, %v13188_v12, %v12226_v17  ;;  %v3732_v58 = vsel %vm3728_vm8, %v13192_v59, %v12227_v10  ;;  %v12232_v12 = vunpack.i.h.bf16 %v15458_v36  ;;  %v11432_v59 = vpack.c.bf16 %v3691_v61, %v3690_v26  ;;  %v4766_v10 = vld [vmem:[#allocation12 + $0x28] sm:$0xff] }
 0x579   : > { %10607 = vmatprep.mubr.msk.f32.mxu0 %vm504_vm9, %v2826_v42  ;;  %v4200_v47 = vpop.permute.xlu0 %4199  ;;  %v13853_v43 = vpack.c.bf16 %v4184_v49, %v4183_v38 }
 0x57a   : > { %v4223_v40 = vsel %vm361_vm2, %v4200_v47, %v15457_v33  ;;  %v3736_v29 = vsel %vm3728_vm8, %v15460_v1, %v12232_v12  ;;  %v4771_v12 = vld [vmem:[#allocation12 + $0x50] sm:$0xff]  ;;  %v4773_v1 = vld [vmem:[#allocation12 + $0x60] sm:$0xff] }
 0x57b   : > { %v2833_v9 = vpop.trf.xlu1  ;;  %4239 = vxpose.xlu0.b32.start [1/4] (short) %v4223_v40, 128 }
 0x57c   : > { %10608 = vmatmul.mubr.msk.f32.gmra.mrb[18].mxu0 %vm504_vm9, %v2827_v34 }
 0x57d   : > { %10610 = vmatprep.mubr.msk.f32.mxu0 %vm504_vm9, %v2828_v2  ;;  %v4206_v55 = vpop.permute.xlu0 %4205 }
 0x57f   : > { %v2834_v22 = vpop.trf.xlu1 }
 0x580   : > { %10611 = vmatmul.mubr.msk.f32.gmra.mrb[20].mxu0 %vm504_vm9, %v2829_v30 }
 0x581   : > { %10613 = vmatprep.mubr.msk.f32.mxu0 %vm504_vm9, %v2830_v63  ;;  %v13819_v19 = vpop.permute.xlu0 %4207 }
 0x582   : > { %v4225_v14 = vsel %vm361_vm2, %v4206_v55, %v13819_v19 }
 0x583   : > { %v2835_v0 = vpop.trf.xlu1  ;;  %4240 = vxpose.xlu0.b32.cont [2/4] (short) %v4225_v14, 128 }
 0x584   : > { %10614 = vmatmul.mubr.msk.f32.gmra.mrb[22].mxu0 %vm504_vm9, %v2831_v44  ;;  %v12482_v44 = vmov 0  }
 0x585   : > { %10616 = vmatprep.mubr.msk.f32.mxu0 %vm504_vm9, %v2832_v56  ;;  %v4212_v7 = vpop.permute.xlu0 %4211 }
 0x587   : > { %v2836_v60 = vpop.trf.xlu1 }
 0x588   : > { %10617 = vmatmul.mubr.msk.f32.gmra.mrb[24].mxu0 %vm504_vm9, %v2833_v9 }
 0x589   : > { %10619 = vmatprep.mubr.msk.f32.mxu0 %vm504_vm9, %v2834_v22  ;;  %v13827_v8 = vpop.permute.xlu0 %4213 }
 0x58a   : > { %v4227_v25 = vsel %vm361_vm2, %v4212_v7, %v13827_v8 }
 0x58b   : > { %v2837_v6 = vpop.trf.xlu1  ;;  %4241 = vxpose.xlu0.b32.cont [3/4] (short) %v4227_v25, 128 }
 0x58c   : > { %10620 = vmatmul.mubr.msk.f32.gmra.mrb[26].mxu0 %vm504_vm9, %v2835_v0 }
 0x58d   : > { %10622 = vmatprep.mubr.msk.f32.mxu0 %vm504_vm9, %v2836_v60  ;;  %v4218_v5 = vpop.permute.xlu0 %4217 }
 0x58f   : > { %v2838_v46 = vpop.trf.xlu1  ;;  %3777 = vxpose.xlu1.b32.start [1/4] (short) %v3730_v23, 128  ;;  %v4768_v23 = vld [vmem:[#allocation12 + $0x38] sm:$0xff] }
 0x590   : > { %10623 = vmatmul.mubr.msk.f32.gmra.mrb[28].mxu0 %vm504_vm9, %v2837_v6 }
 0x591   : > { %10625 = vmatprep.mubr.msk.f32.mxu0 %vm504_vm9, %v2838_v46  ;;  %v13837_v13 = vpop.permute.xlu0 %4219 }
 0x592   : > { %v4229_v39 = vsel %vm361_vm2, %v4218_v5, %v13837_v13 }
 0x593   : > { %v2839_v18 = vpop.trf.xlu1  ;;  %4242 = vxpose.xlu0.b32.end [4/4] (short) %v4229_v39, 128  ;;  %3778 = vxpose.xlu1.b32.cont [2/4] (short) %v3732_v58, 128  ;;  %v4770_v39 = vld [vmem:[#allocation12 + $0x48] sm:$0xff] }
 0x594   : > { %10626 = vmatmul.mubr.msk.f32.gmra.mrb[30].mxu0 %vm504_vm9, %v2839_v18 }
 0x595   : > { %v4204_v3 = vpop.permute.xlu0 %4203 }
 0x596   : > { %v4224_v55 = vsel %vm361_vm2, %v15457_v33, %v4204_v3 }
 0x597   : > { %v3286_v41 = vpop.trf.xlu1  ;;  %3779 = vxpose.xlu1.b32.cont [3/4] (short) %v3734_v11, 128 }
 0x598   : > { %10636 = vmatprep.mubr.msk.f32.mxu0 %vm504_vm9, %v3286_v41  ;;  %v4772_v41 = vld [vmem:[#allocation12 + $0x58] sm:$0xff] }
 0x599   : > { %v4210_v40 = vpop.permute.xlu0 %4209 }
 0x59a   : > { %v4226_v0 = vsel %vm361_vm2, %v13819_v19, %v4210_v40 }
 0x59b   : > { %v3287_v27 = vpop.trf.xlu1  ;;  %3780 = vxpose.xlu1.b32.end [4/4] (short) %v3736_v29, 128 }
 0x59c   : > { %10637 = vmatmul.mubr.msk.f32.vlgmr.msra.gmra.mrb[0].mxu0 %vm504_vm9, %v3287_v27  ;;  %v4774_v27 = vld [vmem:[#allocation12 + $0x68] sm:$0xff] }
 0x59d   : > { %11431 = vmatpush3.bf16.msra.mxu0 %v13772_v16  ;;  %v4216_v22 = vpop.permute.xlu0 %4215 }
 0x59e   : > { %11433 = vmatprep.subr.bf16.mxu0 %v11432_v59  ;;  %v4228_v60 = vsel %vm361_vm2, %v13827_v8, %v4216_v22  ;;  %v4782_v22 = vld [vmem:[#allocation12 + $0xa8] sm:$0xff] }
 0x59f   : > { %v3288_v37 = vpop.trf.xlu1 }
 0x5a0   : > { %10639 = vmatprep.mubr.msk.f32.mxu0 %vm504_vm9, %v3288_v37 }
 0x5a1   : > { %11435 = vmatpush3.bf16.msra.mxu0 %v11432_v59  ;;  %v4222_v17 = vpop.permute.xlu0 %4221 }
 0x5a2   : > { %11437 = vmatprep.subr.bf16.mxu0 %v13853_v43  ;;  %v4230_v25 = vsel %vm361_vm2, %v13837_v13, %v4222_v17  ;;  %v4769_v13 = vld [vmem:[#allocation12 + $0x40] sm:$0xff] }
 0x5a3   : > { %v3289_v42 = vpop.trf.xlu1 }
 0x5a4   : > { %10640 = vmatmul.mubr.msk.f32.gmra.mrb[2].mxu0 %vm504_vm9, %v3289_v42 }
 0x5a7   : > { %v3290_v34 = vpop.trf.xlu1 }
 0x5a8   : > { %10642 = vmatprep.mubr.msk.f32.mxu0 %vm504_vm9, %v3290_v34  ;;  %v4776_v34 = vld [vmem:[#allocation12 + $0x78] sm:$0xff] }
 0x5ab   : > { %v3291_v2 = vpop.trf.xlu1 }
 0x5ac   : > { %10643 = vmatmul.mubr.msk.f32.gmra.mrb[4].mxu0 %vm504_vm9, %v3291_v2 }
 0x5af   : > { %v3292_v30 = vpop.trf.xlu1 }
 0x5b0   : > { %10645 = vmatprep.mubr.msk.f32.mxu0 %vm504_vm9, %v3292_v30 }
 0x5b3   : > { %v3293_v16 = vpop.trf.xlu1 }
 0x5b4   : > { %10646 = vmatmul.mubr.msk.f32.gmra.mrb[6].mxu0 %vm504_vm9, %v3293_v16  ;;  %v4777_v16 = vld [vmem:[#allocation12 + $0x80] sm:$0xff] }
 0x5b7   : > { %v3294_v63 = vpop.trf.xlu1 }
 0x5b8   : > { %10648 = vmatprep.mubr.msk.f32.mxu0 %vm504_vm9, %v3294_v63  ;;  %v4762_v63 = vld [vmem:[#allocation12 + $0x8] sm:$0xff] }
 0x5b9   : > { %12233 = vset.pattern.permute.xlu1 %v12482_v44 }
 0x5bb   : > { %v3295_v56 = vpop.trf.xlu1 }
 0x5bc   : > { %10649 = vmatmul.mubr.msk.f32.gmra.mrb[8].mxu0 %vm504_vm9, %v3295_v56  ;;  %v4778_v56 = vld [vmem:[#allocation12 + $0x88] sm:$0xff] }
 0x5bf   : > { %v3296_v47 = vpop.trf.xlu1 }
 0x5c0   : > { %10651 = vmatprep.mubr.msk.f32.mxu0 %vm504_vm9, %v3296_v47  ;;  %v4780_v47 = vld [vmem:[#allocation12 + $0x98] sm:$0xff] }
 0x5c3   : > { %v3297_v9 = vpop.trf.xlu1 }
 0x5c4   : > { %10652 = vmatmul.mubr.msk.f32.gmra.mrb[10].mxu0 %vm504_vm9, %v3297_v9  ;;  %4271 = vxpose.xlu0.b32.start [1/4] (short) %v4224_v55, 128  ;;  %v4779_v55 = vld [vmem:[#allocation12 + $0x90] sm:$0xff] }
 0x5c7   : > { %v3298_v14 = vpop.trf.xlu1 }
 0x5c8   : > { %10654 = vmatprep.mubr.msk.f32.mxu0 %vm504_vm9, %v3298_v14  ;;  %4272 = vxpose.xlu0.b32.cont [2/4] (short) %v4226_v0, 128 }
 0x5cb   : > { %v3299_v7 = vpop.trf.xlu1 }
 0x5cc   : > { %10655 = vmatmul.mubr.msk.f32.gmra.mrb[12].mxu0 %vm504_vm9, %v3299_v7  ;;  %4273 = vxpose.xlu0.b32.cont [3/4] (short) %v4228_v60, 128  ;;  %v4781_v7 = vld [vmem:[#allocation12 + $0xa0] sm:$0xff]  ;;  %v4784_v60 = vld [vmem:[#allocation12 + $0xb8] sm:$0xff] }
 0x5cf   : > { %v3300_v33 = vpop.trf.xlu1 }
 0x5d0   : > { %10657 = vmatprep.mubr.msk.f32.mxu0 %vm504_vm9, %v3300_v33  ;;  %4274 = vxpose.xlu0.b32.end [4/4] (short) %v4230_v25, 128  ;;  %v4783_v25 = vld [vmem:[#allocation12 + $0xb0] sm:$0xff] }
 0x5d3   : > { %v3301_v6 = vpop.trf.xlu1 }
 0x5d4   : > { %10658 = vmatmul.mubr.msk.f32.gmra.mrb[14].mxu0 %vm504_vm9, %v3301_v6  ;;  %v4786_v6 = vld [vmem:[#allocation12 + $0xc8] sm:$0xff] }
 0x5d5   : > { %10660 = vmatprep.mubr.msk.f32.mxu0 %vm504_vm9, %v13701_v53 }
 0x5d7   : > { %v3761_v19 = vpop.trf.xlu1 }
 0x5d8   : > { %10661 = vmatmul.mubr.msk.f32.gmra.mrb[16].mxu0 %vm504_vm9, %v13708_v20  ;;  %v4761_v20 = vld [vmem:[#allocation12] sm:$0xff] }
 0x5d9   : > { %10663 = vmatprep.mubr.msk.f32.mxu0 %vm504_vm9, %v13715_v31 }
 0x5db   : > { %v3762_v8 = vpop.trf.xlu1 }
 0x5dc   : > { %10664 = vmatmul.mubr.msk.f32.gmra.mrb[18].mxu0 %vm504_vm9, %v13722_v57  ;;  %v4763_v57 = vld [vmem:[#allocation12 + $0x10] sm:$0xff] }
 0x5dd   : > { %10666 = vmatprep.mubr.msk.f32.mxu0 %vm504_vm9, %v13727_v35 }
 0x5df   : > { %v3763_v5 = vpop.trf.xlu1 }
 0x5e0   : > { %10667 = vmatmul.mubr.msk.f32.gmra.mrb[20].mxu0 %vm504_vm9, %v13731_v52  ;;  %v4764_v52 = vld [vmem:[#allocation12 + $0x18] sm:$0xff] }
 0x5e1   : > { %10669 = vmatprep.mubr.msk.f32.mxu0 %vm504_vm9, %v13735_v62 }
 0x5e3   : > { %v3764_v53 = vpop.trf.xlu1 }
 0x5e4   : > { %10670 = vmatmul.mubr.msk.f32.gmra.mrb[22].mxu0 %vm504_vm9, %v13739_v45  ;;  %v4765_v45 = vld [vmem:[#allocation12 + $0x20] sm:$0xff] }
 0x5e5   : > { %10672 = vmatprep.mubr.msk.f32.mxu0 %vm504_vm9, %v13743_v28 }
 0x5e7   : > { %v3765_v31 = vpop.trf.xlu1 }
 0x5e8   : > { %10673 = vmatmul.mubr.msk.f32.gmra.mrb[24].mxu0 %vm504_vm9, %v13747_v48  ;;  %v4185_v48 = vld [vmem:[#allocation7 + $0x110] sm:$0xff] }
 0x5e9   : > { %10675 = vmatprep.mubr.msk.f32.mxu0 %vm504_vm9, %v13756_v24  ;;  %4860 = vperm.xlu1 %12233, %v4761_v20   ;;  %v4186_v24 = vld [vmem:[#allocation7 + $0x118] sm:$0xff] }
 0x5eb   : > { %v3766_v35 = vpop.trf.xlu1 }
 0x5ec   : > { %10676 = vmatmul.mubr.msk.f32.gmra.mrb[26].mxu0 %vm504_vm9, %v13765_v4  ;;  %v11440_v4 = vpack.c.bf16 %v4186_v24, %v4185_v48 }
 0x5ed   : > { %10678 = vmatprep.mubr.msk.f32.mxu0 %vm504_vm9, %v13779_v15  ;;  %4870 = vperm.xlu1 %12233, %v4763_v57   ;;  %v4787_v57 = vld [vmem:[#allocation12 + $0xd0] sm:$0xff] }
 0x5ef   : > { %v3767_v62 = vpop.trf.xlu1 }
 0x5f0   : > { %10679 = vmatmul.mubr.msk.f32.gmra.mrb[28].mxu0 %vm504_vm9, %v13786_v32 }
 0x5f1   : > { %10681 = vmatprep.mubr.msk.f32.mxu0 %vm504_vm9, %v13796_v50  ;;  %4875 = vperm.xlu1 %12233, %v4764_v52   ;;  %v4767_v50 = vld [vmem:[#allocation12 + $0x30] sm:$0xff] }
 0x5f3   : > { %v3768_v28 = vpop.trf.xlu1 }
 0x5f4   : > { %10682 = vmatmul.mubr.msk.f32.gmra.mrb[30].mxu0 %vm504_vm9, %v13802_v51 }
 0x5f5   : > { %10692 = vmatprep.mubr.msk.f32.mxu0 %vm504_vm9, %v3761_v19  ;;  %4880 = vperm.xlu1 %12233, %v4765_v45   ;;  %v4789_v45 = vld [vmem:[#allocation12 + $0xe0] sm:$0xff] }
 0x5f7   : > { %v3769_v15 = vpop.trf.xlu1 }
 0x5f8   : > { %10693 = vmatmul.mubr.msk.f32.vlgmr.msra.gmra.mrb[0].mxu0 %vm504_vm9, %v3762_v8 }
 0x5f9   : > { %10695 = vmatprep.mubr.msk.f32.mxu0 %vm504_vm9, %v3763_v5  ;;  %11439 = vmatpush3.bf16.msra.mxu0 %v13853_v43  ;;  %v4775_v43 = vld [vmem:[#allocation12 + $0x70] sm:$0xff]  ;;  %v4785_v5 = vld [vmem:[#allocation12 + $0xc0] sm:$0xff] }
 0x5fa   : > { %11441 = vmatprep.subr.bf16.mxu0 %v11440_v4  ;;  %4885 = vperm.xlu1 %12233, %v4766_v10  }
 0x5fb   : > { %v3770_v32 = vpop.trf.xlu1  ;;  %12234 = vset.pattern.permute.xlu0 %v12482_v44 }
 0x5fc   : > { %10696 = vmatmul.mubr.msk.f32.gmra.mrb[2].mxu0 %vm504_vm9, %v3764_v53  ;;  %v4788_v53 = vld [vmem:[#allocation12 + $0xd8] sm:$0xff] }
 0x5fd   : > { %10698 = vmatprep.mubr.msk.f32.mxu0 %vm504_vm9, %v3765_v31  ;;  %11443 = vmatpush3.bf16.msra.mxu0 %v11440_v4  ;;  %v4791_v4 = vld [vmem:[#allocation12 + $0xf0] sm:$0xff] }
 0x5fe   : > { %4890 = vperm.xlu1 %12233, %v4767_v50   ;;  %v4794_v50 = vld [vmem:[#allocation12 + $0x100] sm:$0xff] }
 0x5ff   : > { %v3771_v51 = vpop.trf.xlu1 }
 0x600   : > { %10699 = vmatmul.mubr.msk.f32.gmra.mrb[4].mxu0 %vm504_vm9, %v3766_v35  ;;  %v4790_v35 = vld [vmem:[#allocation12 + $0xe8] sm:$0xff] }
 0x601   : > { %10701 = vmatprep.mubr.msk.f32.mxu0 %vm504_vm9, %v3767_v62 }
 0x602   : > { %4895 = vperm.xlu1 %12233, %v4768_v23  }
 0x603   : > { %v3772_v46 = vpop.trf.xlu1 }
 0x604   : > { %10702 = vmatmul.mubr.msk.f32.gmra.mrb[6].mxu0 %vm504_vm9, %v3768_v28  ;;  %v4792_v28 = vld [vmem:[#allocation12 + $0xf8] sm:$0xff] }
 0x605   : > { %10704 = vmatprep.mubr.msk.f32.mxu0 %vm504_vm9, %v3769_v15  ;;  %v4795_v15 = vld [vmem:[#allocation12 + $0x108] sm:$0xff] }
 0x606   : > { %4900 = vperm.xlu1 %12233, %v4769_v13   ;;  %v4796_v13 = vld [vmem:[#allocation12 + $0x110] sm:$0xff] }
 0x607   : > { %v3773_v36 = vpop.trf.xlu1  ;;  %v13922_v54 = vpop.trf.xlu0 }
 0x608   : > { %10705 = vmatmul.mubr.msk.f32.gmra.mrb[8].mxu0 %vm504_vm9, %v3770_v32 }
 0x609   : > { %10707 = vmatprep.mubr.msk.f32.mxu0 %vm504_vm9, %v3771_v51  ;;  %v4797_v51 = vld [vmem:[#allocation12 + $0x118] sm:$0xff] }
 0x60a   : > { %4905 = vperm.xlu1 %12233, %v4770_v39  }
 0x60b   : > { %v3774_v58 = vpop.trf.xlu1  ;;  %v13926_v18 = vpop.trf.xlu0 }
 0x60c   : > { %10708 = vmatmul.mubr.msk.f32.gmra.mrb[10].mxu0 %vm504_vm9, %v3772_v46 }
 0x60d   : > { %10710 = vmatprep.mubr.msk.f32.mxu0 %vm504_vm9, %v3773_v36  ;;  %v4799_v36 = vld [vmem:[#allocation12 + $0x128] sm:$0xff] }
 0x60e   : > { %4910 = vperm.xlu1 %12233, %v4771_v12   ;;  %v4798_v12 = vld [vmem:[#allocation12 + $0x120] sm:$0xff] }
 0x60f   : > { %v3775_v21 = vpop.trf.xlu1  ;;  %v13930_v11 = vpop.trf.xlu0 }
 0x610   : > { %10711 = vmatmul.mubr.msk.f32.gmra.mrb[12].mxu0 %vm504_vm9, %v3774_v58 }
 0x611   : > { %10713 = vmatprep.mubr.msk.f32.mxu0 %vm504_vm9, %v3775_v21  ;;  %v4801_v21 = vld [vmem:[#allocation12 + $0x138] sm:$0xff] }
 0x612   : > { %4915 = vperm.xlu1 %12233, %v4772_v41  }
 0x613   : > { %v3776_v26 = vpop.trf.xlu1  ;;  %v13934_v61 = vpop.trf.xlu0 }
 0x614   : > { %10714 = vmatmul.mubr.msk.f32.gmra.mrb[14].mxu0 %vm504_vm9, %v3776_v26 }
 0x616   : > { %4920 = vperm.xlu1 %12233, %v4773_v1   ;;  %v4800_v1 = vld [vmem:[#allocation12 + $0x130] sm:$0xff] }
 0x617   : > { %v3793_v29 = vpop.trf.xlu1  ;;  %v13937_v59 = vpop.trf.xlu0 }
 0x618   : > { %10716 = vmatprep.mubr.msk.f32.mxu0 %vm504_vm9, %v3793_v29  ;;  %v4803_v29 = vld [vmem:[#allocation12 + $0x148] sm:$0xff] }
 0x61a   : > { %4925 = vperm.xlu1 %12233, %v4774_v27  }
 0x61b   : > { %v3794_v38 = vpop.trf.xlu1  ;;  %v13940_v49 = vpop.trf.xlu0 }
 0x61c   : > { %10717 = vmatmul.mubr.msk.f32.gmra.mrb[16].mxu0 %vm504_vm9, %v3794_v38  ;;  %v4802_v38 = vld [vmem:[#allocation12 + $0x140] sm:$0xff] }
 0x61e   : > { %4930 = vperm.xlu1 %12233, %v4775_v43   ;;  %v5091_v43 = vld [vmem:[#allocation9 + $0x40] sm:$0xff] }
 0x61f   : > { %v3795_v37 = vpop.trf.xlu1  ;;  %v13943_v42 = vpop.trf.xlu0 }
 0x620   : > { %10719 = vmatprep.mubr.msk.f32.mxu0 %vm504_vm9, %v3795_v37  ;;  %v5092_v37 = vld [vmem:[#allocation9 + $0x48] sm:$0xff] }
 0x622   : > { %4935 = vperm.xlu1 %12233, %v4776_v34   ;;  %v4805_v34 = vld [vmem:[#allocation12 + $0x158] sm:$0xff] }
 0x623   : > { %v3796_v2 = vpop.trf.xlu1  ;;  %v13946_v30 = vpop.trf.xlu0 }
 0x624   : > { %10720 = vmatmul.mubr.msk.f32.gmra.mrb[18].mxu0 %vm504_vm9, %v3796_v2  ;;  %v11444_v2 = vpack.c.bf16 %v5092_v37, %v5091_v43 }
 0x626   : > { %4940 = vperm.xlu1 %12233, %v4777_v16   ;;  %11588 = vmatprep.subr.bf16.mxu1 %v11444_v2 }
 0x627   : > { %v3797_v44 = vpop.trf.xlu1  ;;  %v13949_v3 = vpop.trf.xlu0  ;;  %11592 = vmatpush3.bf16.msra.mxu1 %v11444_v2  ;;  %11445 = vmatprep.subr.bf16.mxu0 %v11444_v2 }
 0x628   : > { %10722 = vmatprep.mubr.msk.f32.mxu0 %vm504_vm9, %v3797_v44 }
 0x629   : > { %4865 = vperm.xlu0 %12234, %v4762_v63   ;;  %v4806_v63 = vld [vmem:[#allocation12 + $0x160] sm:$0xff] }
 0x62a   : > { %4945 = vperm.xlu1 %12233, %v4778_v56   ;;  %v4808_v56 = vld [vmem:[#allocation12 + $0x170] sm:$0xff] }
 0x62b   : > { %v3798_v40 = vpop.trf.xlu1  ;;  %v13952_v9 = vpop.trf.xlu0 }
 0x62c   : > { %10723 = vmatmul.mubr.msk.f32.gmra.mrb[20].mxu0 %vm504_vm9, %v3798_v40  ;;  %v4812_v40 = vld [vmem:[#allocation12 + $0x190] sm:$0xff] }
 0x62d   : > { %4955 = vperm.xlu0 %12234, %v4780_v47  }
 0x62e   : > { %4950 = vperm.xlu1 %12233, %v4779_v55   ;;  %v4814_v55 = vld [vmem:[#allocation12 + $0x1a0] sm:$0xff] }
 0x62f   : > { %v3799_v14 = vpop.trf.xlu1  ;;  %v13955_v0 = vpop.trf.xlu0 }
 0x630   : > { %10725 = vmatprep.mubr.msk.f32.mxu0 %vm504_vm9, %v3799_v14  ;;  %v4816_v14 = vld [vmem:[#allocation12 + $0x1b0] sm:$0xff] }
 0x631   : > { %4965 = vperm.xlu0 %12234, %v4782_v22  }
 0x632   : > { %4960 = vperm.xlu1 %12233, %v4781_v7   ;;  %v4818_v7 = vld [vmem:[#allocation12 + $0x1c0] sm:$0xff] }
 0x633   : > { %v3800_v17 = vpop.trf.xlu1  ;;  %v13958_v33 = vpop.trf.xlu0 }
 0x634   : > { %10726 = vmatmul.mubr.msk.f32.gmra.mrb[22].mxu0 %vm504_vm9, %v3800_v17  ;;  %v4821_v17 = vld [vmem:[#allocation12 + $0x1d8] sm:$0xff] }
 0x635   : > { %4975 = vperm.xlu0 %12234, %v4784_v60  }
 0x636   : > { %4970 = vperm.xlu1 %12233, %v4783_v25   ;;  %v4823_v25 = vld [vmem:[#allocation12 + $0x1e8] sm:$0xff] }
 0x637   : > { %v3801_v19 = vpop.trf.xlu1  ;;  %v13961_v8 = vpop.trf.xlu0 }
 0x638   : > { %10728 = vmatprep.mubr.msk.f32.mxu0 %vm504_vm9, %v3801_v19  ;;  %v4822_v19 = vld [vmem:[#allocation12 + $0x1e0] sm:$0xff] }
 0x639   : > { %4985 = vperm.xlu0 %12234, %v4786_v6  }
 0x63a   : > { %4980 = vperm.xlu1 %12233, %v4785_v5   ;;  %v4824_v5 = vld [vmem:[#allocation12 + $0x1f0] sm:$0xff] }
 0x63b   : > { %v3802_v20 = vpop.trf.xlu1  ;;  %v13964_v31 = vpop.trf.xlu0 }
 0x63c   : > { %10729 = vmatmul.mubr.msk.f32.gmra.mrb[24].mxu0 %vm504_vm9, %v3802_v20 }
 0x63d   : > { %4995 = vperm.xlu0 %12234, %v4788_v53  }
 0x63e   : > { %4990 = vperm.xlu1 %12233, %v4787_v57   ;;  %v5093_v57 = vld [vmem:[#allocation9 + $0x50] sm:$0xff] }
 0x63f   : > { %v3803_v52 = vpop.trf.xlu1  ;;  %v13967_v62 = vpop.trf.xlu0 }
 0x640   : > { %10731 = vmatprep.mubr.msk.f32.mxu0 %vm504_vm9, %v3803_v52 }
 0x641   : > { %5005 = vperm.xlu0 %12234, %v4790_v35   ;;  %v5094_v35 = vld [vmem:[#allocation9 + $0x58] sm:$0xff] }
 0x642   : > { %5000 = vperm.xlu1 %12233, %v4789_v45   ;;  %v11448_v52 = vpack.c.bf16 %v5094_v35, %v5093_v57  ;;  %v5096_v45 = vld [vmem:[#allocation9 + $0x68] sm:$0xff] }
 0x643   : > { %v3804_v48 = vpop.trf.xlu1  ;;  %v13970_v24 = vpop.trf.xlu0 }
 0x644   : > { %10732 = vmatmul.mubr.msk.f32.gmra.mrb[26].mxu0 %vm504_vm9, %v3804_v48  ;;  %11589 = vmatprep.subr.bf16.mxu1 %v11448_v52  ;;  %v5097_v48 = vld [vmem:[#allocation9 + $0x70] sm:$0xff] }
 0x645   : > { %5015 = vperm.xlu0 %12234, %v4792_v28   ;;  %11593 = vmatpush3.bf16.msra.mxu1 %v11448_v52 }
 0x646   : > { %5010 = vperm.xlu1 %12233, %v4791_v4  }
 0x647   : > { %v3805_v10 = vpop.trf.xlu1  ;;  %v13973_v32 = vpop.trf.xlu0 }
 0x648   : > { %10734 = vmatprep.mubr.msk.f32.mxu0 %vm504_vm9, %v3805_v10  ;;  %v5051_v10 = vld [vmem:[#allocation9 + $0x8] sm:$0xff] }
 0x649   : > { %5780 = vperm.xlu0 %12234, %v4795_v15   ;;  %v5050_v15 = vld [vmem:[#allocation9] sm:$0xff] }
 0x64a   : > { %5775 = vperm.xlu1 %12233, %v4794_v50  }
 0x64b   : > { %v3806_v23 = vpop.trf.xlu1  ;;  %v13976_v46 = vpop.trf.xlu0 }
 0x64c   : > { %10735 = vmatmul.mubr.msk.f32.gmra.mrb[28].mxu0 %vm504_vm9, %v3806_v23 }
 0x64d   : > { %5790 = vperm.xlu0 %12234, %v4797_v51  }
 0x64e   : > { %5785 = vperm.xlu1 %12233, %v4796_v13  }
 0x64f   : > { %v3807_v39 = vpop.trf.xlu1  ;;  %v13979_v58 = vpop.trf.xlu0 }
 0x650   : > { %10737 = vmatprep.mubr.msk.f32.mxu0 %vm504_vm9, %v3807_v39 }
 0x651   : > { %5800 = vperm.xlu0 %12234, %v4799_v36  }
 0x652   : > { %5795 = vperm.xlu1 %12233, %v4798_v12  }
 0x653   : > { %v3808_v41 = vpop.trf.xlu1  ;;  %v13982_v26 = vpop.trf.xlu0 }
 0x654   : > { %10738 = vmatmul.mubr.msk.f32.gmra.mrb[30].mxu0 %vm504_vm9, %v3808_v41 }
 0x655   : > { %10748 = vmatprep.mubr.msk.f32.mxu0 %vm504_vm9, %v13922_v54  ;;  %5810 = vperm.xlu0 %12234, %v4801_v21   ;;  %v4804_v54 = vld [vmem:[#allocation12 + $0x150] sm:$0xff] }
 0x656   : > { %5805 = vperm.xlu1 %12233, %v4800_v1  }
 0x657   : > { %v13987_v27 = vpop.trf.xlu0 }
 0x658   : > { %10749 = vmatmul.mubr.msk.f32.vlgmr.msra.gmra.mrb[0].mxu0 %vm504_vm9, %v13926_v18  ;;  %v4807_v18 = vld [vmem:[#allocation12 + $0x168] sm:$0xff] }
 0x659   : > { %10751 = vmatprep.mubr.msk.f32.mxu0 %vm504_vm9, %v13930_v11  ;;  %5820 = vperm.xlu0 %12234, %v4803_v29  }
 0x65a   : > { %5815 = vperm.xlu1 %12233, %v4802_v38   ;;  %11447 = vmatpush3.bf16.msra.mxu0 %v11444_v2  ;;  %v5053_v2 = vld [vmem:[#allocation9 + $0x18] sm:$0xff] }
 0x65b   : > { %v13993_v16 = vpop.trf.xlu0  ;;  %11449 = vmatprep.subr.bf16.mxu0 %v11448_v52 }
 0x65c   : > { %10752 = vmatmul.mubr.msk.f32.gmra.mrb[2].mxu0 %vm504_vm9, %v13934_v61  ;;  %v4809_v61 = vld [vmem:[#allocation12 + $0x178] sm:$0xff] }
 0x65d   : > { %10754 = vmatprep.mubr.msk.f32.mxu0 %vm504_vm9, %v13937_v59  ;;  %5830 = vperm.xlu0 %12234, %v4805_v34   ;;  %v4811_v59 = vld [vmem:[#allocation12 + $0x188] sm:$0xff] }
 0x65e   : > { %5825 = vperm.xlu1 %12233, %v4804_v54   ;;  %11451 = vmatpush3.bf16.msra.mxu0 %v11448_v52  ;;  %v5052_v34 = vld [vmem:[#allocation9 + $0x10] sm:$0xff] }
 0x65f   : > { %v4293_v11 = vpop.trf.xlu0 }
 0x660   : > { %10755 = vmatmul.mubr.msk.f32.gmra.mrb[4].mxu0 %vm504_vm9, %v13940_v49  ;;  %v4810_v49 = vld [vmem:[#allocation12 + $0x180] sm:$0xff] }
 0x661   : > { %10757 = vmatprep.mubr.msk.f32.mxu0 %vm504_vm9, %v13943_v42  ;;  %5840 = vperm.xlu0 %12234, %v4807_v18   ;;  %v4813_v42 = vld [vmem:[#allocation12 + $0x198] sm:$0xff] }
 0x662   : > { %5835 = vperm.xlu1 %12233, %v4806_v63  }
 0x663   : > { %v4294_v44 = vpop.trf.xlu0 }
 0x664   : > { %10758 = vmatmul.mubr.msk.f32.gmra.mrb[6].mxu0 %vm504_vm9, %v13946_v30 }
 0x665   : > { %10760 = vmatprep.mubr.msk.f32.mxu0 %vm504_vm9, %v13949_v3  ;;  %5850 = vperm.xlu0 %12234, %v4809_v61   ;;  %v4815_v3 = vld [vmem:[#allocation12 + $0x1a8] sm:$0xff]  ;;  %v11464_v61 = vpack.c.bf16 %v5053_v2, %v5052_v34 }
 0x666   : > { %5845 = vperm.xlu1 %12233, %v4808_v56  }
 0x667   : > { %v4295_v47 = vpop.trf.xlu0 }
 0x668   : > { %10761 = vmatmul.mubr.msk.f32.gmra.mrb[8].mxu0 %vm504_vm9, %v13952_v9  ;;  %v4817_v9 = vld [vmem:[#allocation12 + $0x1b8] sm:$0xff]  ;;  %v14043_v50 = vpop.permute.xlu1 %4860 }
 0x669   : > { %10763 = vmatprep.mubr.msk.f32.mxu0 %vm504_vm9, %v13955_v0  ;;  %5860 = vperm.xlu0 %12234, %v4811_v59   ;;  %v4819_v0 = vld [vmem:[#allocation12 + $0x1c8] sm:$0xff]  ;;  %v5054_v59 = vld [vmem:[#allocation9 + $0x20] sm:$0xff] }
 0x66a   : > { %5855 = vperm.xlu1 %12233, %v4810_v49  }
 0x66b   : > { %v4296_v30 = vpop.trf.xlu0 }
 0x66c   : > { %10764 = vmatmul.mubr.msk.f32.gmra.mrb[10].mxu0 %vm504_vm9, %v13958_v33  ;;  %v4820_v33 = vld [vmem:[#allocation12 + $0x1d0] sm:$0xff]  ;;  %v14045_v51 = vpop.permute.xlu1 %4870 }
 0x66d   : > { %10766 = vmatprep.mubr.msk.f32.mxu0 %vm504_vm9, %v13961_v8  ;;  %5870 = vperm.xlu0 %12234, %v4813_v42   ;;  %v4825_v8 = vld [vmem:[#allocation12 + $0x1f8] sm:$0xff] }
 0x66e   : > { %5865 = vperm.xlu1 %12233, %v4812_v40  }
 0x66f   : > { %v4297_v22 = vpop.trf.xlu0 }
 0x670   : > { %10767 = vmatmul.mubr.msk.f32.gmra.mrb[12].mxu0 %vm504_vm9, %v13964_v31  ;;  %v14047_v23 = vpop.permute.xlu1 %4875 }
 0x671   : > { %10769 = vmatprep.mubr.msk.f32.mxu0 %vm504_vm9, %v13967_v62  ;;  %5880 = vperm.xlu0 %12234, %v4815_v3   ;;  %v5095_v62 = vld [vmem:[#allocation9 + $0x60] sm:$0xff] }
 0x672   : > { %5875 = vperm.xlu1 %12233, %v4814_v55   ;;  %v11452_v28 = vpack.c.bf16 %v5096_v45, %v5095_v62 }
 0x673   : > { %v4298_v60 = vpop.trf.xlu0 }
 0x674   : > { %10770 = vmatmul.mubr.msk.f32.gmra.mrb[14].mxu0 %vm504_vm9, %v13970_v24  ;;  %11590 = vmatprep.subr.bf16.mxu1 %v11452_v28  ;;  %v5098_v24 = vld [vmem:[#allocation9 + $0x78] sm:$0xff] }
 0x675   : > { %10772 = vmatprep.mubr.msk.f32.mxu0 %vm504_vm9, %v13973_v32  ;;  %5890 = vperm.xlu0 %12234, %v4817_v9   ;;  %v11456_v4 = vpack.c.bf16 %v5098_v24, %v5097_v48  ;;  %v11460_v32 = vpack.c.bf16 %v5051_v10, %v5050_v15 }
 0x676   : > { %5885 = vperm.xlu1 %12233, %v4816_v14   ;;  %11453 = vmatprep.subr.bf16.mxu0 %v11452_v28  ;;  %v5057_v14 = vld [vmem:[#allocation9 + $0x38] sm:$0xff] }
 0x677   : > { %v4299_v6 = vpop.trf.xlu0  ;;  %11594 = vmatpush3.bf16.msra.mxu1 %v11452_v28  ;;  %11455 = vmatpush3.bf16.msra.mxu0 %v11452_v28 }
 0x678   : > { %10773 = vmatmul.mubr.msk.f32.gmra.mrb[16].mxu0 %vm504_vm9, %v13976_v46  ;;  %11591 = vmatprep.subr.bf16.mxu1 %v11456_v4  ;;  %v14049_v46 = vpop.permute.xlu1 %4880 }
 0x679   : > { %10775 = vmatprep.mubr.msk.f32.mxu0 %vm504_vm9, %v13979_v58  ;;  %5900 = vperm.xlu0 %12234, %v4819_v0  }
 0x67a   : > { %5895 = vperm.xlu1 %12233, %v4818_v7   ;;  %11457 = vmatprep.subr.bf16.mxu0 %v11456_v4 }
 0x67b   : > { %v4300_v53 = vpop.trf.xlu0  ;;  %11595 = vmatpush3.bf16.msra.mxu1 %v11456_v4  ;;  %11459 = vmatpush3.bf16.msra.mxu0 %v11456_v4 }
 0x67c   : > { %10776 = vmatmul.mubr.msk.f32.gmra.mrb[18].mxu0 %vm504_vm9, %v13982_v26  ;;  %11461 = vmatprep.subr.bf16.mxu1 %v11460_v32  ;;  %v14051_v13 = vpop.permute.xlu1 %4885 }
 0x67d   : > { %10778 = vmatprep.mubr.msk.f32.mxu0 %vm504_vm9, %v13987_v27  ;;  %5910 = vperm.xlu0 %12234, %v4821_v17  }
 0x67e   : > { %5905 = vperm.xlu1 %12233, %v4820_v33  }
 0x67f   : > { %v4301_v20 = vpop.trf.xlu0 }
 0x680   : > { %10779 = vmatmul.mubr.msk.f32.gmra.mrb[20].mxu0 %vm504_vm9, %v13993_v16  ;;  %v14053_v36 = vpop.permute.xlu1 %4890 }
 0x681   : > { %10781 = vmatprep.mubr.msk.f32.mxu0 %vm504_vm9, %v4293_v11  ;;  %5920 = vperm.xlu0 %12234, %v4823_v25  }
 0x682   : > { %5915 = vperm.xlu1 %12233, %v4822_v19  }
 0x683   : > { %v4302_v31 = vpop.trf.xlu0 }
 0x684   : > { %10782 = vmatmul.mubr.msk.f32.gmra.mrb[22].mxu0 %vm504_vm9, %v4294_v44  ;;  %v14055_v39 = vpop.permute.xlu1 %4895 }
 0x685   : > { %10784 = vmatprep.mubr.msk.f32.mxu0 %vm504_vm9, %v4295_v47  ;;  %5930 = vperm.xlu0 %12234, %v4825_v8   ;;  %v5055_v47 = vld [vmem:[#allocation9 + $0x28] sm:$0xff]  ;;  %v5966_v8 = vld [vmem:[#allocation9 + $0x80] sm:$0xff] }
 0x686   : > { %5925 = vperm.xlu1 %12233, %v4824_v5   ;;  %v11468_v3 = vpack.c.bf16 %v5055_v47, %v5054_v59  ;;  %v5967_v5 = vld [vmem:[#allocation9 + $0x88] sm:$0xff] }
 0x687   : > { %v14084_v52 = vpack.c.bf16 %v5967_v5, %v5966_v8 }
 0x688   : > { %10785 = vmatmul.mubr.msk.f32.gmra.mrb[24].mxu0 %vm504_vm9, %v4296_v30  ;;  %v14057_v58 = vpop.permute.xlu1 %4900 }
 0x689   : > { %10787 = vmatprep.mubr.msk.f32.mxu0 %vm504_vm9, %v4297_v22  ;;  %v5056_v22 = vld [vmem:[#allocation9 + $0x30] sm:$0xff] }
 0x68a   : > { %v11472_v25 = vpack.c.bf16 %v5057_v14, %v5056_v22 }
 0x68c   : > { %10788 = vmatmul.mubr.msk.f32.gmra.mrb[26].mxu0 %vm504_vm9, %v4298_v60  ;;  %v14061_v29 = vpop.permute.xlu1 %4905 }
 0x68d   : > { %10790 = vmatprep.mubr.msk.f32.mxu0 %vm504_vm9, %v4299_v6 }
 0x690   : > { %10791 = vmatmul.mubr.msk.f32.gmra.mrb[28].mxu0 %vm504_vm9, %v4300_v53  ;;  %v14065_v11 = vpop.permute.xlu1 %4910 }
 0x691   : > { %10793 = vmatprep.mubr.msk.f32.mxu0 %vm504_vm9, %v4301_v20 }
 0x694   : > { %10794 = vmatmul.mubr.msk.f32.gmra.mrb[30].mxu0 %vm504_vm9, %v4302_v31  ;;  %v14074_v0 = vpop.permute.xlu1 %4915 }
 0x698   : > { %v14081_v57 = vpop.permute.xlu1 %4920 }
 0x72b   : > { %v10750_v12 = vpop.f32.mrb[0].mxu0 }
 0x72c   : > { %v4657_v21 = vmax.f32 %v10750_v12, 0.0  ;;  %v4465_v41 = vpop.f32.mrb[1].mxu0 }
 0x72d   : > { %v4656_v26 = vmax.f32 %v4465_v41, 0.0 }
 0x72e   : > { %4730 = vst.msk [vmem:[#allocation3 + $0x28] sm:$0xff] %vm4688_vm0, %v4657_v21 }
 0x72f   : > { %4729 = vst.msk [vmem:[#allocation3 + $0x20] sm:$0xff] %vm4688_vm0, %v4656_v26  ;;  %v10753_v1 = vpop.f32.mrb[2].mxu0 }
 0x730   : > { %v4659_v27 = vmax.f32 %v10753_v1, 0.0  ;;  %v4475_v38 = vpop.f32.mrb[3].mxu0 }
 0x731   : > { %v4658_v43 = vmax.f32 %v4475_v38, 0.0 }
 0x732   : > { %4732 = vst.msk [vmem:[#allocation3 + $0x38] sm:$0xff] %vm4688_vm0, %v4659_v27 }
 0x733   : > { %4731 = vst.msk [vmem:[#allocation3 + $0x30] sm:$0xff] %vm4688_vm0, %v4658_v43  ;;  %v10756_v37 = vpop.f32.mrb[4].mxu0 }
 0x734   : > { %v4661_v16 = vmax.f32 %v10756_v37, 0.0  ;;  %v4485_v54 = vpop.f32.mrb[5].mxu0 }
 0x735   : > { %v4660_v18 = vmax.f32 %v4485_v54, 0.0  ;;  %v5061_v56 = vld [vmem:[#allocation3 + $0x28] sm:$0xff] }
 0x736   : > { %4734 = vst.msk [vmem:[#allocation3 + $0x48] sm:$0xff] %vm4688_vm0, %v4661_v16  ;;  %v5060_v63 = vld [vmem:[#allocation3 + $0x20] sm:$0xff] }
 0x737   : > { %4733 = vst.msk [vmem:[#allocation3 + $0x40] sm:$0xff] %vm4688_vm0, %v4660_v18  ;;  %v10759_v44 = vpop.f32.mrb[6].mxu0  ;;  %10815 = vmatprep.mubr.msk.f32.mxu1 %vm4688_vm0, %v5060_v63 }
 0x738   : > { %v4663_v49 = vmax.f32 %v10759_v44, 0.0  ;;  %v4495_v42 = vpop.f32.mrb[7].mxu0  ;;  %10816 = vmatmul.mubr.msk.f32.vlgmr.msra.gmra.mrb[0].mxu1 %vm4688_vm0, %v5061_v56 }
 0x739   : > { %v4662_v40 = vmax.f32 %v4495_v42, 0.0  ;;  %11463 = vmatpush3.bf16.msra.mxu1 %v11460_v32  ;;  %v5063_v9 = vld [vmem:[#allocation3 + $0x38] sm:$0xff]  ;;  %v14093_v32 = vpop.permute.xlu1 %4925 }
 0x73a   : > { %4736 = vst.msk [vmem:[#allocation3 + $0x58] sm:$0xff] %vm4688_vm0, %v4663_v49  ;;  %v5062_v30 = vld [vmem:[#allocation3 + $0x30] sm:$0xff]  ;;  %11465 = vmatprep.subr.bf16.mxu1 %v11464_v61 }
 0x73b   : > { %4735 = vst.msk [vmem:[#allocation3 + $0x50] sm:$0xff] %vm4688_vm0, %v4662_v40  ;;  %v10762_v55 = vpop.f32.mrb[8].mxu0  ;;  %10818 = vmatprep.mubr.msk.f32.mxu1 %vm4688_vm0, %v5062_v30 }
 0x73c   : > { %v4665_v7 = vmax.f32 %v10762_v55, 0.0  ;;  %v4505_v60 = vpop.f32.mrb[9].mxu0  ;;  %10819 = vmatmul.mubr.msk.f32.gmra.mrb[2].mxu1 %vm4688_vm0, %v5063_v9 }
 0x73d   : > { %v4664_v17 = vmax.f32 %v4505_v60, 0.0  ;;  %11467 = vmatpush3.bf16.msra.mxu1 %v11464_v61  ;;  %v5065_v19 = vld [vmem:[#allocation3 + $0x48] sm:$0xff]  ;;  %v14106_v34 = vpop.permute.xlu1 %4930 }
 0x73e   : > { %4738 = vst.msk [vmem:[#allocation3 + $0x68] sm:$0xff] %vm4688_vm0, %v4665_v7  ;;  %v5064_v33 = vld [vmem:[#allocation3 + $0x40] sm:$0xff]  ;;  %11469 = vmatprep.subr.bf16.mxu1 %v11468_v3 }
 0x73f   : > { %4737 = vst.msk [vmem:[#allocation3 + $0x60] sm:$0xff] %vm4688_vm0, %v4664_v17  ;;  %v10765_v6 = vpop.f32.mrb[10].mxu0  ;;  %10821 = vmatprep.mubr.msk.f32.mxu1 %vm4688_vm0, %v5064_v33 }
 0x740   : > { %v4667_v53 = vmax.f32 %v10765_v6, 0.0  ;;  %v4515_v20 = vpop.f32.mrb[11].mxu0  ;;  %10822 = vmatmul.mubr.msk.f32.gmra.mrb[4].mxu1 %vm4688_vm0, %v5065_v19 }
 0x741   : > { %v4666_v31 = vmax.f32 %v4515_v20, 0.0  ;;  %11471 = vmatpush3.bf16.msra.mxu1 %v11468_v3  ;;  %v5067_v45 = vld [vmem:[#allocation3 + $0x58] sm:$0xff]  ;;  %v14126_v47 = vpop.permute.xlu1 %4935 }
 0x742   : > { %4740 = vst.msk [vmem:[#allocation3 + $0x78] sm:$0xff] %vm4688_vm0, %v4667_v53  ;;  %v5066_v35 = vld [vmem:[#allocation3 + $0x50] sm:$0xff]  ;;  %11473 = vmatprep.subr.bf16.mxu1 %v11472_v25 }
 0x743   : > { %4739 = vst.msk [vmem:[#allocation3 + $0x70] sm:$0xff] %vm4688_vm0, %v4666_v31  ;;  %v10768_v62 = vpop.f32.mrb[12].mxu0  ;;  %10824 = vmatprep.mubr.msk.f32.mxu1 %vm4688_vm0, %v5066_v35 }
 0x744   : > { %v4669_v28 = vmax.f32 %v10768_v62, 0.0  ;;  %v4525_v48 = vpop.f32.mrb[13].mxu0  ;;  %10825 = vmatmul.mubr.msk.f32.gmra.mrb[6].mxu1 %vm4688_vm0, %v5067_v45  ;;  %v14164_v62 = vpop.permute.xlu0 %4865 }
 0x745   : > { %v4668_v24 = vmax.f32 %v4525_v48, 0.0  ;;  %11475 = vmatpush3.bf16.msra.mxu1 %v11472_v25  ;;  %v5069_v10 = vld [vmem:[#allocation3 + $0x68] sm:$0xff]  ;;  %v14140_v7 = vpop.permute.xlu1 %4940 }
 0x746   : > { %4742 = vst.msk [vmem:[#allocation3 + $0x88] sm:$0xff] %vm4688_vm0, %v4669_v28  ;;  %v5068_v4 = vld [vmem:[#allocation3 + $0x60] sm:$0xff]  ;;  %11477 = vmatprep.subr.bf16.mxu1 %v14084_v52  ;;  %15469 = vst [vmem:[#allocation23_spill] sm:$0xff] %v14140_v7 }
 0x747   : > { %4741 = vst.msk [vmem:[#allocation3 + $0x80] sm:$0xff] %vm4688_vm0, %v4668_v24  ;;  %v10771_v15 = vpop.f32.mrb[14].mxu0  ;;  %10827 = vmatprep.mubr.msk.f32.mxu1 %vm4688_vm0, %v5068_v4 }
 0x748   : > { %v4671_v12 = vmax.f32 %v10771_v15, 0.0  ;;  %v4535_v21 = vpop.f32.mrb[15].mxu0  ;;  %10828 = vmatmul.mubr.msk.f32.gmra.mrb[8].mxu1 %vm4688_vm0, %v5069_v10 }
 0x749   : > { %v4670_v41 = vmax.f32 %v4535_v21, 0.0  ;;  %v14102_v27 = vld [vmem:[#allocation3 + $0x78] sm:$0xff]  ;;  %v14160_v20 = vpop.permute.xlu1 %4945 }
 0x74a   : > { %4744 = vst.msk [vmem:[#allocation3 + $0x98] sm:$0xff] %vm4688_vm0, %v4671_v12  ;;  %v14097_v26 = vld [vmem:[#allocation3 + $0x70] sm:$0xff]  ;;  %15462 = vst [vmem:[#allocation18_spill] sm:$0xff] %v14102_v27 }
 0x74b   : > { %15461 = vst [vmem:[#allocation19_spill] sm:$0xff] %v14097_v26  ;;  %4743 = vst.msk [vmem:[#allocation3 + $0x90] sm:$0xff] %vm4688_vm0, %v4670_v41  ;;  %v10774_v1 = vpop.f32.mrb[16].mxu0  ;;  %10830 = vmatprep.mubr.msk.f32.mxu1 %vm4688_vm0, %v14097_v26  ;;  %v14181_v41 = vpop.permute.xlu0 %4955 }
 0x74c   : > { %v4673_v38 = vmax.f32 %v10774_v1, 0.0  ;;  %v4545_v43 = vpop.f32.mrb[17].mxu0  ;;  %10831 = vmatmul.mubr.msk.f32.gmra.mrb[10].mxu1 %vm4688_vm0, %v14102_v27  ;;  %15474 = vst [vmem:[#allocation31_spill] sm:$0xff] %v14160_v20  ;;  %15479 = vst [vmem:[#allocation36_spill] sm:$0xff] %v14181_v41 }
 0x74d   : > { %v4672_v37 = vmax.f32 %v4545_v43, 0.0  ;;  %v14114_v54 = vld [vmem:[#allocation3 + $0x88] sm:$0xff]  ;;  %v14176_v12 = vpop.permute.xlu1 %4950 }
 0x74e   : > { %4746 = vst.msk [vmem:[#allocation3 + $0xa8] sm:$0xff] %vm4688_vm0, %v4673_v38  ;;  %v14109_v2 = vld [vmem:[#allocation3 + $0x80] sm:$0xff]  ;;  %15464 = vst [vmem:[#allocation21_spill] sm:$0xff] %v14114_v54 }
 0x74f   : > { %15463 = vst [vmem:[#allocation20_spill] sm:$0xff] %v14109_v2  ;;  %4745 = vst.msk [vmem:[#allocation3 + $0xa0] sm:$0xff] %vm4688_vm0, %v4672_v37  ;;  %v10777_v16 = vpop.f32.mrb[18].mxu0  ;;  %10833 = vmatprep.mubr.msk.f32.mxu1 %vm4688_vm0, %v14109_v2 }
 0x750   : > { %v4675_v18 = vmax.f32 %v10777_v16, 0.0  ;;  %v4555_v63 = vpop.f32.mrb[19].mxu0  ;;  %10834 = vmatmul.mubr.msk.f32.gmra.mrb[12].mxu1 %vm4688_vm0, %v14114_v54  ;;  %15477 = vst [vmem:[#allocation34_spill] sm:$0xff] %v14176_v12 }
 0x751   : > { %v4674_v61 = vmax.f32 %v4555_v63, 0.0  ;;  %v14124_v59 = vld [vmem:[#allocation3 + $0x98] sm:$0xff] }
 0x752   : > { %4748 = vst.msk [vmem:[#allocation3 + $0xb8] sm:$0xff] %vm4688_vm0, %v4675_v18  ;;  %v14119_v44 = vld [vmem:[#allocation3 + $0x90] sm:$0xff]  ;;  %15466 = vst [vmem:[#allocation26_spill] sm:$0xff] %v14124_v59 }
 0x753   : > { %15465 = vst [vmem:[#allocation24_spill] sm:$0xff] %v14119_v44  ;;  %4747 = vst.msk [vmem:[#allocation3 + $0xb0] sm:$0xff] %vm4688_vm0, %v4674_v61  ;;  %v10780_v56 = vpop.f32.mrb[20].mxu0  ;;  %10836 = vmatprep.mubr.msk.f32.mxu1 %vm4688_vm0, %v14119_v44  ;;  %v4826_v61 = vld [vmem:[#allocation3 + $0xf] sm:$0xff] }
 0x754   : > { %v4677_v49 = vmax.f32 %v10780_v56, 0.0  ;;  %v4565_v42 = vpop.f32.mrb[21].mxu0  ;;  %10837 = vmatmul.mubr.msk.f32.gmra.mrb[14].mxu1 %vm4688_vm0, %v14124_v59  ;;  %v14198_v56 = vpop.permute.xlu1 %4960 }
 0x755   : > { %v4676_v40 = vmax.f32 %v4565_v42, 0.0  ;;  %v14136_v55 = vld [vmem:[#allocation3 + $0xa8] sm:$0xff]  ;;  %15483 = vst [vmem:[#allocation40_spill] sm:$0xff] %v14198_v56  ;;  %v14202_v42 = vpop.permute.xlu0 %4965 }
 0x756   : > { %4750 = vst.msk [vmem:[#allocation3 + $0xc8] sm:$0xff] %vm4688_vm0, %v4677_v49  ;;  %v14131_v30 = vld [vmem:[#allocation3 + $0xa0] sm:$0xff]  ;;  %15468 = vst [vmem:[#allocation22_spill] sm:$0xff] %v14136_v55  ;;  %v4827_v49 = vld [vmem:[#allocation3 + $0x17] sm:$0xff] }
 0x757   : > { %15467 = vst [vmem:[#allocation25_spill] sm:$0xff] %v14131_v30  ;;  %4749 = vst.msk [vmem:[#allocation3 + $0xc0] sm:$0xff] %vm4688_vm0, %v4676_v40  ;;  %v10783_v3 = vpop.f32.mrb[22].mxu0  ;;  %10839 = vmatprep.mubr.msk.f32.mxu1 %vm4688_vm0, %v14131_v30 }
 0x758   : > { %v4679_v9 = vmax.f32 %v10783_v3, 0.0  ;;  %v4575_v22 = vpop.f32.mrb[23].mxu0  ;;  %10840 = vmatmul.mubr.msk.f32.gmra.mrb[16].mxu1 %vm4688_vm0, %v14136_v55  ;;  %15484 = vst [vmem:[#allocation41_spill] sm:$0xff] %v14202_v42  ;;  %v5018_v3 = vmul.f32 %v14043_v50, %v4826_v61  ;;  %v14327_v55 = vld [vmem:[#allocation3 + $0xa7] sm:$0xff] }
 0x759   : > { %v4678_v14 = vmax.f32 %v4575_v22, 0.0  ;;  %v14148_v33 = vld [vmem:[#allocation3 + $0xb8] sm:$0xff]  ;;  %v5968_v22 = vld [vmem:[#allocation9 + $0x90] sm:$0xff]  ;;  %v5037_v59 = vmul.f32 %v14181_v41, %v14327_v55 }
 0x75a   : > { %4752 = vst.msk [vmem:[#allocation3 + $0xd8] sm:$0xff] %vm4688_vm0, %v4679_v9  ;;  %v14143_v60 = vld [vmem:[#allocation3 + $0xb0] sm:$0xff]  ;;  %15471 = vst [vmem:[#allocation28_spill] sm:$0xff] %v14148_v33 }
 0x75b   : > { %15470 = vst [vmem:[#allocation27_spill] sm:$0xff] %v14143_v60  ;;  %4751 = vst.msk [vmem:[#allocation3 + $0xd0] sm:$0xff] %vm4688_vm0, %v4678_v14  ;;  %v10786_v17 = vpop.f32.mrb[24].mxu0  ;;  %10842 = vmatprep.mubr.msk.f32.mxu1 %vm4688_vm0, %v14143_v60  ;;  %v5969_v14 = vld [vmem:[#allocation9 + $0x98] sm:$0xff]  ;;  %v14330_v30 = vld [vmem:[#allocation3 + $0xaf] sm:$0xff] }
 0x75c   : > { %v4681_v25 = vmax.f32 %v10786_v17, 0.0  ;;  %v4585_v6 = vpop.f32.mrb[25].mxu0  ;;  %10843 = vmatmul.mubr.msk.f32.gmra.mrb[18].mxu1 %vm4688_vm0, %v14148_v33  ;;  %v5019_v17 = vmul.f32 %v14164_v62, %v4827_v49  ;;  %v14239_v49 = vld [vmem:[#allocation3 + $0x3f] sm:$0xff]  ;;  %15499 = vst [vmem:[#allocation56_spill] sm:$0xff] %v14330_v30  ;;  %v5038_v44 = vmul.f32 %v14198_v56, %v14330_v30  ;;  %v14341_v54 = vld [vmem:[#allocation3 + $0xb7] sm:$0xff] }
 0x75d   : > { %v4680_v19 = vmax.f32 %v4585_v6, 0.0  ;;  %v14158_v53 = vld [vmem:[#allocation3 + $0xc8] sm:$0xff]  ;;  %v14217_v6 = vpop.permute.xlu1 %4970  ;;  %v14318_v33 = vld [vmem:[#allocation3 + $0x9f] sm:$0xff]  ;;  %15502 = vst [vmem:[#allocation59_spill] sm:$0xff] %v14341_v54 }
 0x75e   : > { %4754 = vst.msk [vmem:[#allocation3 + $0xe8] sm:$0xff] %vm4688_vm0, %v4681_v25  ;;  %v14153_v8 = vld [vmem:[#allocation3 + $0xc0] sm:$0xff]  ;;  %15473 = vst [vmem:[#allocation30_spill] sm:$0xff] %v14158_v53 }
 0x75f   : > { %15472 = vst [vmem:[#allocation29_spill] sm:$0xff] %v14153_v8  ;;  %4753 = vst.msk [vmem:[#allocation3 + $0xe0] sm:$0xff] %vm4688_vm0, %v4680_v19  ;;  %v10789_v5 = vpop.f32.mrb[26].mxu0  ;;  %10845 = vmatprep.mubr.msk.f32.mxu1 %vm4688_vm0, %v14153_v8  ;;  %v14214_v25 = vld [vmem:[#allocation3 + $0x1f] sm:$0xff]  ;;  %v11480_v19 = vpack.c.bf16 %v5969_v14, %v5968_v22  ;;  %v5024_v14 = vmul.f32 %v14053_v36, %v14239_v49  ;;  %v14351_v27 = vld [vmem:[#allocation3 + $0xc7] sm:$0xff] }
 0x760   : > { %v4683_v31 = vmax.f32 %v10789_v5, 0.0  ;;  %v4595_v35 = vpop.f32.mrb[27].mxu0  ;;  %10846 = vmatmul.mubr.msk.f32.gmra.mrb[20].mxu1 %vm4688_vm0, %v14158_v53  ;;  %15487 = vst [vmem:[#allocation44_spill] sm:$0xff] %v14217_v6  ;;  %v14219_v5 = vpop.permute.xlu0 %4975  ;;  %v14313_v53 = vld [vmem:[#allocation3 + $0x97] sm:$0xff]  ;;  %v14344_v2 = vld [vmem:[#allocation3 + $0xbf] sm:$0xff]  ;;  %15504 = vst [vmem:[#allocation61_spill] sm:$0xff] %v14351_v27 }
 0x761   : > { %v4682_v45 = vmax.f32 %v4595_v35, 0.0  ;;  %v14172_v24 = vld [vmem:[#allocation3 + $0xd8] sm:$0xff]  ;;  %15488 = vst [vmem:[#allocation45_spill] sm:$0xff] %v14219_v5  ;;  %v14223_v35 = vld [vmem:[#allocation3 + $0x27] sm:$0xff]  ;;  %v14236_v61 = vpop.permute.xlu1 %4980  ;;  %15503 = vst [vmem:[#allocation60_spill] sm:$0xff] %v14344_v2 }
 0x762   : > { %4756 = vst.msk [vmem:[#allocation3 + $0xf8] sm:$0xff] %vm4688_vm0, %v4683_v31  ;;  %v14167_v28 = vld [vmem:[#allocation3 + $0xd0] sm:$0xff]  ;;  %15476 = vst [vmem:[#allocation33_spill] sm:$0xff] %v14172_v24  ;;  %v5020_v31 = vmul.f32 %v14045_v51, %v14214_v25 }
 0x763   : > { %15475 = vst [vmem:[#allocation32_spill] sm:$0xff] %v14167_v28  ;;  %4755 = vst.msk [vmem:[#allocation3 + $0xf0] sm:$0xff] %vm4688_vm0, %v4682_v45  ;;  %v10792_v48 = vpop.f32.mrb[28].mxu0  ;;  %10848 = vmatprep.mubr.msk.f32.mxu1 %vm4688_vm0, %v14167_v28  ;;  %v5970_v45 = vld [vmem:[#allocation9 + $0xa0] sm:$0xff]  ;;  %v14306_v28 = vld [vmem:[#allocation3 + $0x8f] sm:$0xff] }
 0x764   : > { %v4685_v4 = vmax.f32 %v10792_v48, 0.0  ;;  %v4605_v15 = vpop.f32.mrb[29].mxu0  ;;  %10849 = vmatmul.mubr.msk.f32.gmra.mrb[22].mxu1 %vm4688_vm0, %v14172_v24  ;;  %v5971_v48 = vld [vmem:[#allocation9 + $0xa8] sm:$0xff]  ;;  %15489 = vst [vmem:[#allocation46_spill] sm:$0xff] %v14236_v61 }
 0x765   : > { %v4684_v10 = vmax.f32 %v4605_v15, 0.0  ;;  %v14186_v38 = vld [vmem:[#allocation3 + $0xe8] sm:$0xff]  ;;  %v5021_v15 = vmul.f32 %v14047_v23, %v14223_v35 }
 0x766   : > { %4758 = vst.msk [vmem:[#allocation3 + $0x108] sm:$0xff] %vm4688_vm0, %v4685_v4  ;;  %v14179_v21 = vld [vmem:[#allocation3 + $0xe0] sm:$0xff]  ;;  %15480 = vst [vmem:[#allocation37_spill] sm:$0xff] %v14186_v38  ;;  %v14226_v4 = vld [vmem:[#allocation3 + $0x2f] sm:$0xff] }
 0x767   : > { %15478 = vst [vmem:[#allocation35_spill] sm:$0xff] %v14179_v21  ;;  %4757 = vst.msk [vmem:[#allocation3 + $0x100] sm:$0xff] %vm4688_vm0, %v4684_v10  ;;  %v10795_v1 = vpop.f32.mrb[30].mxu0  ;;  %10851 = vmatprep.mubr.msk.f32.mxu1 %vm4688_vm0, %v14179_v21  ;;  %v11484_v10 = vpack.c.bf16 %v5971_v48, %v5970_v45  ;;  %v6393_v45 = vld [vmem:[#allocation9 + $0xc8] sm:$0xff] }
 0x768   : > { %v4687_v43 = vmax.f32 %v10795_v1, 0.0  ;;  %v4615_v37 = vpop.f32.mrb[31].mxu0  ;;  %10852 = vmatmul.mubr.msk.f32.gmra.mrb[24].mxu1 %vm4688_vm0, %v14186_v38  ;;  %v5022_v1 = vmul.f32 %v14049_v46, %v14226_v4  ;;  %v14251_v48 = vld [vmem:[#allocation3 + $0x4f] sm:$0xff]  ;;  %v14303_v24 = vld [vmem:[#allocation3 + $0x87] sm:$0xff] }
 0x769   : > { %v4686_v16 = vmax.f32 %v4615_v37, 0.0  ;;  %v14196_v63 = vld [vmem:[#allocation3 + $0xf8] sm:$0xff]  ;;  %v5972_v37 = vld [vmem:[#allocation9 + $0xb0] sm:$0xff] }
 0x76a   : > { %4760 = vst.msk [vmem:[#allocation3 + $0x118] sm:$0xff] %vm4688_vm0, %v4687_v43  ;;  %v14191_v18 = vld [vmem:[#allocation3 + $0xf0] sm:$0xff]  ;;  %15482 = vst [vmem:[#allocation39_spill] sm:$0xff] %v14196_v63 }
 0x76b   : > { %15481 = vst [vmem:[#allocation38_spill] sm:$0xff] %v14191_v18  ;;  %4759 = vst.msk [vmem:[#allocation3 + $0x110] sm:$0xff] %vm4688_vm0, %v4686_v16  ;;  %10854 = vmatprep.mubr.msk.f32.mxu1 %vm4688_vm0, %v14191_v18  ;;  %v14234_v43 = vld [vmem:[#allocation3 + $0x37] sm:$0xff]  ;;  %v14292_v18 = vld [vmem:[#allocation3 + $0x7f] sm:$0xff] }
 0x76c   : > { %10855 = vmatmul.mubr.msk.f32.gmra.mrb[26].mxu1 %vm4688_vm0, %v14196_v63  ;;  %v5973_v16 = vld [vmem:[#allocation9 + $0xb8] sm:$0xff]  ;;  %v5032_v21 = vmul.f32 %v14106_v34, %v14292_v18  ;;  %v14356_v56 = vld [vmem:[#allocation3 + $0xcf] sm:$0xff] }
 0x76d   : > { %v14209_v9 = vld [vmem:[#allocation3 + $0x108] sm:$0xff]  ;;  %v11488_v22 = vpack.c.bf16 %v5973_v16, %v5972_v37  ;;  %v5026_v16 = vmul.f32 %v14057_v58, %v14251_v48  ;;  %v14289_v63 = vld [vmem:[#allocation3 + $0x77] sm:$0xff]  ;;  %15506 = vst [vmem:[#allocation63_spill] sm:$0xff] %v14356_v56 }
 0x76e   : > { %v14204_v40 = vld [vmem:[#allocation3 + $0x100] sm:$0xff]  ;;  %15486 = vst [vmem:[#allocation43_spill] sm:$0xff] %v14209_v9  ;;  %v5031_v38 = vmul.f32 %v14093_v32, %v14289_v63 }
 0x76f   : > { %15485 = vst [vmem:[#allocation42_spill] sm:$0xff] %v14204_v40  ;;  %10857 = vmatprep.mubr.msk.f32.mxu1 %vm4688_vm0, %v14204_v40 }
 0x770   : > { %10858 = vmatmul.mubr.msk.f32.gmra.mrb[28].mxu1 %vm4688_vm0, %v14209_v9  ;;  %v14264_v9 = vld [vmem:[#allocation3 + $0x57] sm:$0xff] }
 0x771   : > { %10876 = vmatprep.mubr.msk.f32.mxu1 %vm4688_vm0, %v5018_v3  ;;  %v5023_v3 = vmul.f32 %v14051_v13, %v14234_v43 }
 0x774   : > { %10877 = vmatmul.mubr.msk.f32.vlgmr.msra.gmra.mrb[30].mxu1 %vm4688_vm0, %v5019_v17  ;;  %v14248_v17 = vld [vmem:[#allocation3 + $0x47] sm:$0xff] }
 0x775   : > { %11479 = vmatpush3.bf16.msra.mxu1 %v14084_v52  ;;  %10879 = vmatprep.mubr.msk.f32.mxu1 %vm4688_vm0, %v5020_v31  ;;  %v14241_v52 = vpop.permute.xlu0 %4985  ;;  %v6392_v31 = vld [vmem:[#allocation9 + $0xc0] sm:$0xff] }
 0x776   : > { %11481 = vmatprep.subr.bf16.mxu1 %v11480_v19  ;;  %15490 = vst [vmem:[#allocation47_spill] sm:$0xff] %v14241_v52 }
 0x778   : > { %10880 = vmatmul.mubr.msk.f32.gmra.mrb[0].mxu1 %vm4688_vm0, %v5021_v15  ;;  %v5025_v15 = vmul.f32 %v14055_v39, %v14248_v17 }
 0x779   : > { %10882 = vmatprep.mubr.msk.f32.mxu1 %vm4688_vm0, %v5022_v1  ;;  %11483 = vmatpush3.bf16.msra.mxu1 %v11480_v19  ;;  %v14254_v19 = vpop.permute.xlu1 %4990  ;;  %v14258_v1 = vpack.c.bf16 %v6393_v45, %v6392_v31  ;;  %v14260_v37 = vpop.permute.xlu0 %4995  ;;  %v14275_v31 = vld [vmem:[#allocation3 + $0x67] sm:$0xff] }
 0x77a   : > { %11485 = vmatprep.subr.bf16.mxu1 %v11484_v10  ;;  %15491 = vst [vmem:[#allocation48_spill] sm:$0xff] %v14254_v19  ;;  %15492 = vst [vmem:[#allocation49_spill] sm:$0xff] %v14260_v37 }
 0x77c   : > { %10883 = vmatmul.mubr.msk.f32.gmra.mrb[2].mxu1 %vm4688_vm0, %v5023_v3  ;;  %v14267_v3 = vld [vmem:[#allocation3 + $0x5f] sm:$0xff] }
 0x77d   : > { %10885 = vmatprep.mubr.msk.f32.mxu1 %vm4688_vm0, %v5024_v14  ;;  %11487 = vmatpush3.bf16.msra.mxu1 %v11484_v10  ;;  %v5027_v10 = vmul.f32 %v14061_v29, %v14264_v9  ;;  %v5028_v14 = vmul.f32 %v14065_v11, %v14267_v3  ;;  %v14277_v45 = vpop.permute.xlu1 %5000  ;;  %v14282_v40 = vpop.permute.xlu0 %5005 }
 0x77e   : > { %11489 = vmatprep.subr.bf16.mxu1 %v11488_v22  ;;  %15493 = vst [vmem:[#allocation50_spill] sm:$0xff] %v14277_v45  ;;  %15494 = vst [vmem:[#allocation51_spill] sm:$0xff] %v14282_v40 }
 0x780   : > { %10886 = vmatmul.mubr.msk.f32.gmra.mrb[4].mxu1 %vm4688_vm0, %v5025_v15  ;;  %v14280_v15 = vld [vmem:[#allocation3 + $0x6f] sm:$0xff] }
 0x781   : > { %10888 = vmatprep.mubr.msk.f32.mxu1 %vm4688_vm0, %v5026_v16  ;;  %11491 = vmatpush3.bf16.msra.mxu1 %v11488_v22  ;;  %v5029_v22 = vmul.f32 %v14074_v0, %v14275_v31  ;;  %v5030_v16 = vmul.f32 %v14081_v57, %v14280_v15 }
 0x782   : > { %11493 = vmatprep.subr.bf16.mxu1 %v14258_v1 }
 0x784   : > { %10889 = vmatmul.mubr.msk.f32.gmra.mrb[6].mxu1 %vm4688_vm0, %v5027_v10  ;;  %v14295_v10 = vpop.permute.xlu1 %5010 }
 0x785   : > { %10891 = vmatprep.mubr.msk.f32.mxu1 %vm4688_vm0, %v5028_v14  ;;  %15495 = vst [vmem:[#allocation52_spill] sm:$0xff] %v14295_v10  ;;  %v14299_v14 = vpop.permute.xlu0 %5015 }
 0x786   : > { %15496 = vst [vmem:[#allocation53_spill] sm:$0xff] %v14299_v14 }
 0x788   : > { %10892 = vmatmul.mubr.msk.f32.gmra.mrb[8].mxu1 %vm4688_vm0, %v5029_v22  ;;  %v5033_v22 = vmul.f32 %v14126_v47, %v14303_v24  ;;  %v14315_v8 = vpop.permute.xlu1 %5775 }
 0x789   : > { %10894 = vmatprep.mubr.msk.f32.mxu1 %vm4688_vm0, %v5030_v16  ;;  %v5034_v16 = vmul.f32 %v14140_v7, %v14306_v28  ;;  %15497 = vst [vmem:[#allocation54_spill] sm:$0xff] %v14315_v8  ;;  %v14320_v60 = vpop.permute.xlu0 %5780 }
 0x78a   : > { %15498 = vst [vmem:[#allocation55_spill] sm:$0xff] %v14320_v60 }
 0x78c   : > { %10895 = vmatmul.mubr.msk.f32.gmra.mrb[10].mxu1 %vm4688_vm0, %v5031_v38  ;;  %v5036_v38 = vmul.f32 %v14176_v12, %v14318_v33 }
 0x78d   : > { %10897 = vmatprep.mubr.msk.f32.mxu1 %vm4688_vm0, %v5032_v21  ;;  %v5035_v21 = vmul.f32 %v14160_v20, %v14313_v53 }
 0x790   : > { %10898 = vmatmul.mubr.msk.f32.gmra.mrb[12].mxu1 %vm4688_vm0, %v5033_v22  ;;  %v14333_v22 = vpop.permute.xlu1 %5785 }
 0x791   : > { %10900 = vmatprep.mubr.msk.f32.mxu1 %vm4688_vm0, %v5034_v16  ;;  %15500 = vst [vmem:[#allocation57_spill] sm:$0xff] %v14333_v22  ;;  %v14337_v16 = vpop.permute.xlu0 %5790 }
 0x792   : > { %15501 = vst [vmem:[#allocation58_spill] sm:$0xff] %v14337_v16 }
 0x794   : > { %10901 = vmatmul.mubr.msk.f32.gmra.mrb[14].mxu1 %vm4688_vm0, %v5035_v21  ;;  %v5039_v21 = vmul.f32 %v14202_v42, %v14341_v54  ;;  %v14353_v26 = vpop.permute.xlu1 %5795  ;;  %v14365_v42 = vld [vmem:[#allocation3 + $0xd7] sm:$0xff] }
 0x795   : > { %10903 = vmatprep.mubr.msk.f32.mxu1 %vm4688_vm0, %v5036_v38  ;;  %v5040_v38 = vmul.f32 %v14217_v6, %v14344_v2  ;;  %15505 = vst [vmem:[#allocation62_spill] sm:$0xff] %v14353_v26  ;;  %v14358_v41 = vpop.permute.xlu0 %5800  ;;  %15508 = vst [vmem:[#allocation65_spill] sm:$0xff] %v14365_v42  ;;  %v14368_v6 = vld [vmem:[#allocation3 + $0xdf] sm:$0xff]  ;;  %v5043_v2 = vmul.f32 %v14241_v52, %v14365_v42  ;;  %v14389_v52 = vld [vmem:[#allocation3 + $0xf7] sm:$0xff] }
 0x796   : > { %15507 = vst [vmem:[#allocation64_spill] sm:$0xff] %v14358_v41  ;;  %15509 = vst [vmem:[#allocation66_spill] sm:$0xff] %v14368_v6  ;;  %v14426_v54 = vld [vmem:[#allocation3 + $0x31] sm:$0xff] }
 0x797   : > { %15513 = vst [vmem:[#allocation70_spill] sm:$0xff] %v14389_v52  ;;  %15521 = vst [vmem:[#allocation78_spill] sm:$0xff] %v14426_v54 }
 0x798   : > { %10904 = vmatmul.mubr.msk.f32.gmra.mrb[16].mxu1 %vm4688_vm0, %v5037_v59  ;;  %v5042_v59 = vmul.f32 %v14236_v61, %v14356_v56  ;;  %v14382_v61 = vld [vmem:[#allocation3 + $0xef] sm:$0xff] }
 0x799   : > { %10906 = vmatprep.mubr.msk.f32.mxu1 %vm4688_vm0, %v5038_v44  ;;  %v5041_v44 = vmul.f32 %v14219_v5, %v14351_v27  ;;  %v5044_v5 = vmul.f32 %v14254_v19, %v14368_v6  ;;  %v14379_v27 = vld [vmem:[#allocation3 + $0xe7] sm:$0xff]  ;;  %15512 = vst [vmem:[#allocation69_spill] sm:$0xff] %v14382_v61  ;;  %v14394_v19 = vld [vmem:[#allocation3 + $0xff] sm:$0xff] }
 0x79a   : > { %15511 = vst [vmem:[#allocation68_spill] sm:$0xff] %v14379_v27  ;;  %15515 = vst [vmem:[#allocation72_spill] sm:$0xff] %v14394_v19 }
 0x79c   : > { %10907 = vmatmul.mubr.msk.f32.gmra.mrb[18].mxu1 %vm4688_vm0, %v5039_v21  ;;  %v14371_v21 = vpop.permute.xlu1 %5805 }
 0x79d   : > { %10909 = vmatprep.mubr.msk.f32.mxu1 %vm4688_vm0, %v5040_v38  ;;  %15510 = vst [vmem:[#allocation67_spill] sm:$0xff] %v14371_v21  ;;  %v14375_v38 = vpop.permute.xlu0 %5810 }
 0x7a0   : > { %10910 = vmatmul.mubr.msk.f32.gmra.mrb[20].mxu1 %vm4688_vm0, %v5041_v44  ;;  %v5045_v44 = vmul.f32 %v14260_v37, %v14379_v27  ;;  %v14391_v42 = vpop.permute.xlu1 %5815  ;;  %v14403_v37 = vld [vmem:[#allocation3 + $0x107] sm:$0xff]  ;;  %v5742_v27 = vld [vmem:[#allocation3 + $0x19] sm:$0xff] }
 0x7a1   : > { %10912 = vmatprep.mubr.msk.f32.mxu1 %vm4688_vm0, %v5042_v59  ;;  %v5046_v59 = vmul.f32 %v14277_v45, %v14382_v61  ;;  %15514 = vst [vmem:[#allocation71_spill] sm:$0xff] %v14391_v42  ;;  %v14396_v6 = vpop.permute.xlu0 %5820  ;;  %15517 = vst [vmem:[#allocation74_spill] sm:$0xff] %v14403_v37  ;;  %v5741_v45 = vld [vmem:[#allocation3 + $0x11] sm:$0xff]  ;;  %v5049_v61 = vmul.f32 %v14299_v14, %v14403_v37 }
 0x7a2   : > { %15516 = vst [vmem:[#allocation73_spill] sm:$0xff] %v14396_v6 }
 0x7a4   : > { %10913 = vmatmul.mubr.msk.f32.gmra.mrb[22].mxu1 %vm4688_vm0, %v5043_v2  ;;  %v5047_v2 = vmul.f32 %v14282_v40, %v14389_v52  ;;  %v6394_v40 = vld [vmem:[#allocation9 + $0xd0] sm:$0xff]  ;;  %v6395_v52 = vld [vmem:[#allocation9 + $0xd8] sm:$0xff] }
 0x7a5   : > { %10915 = vmatprep.mubr.msk.f32.mxu1 %vm4688_vm0, %v5044_v5  ;;  %v5048_v5 = vmul.f32 %v14295_v10, %v14394_v19  ;;  %v14412_v56 = vpop.permute.xlu0 %5830  ;;  %v14415_v10 = vld [vmem:[#allocation3 + $0x21] sm:$0xff]  ;;  %v14419_v19 = vld [vmem:[#allocation3 + $0x29] sm:$0xff] }
 0x7a6   : > { %15519 = vst [vmem:[#allocation76_spill] sm:$0xff] %v14412_v56  ;;  %v5935_v14 = vmul.f32 %v14333_v22, %v14415_v10  ;;  %v6398_v22 = vld [vmem:[#allocation9 + $0xf0] sm:$0xff] }
 0x7a8   : > { %10916 = vmatmul.mubr.msk.f32.gmra.mrb[24].mxu1 %vm4688_vm0, %v5045_v44  ;;  %v14407_v44 = vpop.permute.xlu1 %5825 }
 0x7a9   : > { %10918 = vmatprep.mubr.msk.f32.mxu1 %vm4688_vm0, %v5046_v59  ;;  %15518 = vst [vmem:[#allocation75_spill] sm:$0xff] %v14407_v44  ;;  %v5933_v59 = vmul.f32 %v14315_v8, %v5741_v45  ;;  %v6396_v45 = vld [vmem:[#allocation9 + $0xe0] sm:$0xff]  ;;  %v6397_v8 = vld [vmem:[#allocation9 + $0xe8] sm:$0xff] }
 0x7ac   : > { %10919 = vmatmul.mubr.msk.f32.gmra.mrb[26].mxu1 %vm4688_vm0, %v5047_v2  ;;  %v5934_v2 = vmul.f32 %v14320_v60, %v5742_v27  ;;  %v14423_v37 = vpop.permute.xlu1 %5835  ;;  %v5936_v27 = vmul.f32 %v14419_v19, %v14337_v16  ;;  %v14439_v60 = vld [vmem:[#allocation3 + $0x41] sm:$0xff] }
 0x7ad   : > { %10921 = vmatprep.mubr.msk.f32.mxu1 %vm4688_vm0, %v5048_v5  ;;  %v11496_v5 = vpack.c.bf16 %v6395_v52, %v6394_v40  ;;  %15520 = vst [vmem:[#allocation77_spill] sm:$0xff] %v14423_v37  ;;  %v11500_v40 = vpack.c.bf16 %v6397_v8, %v6396_v45  ;;  %v14434_v52 = vld [vmem:[#allocation3 + $0x39] sm:$0xff]  ;;  %15523 = vst [vmem:[#allocation80_spill] sm:$0xff] %v14439_v60  ;;  %v14446_v45 = vld [vmem:[#allocation3 + $0x49] sm:$0xff] }
 0x7b0   : > { %10922 = vmatmul.mubr.msk.f32.gmra.mrb[28].mxu1 %vm4688_vm0, %v5049_v61  ;;  %v14428_v61 = vpop.permute.xlu0 %5840 }
 0x7b1   : > { %10940 = vmatprep.mubr.msk.f32.mxu1 %vm4688_vm0, %v5933_v59  ;;  %15522 = vst [vmem:[#allocation79_spill] sm:$0xff] %v14428_v61  ;;  %v5937_v59 = vmul.f32 %v14353_v26, %v14426_v54  ;;  %v5939_v26 = vmul.f32 %v14371_v21, %v14439_v60  ;;  %v6787_v54 = vld [vmem:[#allocation9 + $0x108] sm:$0xff] }
 0x7b4   : > { %10941 = vmatmul.mubr.msk.f32.vlgmr.msra.gmra.mrb[30].mxu1 %vm4688_vm0, %v5934_v2  ;;  %v6399_v2 = vld [vmem:[#allocation9 + $0xf8] sm:$0xff]  ;;  %v14448_v16 = vpop.permute.xlu0 %5850 }
 0x7b5   : > { %11495 = vmatpush3.bf16.msra.mxu1 %v14258_v1  ;;  %10943 = vmatprep.mubr.msk.f32.mxu1 %vm4688_vm0, %v5935_v14  ;;  %v14442_v1 = vpop.permute.xlu1 %5845  ;;  %v5938_v14 = vmul.f32 %v14434_v52, %v14358_v41  ;;  %v11504_v8 = vpack.c.bf16 %v6399_v2, %v6398_v22  ;;  %15525 = vst [vmem:[#allocation82_spill] sm:$0xff] %v14448_v16  ;;  %v14460_v2 = vld [vmem:[#allocation3 + $0x59] sm:$0xff] }
 0x7b6   : > { %11497 = vmatprep.subr.bf16.mxu1 %v11496_v5  ;;  %15524 = vst [vmem:[#allocation81_spill] sm:$0xff] %v14442_v1 }
 0x7b8   : > { %10944 = vmatmul.mubr.msk.f32.gmra.mrb[0].mxu1 %vm4688_vm0, %v5936_v27  ;;  %v6786_v27 = vld [vmem:[#allocation9 + $0x100] sm:$0xff]  ;;  %v14469_v60 = vpop.permute.xlu0 %5860 }
 0x7b9   : > { %10946 = vmatprep.mubr.msk.f32.mxu1 %vm4688_vm0, %v5937_v59  ;;  %11499 = vmatpush3.bf16.msra.mxu1 %v11496_v5  ;;  %v14453_v59 = vld [vmem:[#allocation3 + $0x51] sm:$0xff]  ;;  %v5940_v5 = vmul.f32 %v14446_v45, %v14375_v38  ;;  %v14458_v22 = vpack.c.bf16 %v6787_v54, %v6786_v27  ;;  %v14464_v41 = vpop.permute.xlu1 %5855  ;;  %15528 = vst [vmem:[#allocation85_spill] sm:$0xff] %v14469_v60  ;;  %v14475_v54 = vld [vmem:[#allocation3 + $0x69] sm:$0xff] }
 0x7ba   : > { %11501 = vmatprep.subr.bf16.mxu1 %v11500_v40  ;;  %v5941_v21 = vmul.f32 %v14391_v42, %v14453_v59  ;;  %15526 = vst [vmem:[#allocation83_spill] sm:$0xff] %v14464_v41  ;;  %15529 = vst [vmem:[#allocation86_spill] sm:$0xff] %v14475_v54  ;;  %v14480_v27 = vld [vmem:[#allocation3 + $0x71] sm:$0xff] }
 0x7bb   : > { %v5945_v42 = vmul.f32 %v14423_v37, %v14480_v27 }
 0x7bc   : > { %10947 = vmatmul.mubr.msk.f32.gmra.mrb[2].mxu1 %vm4688_vm0, %v5938_v14  ;;  %v14467_v14 = vld [vmem:[#allocation3 + $0x61] sm:$0xff] }
 0x7bd   : > { %10949 = vmatprep.mubr.msk.f32.mxu1 %vm4688_vm0, %v5939_v26  ;;  %11503 = vmatpush3.bf16.msra.mxu1 %v11500_v40  ;;  %15527 = vst [vmem:[#allocation84_spill] sm:$0xff] %v14467_v14  ;;  %v5942_v26 = vmul.f32 %v14460_v2, %v14396_v6  ;;  %v5943_v40 = vmul.f32 %v14407_v44, %v14467_v14  ;;  %v14489_v6 = vpop.permute.xlu0 %5870  ;;  %v14494_v44 = vld [vmem:[#allocation3 + $0x81] sm:$0xff]  ;;  %v14506_v14 = vld [vmem:[#allocation3 + $0x91] sm:$0xff] }
 0x7be   : > { %11505 = vmatprep.subr.bf16.mxu1 %v11504_v8  ;;  %15532 = vst [vmem:[#allocation89_spill] sm:$0xff] %v14489_v6  ;;  %15533 = vst [vmem:[#allocation90_spill] sm:$0xff] %v14494_v44 }
 0x7bf   : > { %15536 = vst [vmem:[#allocation93_spill] sm:$0xff] %v14506_v14 }
 0x7c0   : > { %10950 = vmatmul.mubr.msk.f32.gmra.mrb[4].mxu1 %vm4688_vm0, %v5940_v5  ;;  %v14483_v5 = vpop.permute.xlu1 %5865 }
 0x7c1   : > { %10952 = vmatprep.mubr.msk.f32.mxu1 %vm4688_vm0, %v5941_v21  ;;  %11507 = vmatpush3.bf16.msra.mxu1 %v11504_v8  ;;  %15530 = vst [vmem:[#allocation87_spill] sm:$0xff] %v14483_v5  ;;  %v5944_v21 = vmul.f32 %v14475_v54, %v14412_v56  ;;  %v14487_v8 = vld [vmem:[#allocation3 + $0x79] sm:$0xff]  ;;  %v5947_v56 = vmul.f32 %v14442_v1, %v14494_v44  ;;  %v14508_v37 = vpop.permute.xlu0 %5880  ;;  %v14518_v1 = vld [vmem:[#allocation3 + $0xa1] sm:$0xff] }
 0x7c2   : > { %11509 = vmatprep.subr.bf16.mxu1 %v14458_v22  ;;  %15531 = vst [vmem:[#allocation88_spill] sm:$0xff] %v14487_v8  ;;  %15537 = vst [vmem:[#allocation94_spill] sm:$0xff] %v14508_v37 }
 0x7c4   : > { %10953 = vmatmul.mubr.msk.f32.gmra.mrb[6].mxu1 %vm4688_vm0, %v5942_v26  ;;  %v5946_v26 = vmul.f32 %v14487_v8, %v14428_v61  ;;  %v14503_v54 = vpop.permute.xlu1 %5875  ;;  %v5949_v61 = vmul.f32 %v14464_v41, %v14506_v14  ;;  %v14532_v41 = vld [vmem:[#allocation3 + $0xb1] sm:$0xff]  ;;  %v14544_v14 = vld [vmem:[#allocation3 + $0xc1] sm:$0xff] }
 0x7c5   : > { %10955 = vmatprep.mubr.msk.f32.mxu1 %vm4688_vm0, %v5943_v40  ;;  %v14499_v40 = vld [vmem:[#allocation3 + $0x89] sm:$0xff]  ;;  %15535 = vst [vmem:[#allocation92_spill] sm:$0xff] %v14503_v54  ;;  %v14527_v8 = vpop.permute.xlu0 %5890  ;;  %15542 = vst [vmem:[#allocation99_spill] sm:$0xff] %v14532_v41 }
 0x7c6   : > { %15534 = vst [vmem:[#allocation91_spill] sm:$0xff] %v14499_v40  ;;  %15541 = vst [vmem:[#allocation98_spill] sm:$0xff] %v14527_v8 }
 0x7c7   : > { %15545 = vst [vmem:[#allocation102_spill] sm:$0xff] %v14544_v14 }
 0x7c8   : > { %10956 = vmatmul.mubr.msk.f32.gmra.mrb[8].mxu1 %vm4688_vm0, %v5944_v21  ;;  %v14513_v21 = vld [vmem:[#allocation3 + $0x99] sm:$0xff] }
 0x7c9   : > { %10958 = vmatprep.mubr.msk.f32.mxu1 %vm4688_vm0, %v5945_v42  ;;  %v5948_v42 = vmul.f32 %v14499_v40, %v14448_v16  ;;  %15538 = vst [vmem:[#allocation95_spill] sm:$0xff] %v14513_v21  ;;  %v5950_v44 = vmul.f32 %v14513_v21, %v14469_v60  ;;  %v5951_v16 = vmul.f32 %v14483_v5, %v14518_v1  ;;  %v14546_v5 = vpop.permute.xlu0 %5900 }
 0x7ca   : > { %v5953_v60 = vmul.f32 %v14503_v54, %v14532_v41  ;;  %15546 = vst [vmem:[#allocation103_spill] sm:$0xff] %v14546_v5  ;;  %v14556_v54 = vld [vmem:[#allocation3 + $0xd1] sm:$0xff] }
 0x7cc   : > { %10959 = vmatmul.mubr.msk.f32.gmra.mrb[10].mxu1 %vm4688_vm0, %v5946_v26  ;;  %v14521_v26 = vpop.permute.xlu1 %5885 }
 0x7cd   : > { %10961 = vmatprep.mubr.msk.f32.mxu1 %vm4688_vm0, %v5947_v56  ;;  %15539 = vst [vmem:[#allocation96_spill] sm:$0xff] %v14521_v26  ;;  %v14525_v56 = vld [vmem:[#allocation3 + $0xa9] sm:$0xff] }
 0x7ce   : > { %15540 = vst [vmem:[#allocation97_spill] sm:$0xff] %v14525_v56 }
 0x7d0   : > { %10962 = vmatmul.mubr.msk.f32.gmra.mrb[12].mxu1 %vm4688_vm0, %v5948_v42  ;;  %v14537_v42 = vld [vmem:[#allocation3 + $0xb9] sm:$0xff]  ;;  %v14541_v21 = vpop.permute.xlu1 %5895 }
 0x7d1   : > { %10964 = vmatprep.mubr.msk.f32.mxu1 %vm4688_vm0, %v5949_v61  ;;  %v5952_v61 = vmul.f32 %v14525_v56, %v14489_v6  ;;  %15543 = vst [vmem:[#allocation100_spill] sm:$0xff] %v14537_v42  ;;  %15544 = vst [vmem:[#allocation101_spill] sm:$0xff] %v14541_v21  ;;  %v5955_v6 = vmul.f32 %v14521_v26, %v14544_v14  ;;  %v14565_v56 = vpop.permute.xlu0 %5910  ;;  %v14570_v26 = vld [vmem:[#allocation3 + $0xe1] sm:$0xff]  ;;  %v14582_v14 = vld [vmem:[#allocation3 + $0xf1] sm:$0xff] }
 0x7d2   : > { %15550 = vst [vmem:[#allocation107_spill] sm:$0xff] %v14565_v56  ;;  %15551 = vst [vmem:[#allocation108_spill] sm:$0xff] %v14570_v26 }
 0x7d3   : > { %15553 = vst [vmem:[#allocation110_spill] sm:$0xff] %v14582_v14 }
 0x7d4   : > { %10965 = vmatmul.mubr.msk.f32.gmra.mrb[14].mxu1 %vm4688_vm0, %v5950_v44  ;;  %v14551_v44 = vld [vmem:[#allocation3 + $0xc9] sm:$0xff] }
 0x7d5   : > { %10967 = vmatprep.mubr.msk.f32.mxu1 %vm4688_vm0, %v5951_v16  ;;  %v5954_v16 = vmul.f32 %v14537_v42, %v14508_v37  ;;  %15547 = vst [vmem:[#allocation104_spill] sm:$0xff] %v14551_v44  ;;  %v5956_v41 = vmul.f32 %v14551_v44, %v14527_v8  ;;  %v5957_v37 = vmul.f32 %v14541_v21, %v14556_v54  ;;  %v14584_v21 = vpop.permute.xlu0 %5920 }
 0x7d6   : > { %15554 = vst [vmem:[#allocation111_spill] sm:$0xff] %v14584_v21 }
 0x7d8   : > { %10968 = vmatmul.mubr.msk.f32.gmra.mrb[16].mxu1 %vm4688_vm0, %v5952_v61  ;;  %v14559_v61 = vpop.permute.xlu1 %5905 }
 0x7d9   : > { %10970 = vmatprep.mubr.msk.f32.mxu1 %vm4688_vm0, %v5953_v60  ;;  %15548 = vst [vmem:[#allocation105_spill] sm:$0xff] %v14559_v61  ;;  %v14563_v60 = vld [vmem:[#allocation3 + $0xd9] sm:$0xff]  ;;  %v5959_v8 = vmul.f32 %v14559_v61, %v14570_v26  ;;  %v14594_v61 = vld [vmem:[#allocation3 + $0x101] sm:$0xff] }
 0x7da   : > { %15549 = vst [vmem:[#allocation106_spill] sm:$0xff] %v14563_v60  ;;  %15555 = vst [vmem:[#allocation112_spill] sm:$0xff] %v14594_v61 }
 0x7dc   : > { %10971 = vmatmul.mubr.msk.f32.gmra.mrb[18].mxu1 %vm4688_vm0, %v5954_v16  ;;  %v14575_v16 = vld [vmem:[#allocation3 + $0xe9] sm:$0xff]  ;;  %v14579_v44 = vpop.permute.xlu1 %5915 }
 0x7dd   : > { %10973 = vmatprep.mubr.msk.f32.mxu1 %vm4688_vm0, %v5955_v6  ;;  %v5958_v6 = vmul.f32 %v14563_v60, %v14546_v5  ;;  %15552 = vst [vmem:[#allocation109_spill] sm:$0xff] %v14579_v44  ;;  %v5961_v5 = vmul.f32 %v14579_v44, %v14582_v14  ;;  %v14603_v60 = vpop.permute.xlu0 %5930  ;;  %v6788_v44 = vld [vmem:[#allocation9 + $0x110] sm:$0xff]  ;;  %v6789_v14 = vld [vmem:[#allocation9 + $0x118] sm:$0xff] }
 0x7de   : > { %15558 = vst [vmem:[#allocation115_spill] sm:$0xff] %v14603_v60 }
 0x7e0   : > { %10974 = vmatmul.mubr.msk.f32.gmra.mrb[20].mxu1 %vm4688_vm0, %v5956_v41  ;;  %v5960_v41 = vmul.f32 %v14575_v16, %v14565_v56 }
 0x7e1   : > { %10976 = vmatprep.mubr.msk.f32.mxu1 %vm4688_vm0, %v5957_v37  ;;  %v14589_v37 = vld [vmem:[#allocation3 + $0xf9] sm:$0xff] }
 0x7e2   : > { %v5962_v26 = vmul.f32 %v14589_v37, %v14584_v21  ;;  %v6360_v21 = vmul.f32 %v14164_v62, %v14223_v35  ;;  %v6363_v35 = vmul.f32 %v14049_v46, %v14239_v49 }
 0x7e4   : > { %10977 = vmatmul.mubr.msk.f32.gmra.mrb[22].mxu1 %vm4688_vm0, %v5958_v6  ;;  %v14597_v6 = vpop.permute.xlu1 %5925 }
 0x7e5   : > { %10979 = vmatprep.mubr.msk.f32.mxu1 %vm4688_vm0, %v5959_v8  ;;  %15556 = vst [vmem:[#allocation113_spill] sm:$0xff] %v14597_v6  ;;  %v14601_v8 = vld [vmem:[#allocation3 + $0x109] sm:$0xff]  ;;  %v5963_v56 = vmul.f32 %v14597_v6, %v14594_v61  ;;  %v11512_v6 = vpack.c.bf16 %v6789_v14, %v6788_v44  ;;  %v6793_v44 = vld [vmem:[#allocation9 + $0x138] sm:$0xff] }
 0x7e6   : > { %15557 = vst [vmem:[#allocation114_spill] sm:$0xff] %v14601_v8  ;;  %v6791_v61 = vld [vmem:[#allocation9 + $0x128] sm:$0xff]  ;;  %v6792_v14 = vld [vmem:[#allocation9 + $0x130] sm:$0xff] }
 0x7e8   : > { %10980 = vmatmul.mubr.msk.f32.gmra.mrb[24].mxu1 %vm4688_vm0, %v5960_v41  ;;  %v5964_v41 = vmul.f32 %v14601_v8, %v14603_v60 }
 0x7e9   : > { %10982 = vmatprep.mubr.msk.f32.mxu1 %vm4688_vm0, %v5961_v5  ;;  %v6359_v5 = vmul.f32 %v14043_v50, %v14214_v25  ;;  %v6362_v25 = vmul.f32 %v14047_v23, %v14234_v43 }
 0x7ec   : > { %10983 = vmatmul.mubr.msk.f32.gmra.mrb[26].mxu1 %vm4688_vm0, %v5962_v26  ;;  %v6361_v26 = vmul.f32 %v14045_v51, %v14226_v4 }
 0x7ed   : > { %10985 = vmatprep.mubr.msk.f32.mxu1 %vm4688_vm0, %v5963_v56  ;;  %v6790_v56 = vld [vmem:[#allocation9 + $0x120] sm:$0xff] }
 0x7f0   : > { %10986 = vmatmul.mubr.msk.f32.gmra.mrb[28].mxu1 %vm4688_vm0, %v5964_v41  ;;  %v11516_v41 = vpack.c.bf16 %v6791_v61, %v6790_v56  ;;  %v7213_v61 = vld [vmem:[#allocation9 + $0x148] sm:$0xff]  ;;  %v6366_v56 = vmul.f32 %v14055_v39, %v14264_v9 }
 0x7f1   : > { %11004 = vmatprep.mubr.msk.f32.mxu1 %vm4688_vm0, %v6359_v5  ;;  %v6365_v5 = vmul.f32 %v14053_v36, %v14251_v48 }
 0x7f4   : > { %11005 = vmatmul.mubr.msk.f32.vlgmr.msra.gmra.mrb[30].mxu1 %vm4688_vm0, %v6360_v21  ;;  %v11520_v21 = vpack.c.bf16 %v6793_v44, %v6792_v14  ;;  %v6370_v14 = vmul.f32 %v14074_v0, %v14289_v63  ;;  %v6371_v44 = vmul.f32 %v14081_v57, %v14292_v18 }
 0x7f5   : > { %11511 = vmatpush3.bf16.msra.mxu1 %v14458_v22  ;;  %11007 = vmatprep.mubr.msk.f32.mxu1 %vm4688_vm0, %v6361_v26  ;;  %v6364_v22 = vmul.f32 %v14051_v13, %v14248_v17  ;;  %v7212_v26 = vld [vmem:[#allocation9 + $0x140] sm:$0xff] }
 0x7f6   : > { %11513 = vmatprep.subr.bf16.mxu1 %v11512_v6 }
 0x7f8   : > { %11008 = vmatmul.mubr.msk.f32.gmra.mrb[0].mxu1 %vm4688_vm0, %v6362_v25  ;;  %v6367_v25 = vmul.f32 %v14057_v58, %v14267_v3 }
 0x7f9   : > { %11010 = vmatprep.mubr.msk.f32.mxu1 %vm4688_vm0, %v6363_v35  ;;  %11515 = vmatpush3.bf16.msra.mxu1 %v11512_v6  ;;  %v14636_v6 = vpack.c.bf16 %v7213_v61, %v7212_v26  ;;  %v6368_v35 = vmul.f32 %v14061_v29, %v14275_v31  ;;  %v6375_v26 = vmul.f32 %v14140_v7, %v14318_v33  ;;  %v15566_v7 = vld [vmem:[#allocation44_spill] sm:$0xff] }
 0x7fa   : > { %11517 = vmatprep.subr.bf16.mxu1 %v11516_v41  ;;  %v6376_v61 = vmul.f32 %v14160_v20, %v14327_v55  ;;  %v15565_v20 = vld [vmem:[#allocation63_spill] sm:$0xff] }
 0x7fc   : > { %11011 = vmatmul.mubr.msk.f32.gmra.mrb[2].mxu1 %vm4688_vm0, %v6364_v22  ;;  %v6372_v22 = vmul.f32 %v14093_v32, %v14303_v24 }
 0x7fd   : > { %11013 = vmatprep.mubr.msk.f32.mxu1 %vm4688_vm0, %v6365_v5  ;;  %11519 = vmatpush3.bf16.msra.mxu1 %v11516_v41  ;;  %v6369_v41 = vmul.f32 %v14065_v11, %v14280_v15  ;;  %v6374_v5 = vmul.f32 %v14126_v47, %v14313_v53 }
 0x7fe   : > { %11521 = vmatprep.subr.bf16.mxu1 %v11520_v21 }
 0x800   : > { %11014 = vmatmul.mubr.msk.f32.gmra.mrb[4].mxu1 %vm4688_vm0, %v6366_v56  ;;  %v6377_v56 = vmul.f32 %v14176_v12, %v14330_v30  ;;  %v6381_v12 = vmul.f32 %v15566_v7, %v15565_v20  ;;  %v15570_v30 = vld [vmem:[#allocation46_spill] sm:$0xff] }
 0x801   : > { %11016 = vmatprep.mubr.msk.f32.mxu1 %vm4688_vm0, %v6367_v25  ;;  %11523 = vmatpush3.bf16.msra.mxu1 %v11520_v21  ;;  %v6373_v21 = vmul.f32 %v14106_v34, %v14306_v28  ;;  %v15559_v25 = vld [vmem:[#allocation59_spill] sm:$0xff]  ;;  %v15578_v20 = vld [vmem:[#allocation50_spill] sm:$0xff] }
 0x802   : > { %11525 = vmatprep.subr.bf16.mxu1 %v14636_v6 }
 0x804   : > { %11017 = vmatmul.mubr.msk.f32.gmra.mrb[6].mxu1 %vm4688_vm0, %v6368_v35  ;;  %v15560_v35 = vld [vmem:[#allocation36_spill] sm:$0xff] }
 0x805   : > { %11019 = vmatprep.mubr.msk.f32.mxu1 %vm4688_vm0, %v6369_v41  ;;  %v6378_v41 = vmul.f32 %v15560_v35, %v15559_v25  ;;  %v15569_v25 = vld [vmem:[#allocation66_spill] sm:$0xff] }
 0x808   : > { %11020 = vmatmul.mubr.msk.f32.gmra.mrb[8].mxu1 %vm4688_vm0, %v6370_v14  ;;  %v15561_v14 = vld [vmem:[#allocation60_spill] sm:$0xff] }
 0x809   : > { %11022 = vmatprep.mubr.msk.f32.mxu1 %vm4688_vm0, %v6371_v44  ;;  %v15562_v44 = vld [vmem:[#allocation40_spill] sm:$0xff] }
 0x80c   : > { %11023 = vmatmul.mubr.msk.f32.gmra.mrb[10].mxu1 %vm4688_vm0, %v6372_v22  ;;  %v6379_v22 = vmul.f32 %v15562_v44, %v15561_v14  ;;  %v6383_v44 = vmul.f32 %v15570_v30, %v15569_v25  ;;  %v15574_v14 = vld [vmem:[#allocation48_spill] sm:$0xff] }
 0x80d   : > { %11025 = vmatprep.mubr.msk.f32.mxu1 %vm4688_vm0, %v6373_v21  ;;  %v15563_v21 = vld [vmem:[#allocation61_spill] sm:$0xff] }
 0x810   : > { %11026 = vmatmul.mubr.msk.f32.gmra.mrb[12].mxu1 %vm4688_vm0, %v6374_v5  ;;  %v15564_v5 = vld [vmem:[#allocation41_spill] sm:$0xff] }
 0x811   : > { %11028 = vmatprep.mubr.msk.f32.mxu1 %vm4688_vm0, %v6375_v26  ;;  %v6380_v26 = vmul.f32 %v15564_v5, %v15563_v21  ;;  %v15573_v21 = vld [vmem:[#allocation69_spill] sm:$0xff] }
 0x812   : > { %v6385_v7 = vmul.f32 %v15574_v14, %v15573_v21  ;;  %v15582_v14 = vld [vmem:[#allocation52_spill] sm:$0xff] }
 0x813   : > { %v14709_v21 = vld [vmem:[#allocation3 + $0x117] sm:$0xff] }
 0x814   : > { %11029 = vmatmul.mubr.msk.f32.gmra.mrb[14].mxu1 %vm4688_vm0, %v6376_v61  ;;  %v15567_v61 = vld [vmem:[#allocation65_spill] sm:$0xff]  ;;  %15583 = vst [vmem:[#allocation117_spill] sm:$0xff] %v14709_v21 }
 0x815   : > { %11031 = vmatprep.mubr.msk.f32.mxu1 %vm4688_vm0, %v6377_v56  ;;  %v15568_v56 = vld [vmem:[#allocation45_spill] sm:$0xff] }
 0x816   : > { %v6382_v35 = vmul.f32 %v15568_v56, %v15567_v61  ;;  %v15577_v61 = vld [vmem:[#allocation72_spill] sm:$0xff] }
 0x817   : > { %v6387_v30 = vmul.f32 %v15578_v20, %v15577_v61  ;;  %v7216_v61 = vld [vmem:[#allocation9 + $0x160] sm:$0xff] }
 0x818   : > { %11032 = vmatmul.mubr.msk.f32.gmra.mrb[16].mxu1 %vm4688_vm0, %v6378_v41  ;;  %v15571_v41 = vld [vmem:[#allocation68_spill] sm:$0xff] }
 0x819   : > { %11034 = vmatprep.mubr.msk.f32.mxu1 %vm4688_vm0, %v6379_v22  ;;  %v15572_v22 = vld [vmem:[#allocation47_spill] sm:$0xff] }
 0x81a   : > { %v6384_v5 = vmul.f32 %v15572_v22, %v15571_v41  ;;  %v15581_v22 = vld [vmem:[#allocation51_spill] sm:$0xff] }
 0x81c   : > { %11035 = vmatmul.mubr.msk.f32.gmra.mrb[18].mxu1 %vm4688_vm0, %v6380_v26  ;;  %v15576_v26 = vld [vmem:[#allocation49_spill] sm:$0xff] }
 0x81d   : > { %11037 = vmatprep.mubr.msk.f32.mxu1 %vm4688_vm0, %v6381_v12  ;;  %v15575_v12 = vld [vmem:[#allocation70_spill] sm:$0xff] }
 0x81e   : > { %v6386_v56 = vmul.f32 %v15576_v26, %v15575_v12  ;;  %v7215_v26 = vld [vmem:[#allocation9 + $0x158] sm:$0xff]  ;;  %v15621_v12 = vld [vmem:[#allocation62_spill] sm:$0xff] }
 0x820   : > { %11038 = vmatmul.mubr.msk.f32.gmra.mrb[20].mxu1 %vm4688_vm0, %v6382_v35  ;;  %v14702_v35 = vld [vmem:[#allocation3 + $0x10f] sm:$0xff] }
 0x821   : > { %11040 = vmatprep.mubr.msk.f32.mxu1 %vm4688_vm0, %v6383_v44  ;;  %15579 = vst [vmem:[#allocation116_spill] sm:$0xff] %v14702_v35  ;;  %v15580_v44 = vld [vmem:[#allocation74_spill] sm:$0xff] }
 0x822   : > { %v6388_v41 = vmul.f32 %v15581_v22, %v15580_v44  ;;  %v6754_v44 = vld [vmem:[#allocation3 + $0x28] sm:$0xff] }
 0x824   : > { %11041 = vmatmul.mubr.msk.f32.gmra.mrb[22].mxu1 %vm4688_vm0, %v6384_v5  ;;  %v6389_v5 = vmul.f32 %v14702_v35, %v15582_v14  ;;  %v7217_v14 = vld [vmem:[#allocation9 + $0x168] sm:$0xff]  ;;  %v14718_v35 = vld [vmem:[#allocation3 + $0x30] sm:$0xff] }
 0x825   : > { %11043 = vmatprep.mubr.msk.f32.mxu1 %vm4688_vm0, %v6385_v7  ;;  %v15584_v7 = vld [vmem:[#allocation53_spill] sm:$0xff]  ;;  %15585 = vst [vmem:[#allocation118_spill] sm:$0xff] %v14718_v35 }
 0x826   : > { %v6390_v20 = vmul.f32 %v14709_v21, %v15584_v7  ;;  %v7219_v7 = vld [vmem:[#allocation9 + $0x178] sm:$0xff]  ;;  %v7643_v21 = vld [vmem:[#allocation9 + $0x1a8] sm:$0xff] }
 0x828   : > { %11044 = vmatmul.mubr.msk.f32.gmra.mrb[24].mxu1 %vm4688_vm0, %v6386_v56  ;;  %v7214_v56 = vld [vmem:[#allocation9 + $0x150] sm:$0xff] }
 0x829   : > { %11046 = vmatprep.mubr.msk.f32.mxu1 %vm4688_vm0, %v6387_v30  ;;  %v6753_v30 = vld [vmem:[#allocation3 + $0x20] sm:$0xff]  ;;  %v11528_v22 = vpack.c.bf16 %v7215_v26, %v7214_v56 }
 0x82a   : > { %v14727_v26 = vld [vmem:[#allocation3 + $0x40] sm:$0xff] }
 0x82b   : > { %15587 = vst [vmem:[#allocation120_spill] sm:$0xff] %v14727_v26  ;;  %v7638_v56 = vld [vmem:[#allocation9 + $0x180] sm:$0xff] }
 0x82c   : > { %11047 = vmatmul.mubr.msk.f32.gmra.mrb[26].mxu1 %vm4688_vm0, %v6388_v41  ;;  %v11532_v41 = vpack.c.bf16 %v7217_v14, %v7216_v61  ;;  %v14735_v14 = vld [vmem:[#allocation3 + $0x50] sm:$0xff] }
 0x82d   : > { %11049 = vmatprep.mubr.msk.f32.mxu1 %vm4688_vm0, %v6389_v5  ;;  %v14723_v5 = vld [vmem:[#allocation3 + $0x38] sm:$0xff]  ;;  %15589 = vst [vmem:[#allocation122_spill] sm:$0xff] %v14735_v14 }
 0x82e   : > { %15586 = vst [vmem:[#allocation119_spill] sm:$0xff] %v14723_v5 }
 0x830   : > { %11050 = vmatmul.mubr.msk.f32.gmra.mrb[28].mxu1 %vm4688_vm0, %v6390_v20  ;;  %v7218_v20 = vld [vmem:[#allocation9 + $0x170] sm:$0xff] }
 0x831   : > { %11068 = vmatprep.mubr.msk.f32.mxu1 %vm4688_vm0, %v6753_v30  ;;  %v7639_v30 = vld [vmem:[#allocation9 + $0x188] sm:$0xff] }
 0x832   : > { %v11540_v61 = vpack.c.bf16 %v7639_v30, %v7638_v56  ;;  %v15595_v56 = vld [vmem:[#allocation20_spill] sm:$0xff]  ;;  %v15596_v30 = vld [vmem:[#allocation21_spill] sm:$0xff] }
 0x834   : > { %11069 = vmatmul.mubr.msk.f32.vlgmr.msra.gmra.mrb[30].mxu1 %vm4688_vm0, %v6754_v44  ;;  %v14731_v44 = vld [vmem:[#allocation3 + $0x48] sm:$0xff] }
 0x835   : > { %11527 = vmatpush3.bf16.msra.mxu1 %v14636_v6  ;;  %11071 = vmatprep.mubr.msk.f32.mxu1 %vm4688_vm0, %v14718_v35  ;;  %v11536_v6 = vpack.c.bf16 %v7219_v7, %v7218_v20  ;;  %15588 = vst [vmem:[#allocation121_spill] sm:$0xff] %v14731_v44  ;;  %v14747_v7 = vld [vmem:[#allocation3 + $0x68] sm:$0xff] }
 0x836   : > { %11529 = vmatprep.subr.bf16.mxu1 %v11528_v22  ;;  %15592 = vst [vmem:[#allocation125_spill] sm:$0xff] %v14747_v7  ;;  %v15594_v20 = vld [vmem:[#allocation18_spill] sm:$0xff] }
 0x838   : > { %11072 = vmatmul.mubr.msk.f32.gmra.mrb[0].mxu1 %vm4688_vm0, %v14723_v5  ;;  %v14739_v5 = vld [vmem:[#allocation3 + $0x58] sm:$0xff] }
 0x839   : > { %11074 = vmatprep.mubr.msk.f32.mxu1 %vm4688_vm0, %v14727_v26  ;;  %11531 = vmatpush3.bf16.msra.mxu1 %v11528_v22  ;;  %15590 = vst [vmem:[#allocation123_spill] sm:$0xff] %v14739_v5  ;;  %v14743_v22 = vld [vmem:[#allocation3 + $0x60] sm:$0xff] }
 0x83a   : > { %11533 = vmatprep.subr.bf16.mxu1 %v11532_v41  ;;  %15591 = vst [vmem:[#allocation124_spill] sm:$0xff] %v14743_v22  ;;  %v15618_v26 = vld [vmem:[#allocation57_spill] sm:$0xff] }
 0x83c   : > { %11075 = vmatmul.mubr.msk.f32.gmra.mrb[2].mxu1 %vm4688_vm0, %v14731_v44  ;;  %v15617_v44 = vld [vmem:[#allocation78_spill] sm:$0xff] }
 0x83d   : > { %11077 = vmatprep.mubr.msk.f32.mxu1 %vm4688_vm0, %v14735_v14  ;;  %11535 = vmatpush3.bf16.msra.mxu1 %v11532_v41  ;;  %v15593_v41 = vld [vmem:[#allocation19_spill] sm:$0xff]  ;;  %v7641_v14 = vld [vmem:[#allocation9 + $0x198] sm:$0xff]  ;;  %v7181_v35 = vmul.f32 %v15618_v26, %v15617_v44 }
 0x83e   : > { %11537 = vmatprep.subr.bf16.mxu1 %v11536_v6  ;;  %v15622_v44 = vld [vmem:[#allocation64_spill] sm:$0xff] }
 0x840   : > { %11078 = vmatmul.mubr.msk.f32.gmra.mrb[4].mxu1 %vm4688_vm0, %v14739_v5  ;;  %v15599_v5 = vld [vmem:[#allocation25_spill] sm:$0xff] }
 0x841   : > { %11080 = vmatprep.mubr.msk.f32.mxu1 %vm4688_vm0, %v14743_v22  ;;  %11539 = vmatpush3.bf16.msra.mxu1 %v11536_v6  ;;  %v15597_v22 = vld [vmem:[#allocation24_spill] sm:$0xff]  ;;  %v15598_v6 = vld [vmem:[#allocation26_spill] sm:$0xff] }
 0x842   : > { %11541 = vmatprep.subr.bf16.mxu1 %v11540_v61 }
 0x844   : > { %11081 = vmatmul.mubr.msk.f32.gmra.mrb[6].mxu1 %vm4688_vm0, %v14747_v7  ;;  %v15600_v7 = vld [vmem:[#allocation22_spill] sm:$0xff] }
 0x845   : > { %11083 = vmatprep.mubr.msk.f32.mxu1 %vm4688_vm0, %v15593_v41  ;;  %v15601_v41 = vld [vmem:[#allocation27_spill] sm:$0xff] }
 0x848   : > { %11084 = vmatmul.mubr.msk.f32.gmra.mrb[8].mxu1 %vm4688_vm0, %v15594_v20  ;;  %v15602_v20 = vld [vmem:[#allocation28_spill] sm:$0xff] }
 0x849   : > { %11086 = vmatprep.mubr.msk.f32.mxu1 %vm4688_vm0, %v15595_v56  ;;  %v15603_v56 = vld [vmem:[#allocation29_spill] sm:$0xff] }
 0x84c   : > { %11087 = vmatmul.mubr.msk.f32.gmra.mrb[10].mxu1 %vm4688_vm0, %v15596_v30  ;;  %v15604_v30 = vld [vmem:[#allocation30_spill] sm:$0xff] }
 0x84d   : > { %11089 = vmatprep.mubr.msk.f32.mxu1 %vm4688_vm0, %v15597_v22  ;;  %v15605_v22 = vld [vmem:[#allocation32_spill] sm:$0xff] }
 0x850   : > { %11090 = vmatmul.mubr.msk.f32.gmra.mrb[12].mxu1 %vm4688_vm0, %v15598_v6  ;;  %v15606_v6 = vld [vmem:[#allocation33_spill] sm:$0xff] }
 0x851   : > { %11092 = vmatprep.mubr.msk.f32.mxu1 %vm4688_vm0, %v15599_v5  ;;  %v15607_v5 = vld [vmem:[#allocation35_spill] sm:$0xff] }
 0x854   : > { %11093 = vmatmul.mubr.msk.f32.gmra.mrb[14].mxu1 %vm4688_vm0, %v15600_v7  ;;  %v15608_v7 = vld [vmem:[#allocation37_spill] sm:$0xff] }
 0x855   : > { %11095 = vmatprep.mubr.msk.f32.mxu1 %vm4688_vm0, %v15601_v41  ;;  %v15609_v41 = vld [vmem:[#allocation38_spill] sm:$0xff] }
 0x858   : > { %11096 = vmatmul.mubr.msk.f32.gmra.mrb[16].mxu1 %vm4688_vm0, %v15602_v20  ;;  %v15610_v20 = vld [vmem:[#allocation39_spill] sm:$0xff] }
 0x859   : > { %11098 = vmatprep.mubr.msk.f32.mxu1 %vm4688_vm0, %v15603_v56  ;;  %v15611_v56 = vld [vmem:[#allocation42_spill] sm:$0xff] }
 0x85c   : > { %11099 = vmatmul.mubr.msk.f32.gmra.mrb[18].mxu1 %vm4688_vm0, %v15604_v30  ;;  %v15612_v30 = vld [vmem:[#allocation43_spill] sm:$0xff] }
 0x85d   : > { %11101 = vmatprep.mubr.msk.f32.mxu1 %vm4688_vm0, %v15605_v22  ;;  %v14791_v22 = vld [vmem:[#allocation3 + $0x110] sm:$0xff] }
 0x85e   : > { %15613 = vst [vmem:[#allocation19_spill] sm:$0xff] %v14791_v22 }
 0x860   : > { %11102 = vmatmul.mubr.msk.f32.gmra.mrb[20].mxu1 %vm4688_vm0, %v15606_v6  ;;  %v14795_v6 = vld [vmem:[#allocation3 + $0x118] sm:$0xff] }
 0x861   : > { %11104 = vmatprep.mubr.msk.f32.mxu1 %vm4688_vm0, %v15607_v5  ;;  %15614 = vst [vmem:[#allocation18_spill] sm:$0xff] %v14795_v6  ;;  %v15615_v5 = vld [vmem:[#allocation54_spill] sm:$0xff] }
 0x864   : > { %11105 = vmatmul.mubr.msk.f32.gmra.mrb[22].mxu1 %vm4688_vm0, %v15608_v7  ;;  %v7179_v7 = vmul.f32 %v15615_v5, %v14415_v10  ;;  %v15619_v10 = vld [vmem:[#allocation58_spill] sm:$0xff] }
 0x865   : > { %11107 = vmatprep.mubr.msk.f32.mxu1 %vm4688_vm0, %v15609_v41  ;;  %v7640_v41 = vld [vmem:[#allocation9 + $0x190] sm:$0xff]  ;;  %v7182_v5 = vmul.f32 %v14434_v52, %v15619_v10 }
 0x868   : > { %11108 = vmatmul.mubr.msk.f32.gmra.mrb[24].mxu1 %vm4688_vm0, %v15610_v20  ;;  %v15616_v20 = vld [vmem:[#allocation55_spill] sm:$0xff] }
 0x869   : > { %11110 = vmatprep.mubr.msk.f32.mxu1 %vm4688_vm0, %v15611_v56  ;;  %v7180_v56 = vmul.f32 %v14419_v19, %v15616_v20  ;;  %v7644_v19 = vld [vmem:[#allocation9 + $0x1b0] sm:$0xff] }
 0x86c   : > { %11111 = vmatmul.mubr.msk.f32.gmra.mrb[26].mxu1 %vm4688_vm0, %v15612_v30  ;;  %v11544_v30 = vpack.c.bf16 %v7641_v14, %v7640_v41  ;;  %v7645_v14 = vld [vmem:[#allocation9 + $0x1b8] sm:$0xff]  ;;  %v15623_v41 = vld [vmem:[#allocation67_spill] sm:$0xff] }
 0x86d   : > { %11113 = vmatprep.mubr.msk.f32.mxu1 %vm4688_vm0, %v14791_v22  ;;  %v7642_v22 = vld [vmem:[#allocation9 + $0x1a0] sm:$0xff]  ;;  %v7185_v52 = vmul.f32 %v15623_v41, %v14453_v59 }
 0x86e   : > { %v15626_v59 = vld [vmem:[#allocation73_spill] sm:$0xff] }
 0x870   : > { %11114 = vmatmul.mubr.msk.f32.gmra.mrb[28].mxu1 %vm4688_vm0, %v14795_v6  ;;  %v11548_v6 = vpack.c.bf16 %v7643_v21, %v7642_v22  ;;  %v8033_v21 = vld [vmem:[#allocation9 + $0x1c8] sm:$0xff]  ;;  %v7186_v22 = vmul.f32 %v14460_v2, %v14375_v38 }
 0x871   : > { %11132 = vmatprep.mubr.msk.f32.mxu1 %vm4688_vm0, %v7179_v7  ;;  %v15620_v7 = vld [vmem:[#allocation80_spill] sm:$0xff] }
 0x872   : > { %v7183_v25 = vmul.f32 %v15621_v12, %v15620_v7 }
 0x874   : > { %11133 = vmatmul.mubr.msk.f32.vlgmr.msra.gmra.mrb[30].mxu1 %vm4688_vm0, %v7180_v56  ;;  %v8032_v56 = vld [vmem:[#allocation9 + $0x1c0] sm:$0xff] }
 0x875   : > { %11543 = vmatpush3.bf16.msra.mxu1 %v11540_v61  ;;  %11135 = vmatprep.mubr.msk.f32.mxu1 %vm4688_vm0, %v7181_v35  ;;  %v7184_v61 = vmul.f32 %v14446_v45, %v15622_v44  ;;  %v11552_v35 = vpack.c.bf16 %v7645_v14, %v7644_v19  ;;  %v15627_v19 = vld [vmem:[#allocation86_spill] sm:$0xff] }
 0x876   : > { %11545 = vmatprep.subr.bf16.mxu1 %v11544_v30  ;;  %v7188_v14 = vmul.f32 %v15627_v19, %v15626_v59  ;;  %v15634_v59 = vld [vmem:[#allocation93_spill] sm:$0xff] }
 0x877   : > { %v15635_v19 = vld [vmem:[#allocation81_spill] sm:$0xff] }
 0x878   : > { %11136 = vmatmul.mubr.msk.f32.gmra.mrb[0].mxu1 %vm4688_vm0, %v7182_v5  ;;  %v15624_v5 = vld [vmem:[#allocation84_spill] sm:$0xff] }
 0x879   : > { %11138 = vmatprep.mubr.msk.f32.mxu1 %vm4688_vm0, %v7183_v25  ;;  %11547 = vmatpush3.bf16.msra.mxu1 %v11544_v30  ;;  %v14822_v25 = vpack.c.bf16 %v8033_v21, %v8032_v56  ;;  %v15625_v30 = vld [vmem:[#allocation71_spill] sm:$0xff]  ;;  %v15630_v56 = vld [vmem:[#allocation88_spill] sm:$0xff] }
 0x87a   : > { %11549 = vmatprep.subr.bf16.mxu1 %v11548_v6  ;;  %v7187_v7 = vmul.f32 %v15625_v30, %v15624_v5  ;;  %v15631_v5 = vld [vmem:[#allocation90_spill] sm:$0xff] }
 0x87c   : > { %11139 = vmatmul.mubr.msk.f32.gmra.mrb[2].mxu1 %vm4688_vm0, %v7184_v61 }
 0x87d   : > { %11141 = vmatprep.mubr.msk.f32.mxu1 %vm4688_vm0, %v7185_v52  ;;  %11551 = vmatpush3.bf16.msra.mxu1 %v11548_v6  ;;  %v15628_v6 = vld [vmem:[#allocation75_spill] sm:$0xff]  ;;  %v15629_v52 = vld [vmem:[#allocation76_spill] sm:$0xff] }
 0x87e   : > { %11553 = vmatprep.subr.bf16.mxu1 %v11552_v35  ;;  %v7189_v61 = vmul.f32 %v15628_v6, %v14480_v27  ;;  %v7190_v21 = vmul.f32 %v15630_v56, %v15629_v52  ;;  %v7193_v27 = vmul.f32 %v15635_v19, %v15634_v59  ;;  %v15638_v6 = vld [vmem:[#allocation83_spill] sm:$0xff]  ;;  %v15645_v19 = vld [vmem:[#allocation92_spill] sm:$0xff] }
 0x880   : > { %11142 = vmatmul.mubr.msk.f32.gmra.mrb[4].mxu1 %vm4688_vm0, %v7186_v22  ;;  %v15632_v22 = vld [vmem:[#allocation77_spill] sm:$0xff] }
 0x881   : > { %11144 = vmatprep.mubr.msk.f32.mxu1 %vm4688_vm0, %v7187_v7  ;;  %11555 = vmatpush3.bf16.msra.mxu1 %v11552_v35  ;;  %v7191_v30 = vmul.f32 %v15632_v22, %v15631_v5  ;;  %v15633_v35 = vld [vmem:[#allocation79_spill] sm:$0xff]  ;;  %v7195_v5 = vmul.f32 %v15638_v6, %v14518_v1  ;;  %v15648_v6 = vld [vmem:[#allocation96_spill] sm:$0xff] }
 0x882   : > { %11557 = vmatprep.subr.bf16.mxu1 %v14822_v25  ;;  %v7192_v7 = vmul.f32 %v14499_v40, %v15633_v35  ;;  %v15641_v22 = vld [vmem:[#allocation99_spill] sm:$0xff] }
 0x883   : > { %v15642_v40 = vld [vmem:[#allocation87_spill] sm:$0xff] }
 0x884   : > { %11145 = vmatmul.mubr.msk.f32.gmra.mrb[6].mxu1 %vm4688_vm0, %v7188_v14  ;;  %v15636_v14 = vld [vmem:[#allocation82_spill] sm:$0xff]  ;;  %v7197_v59 = vmul.f32 %v15642_v40, %v15641_v22  ;;  %v7201_v22 = vmul.f32 %v15648_v6, %v14556_v54  ;;  %v15651_v40 = vld [vmem:[#allocation108_spill] sm:$0xff]  ;;  %v15658_v6 = vld [vmem:[#allocation109_spill] sm:$0xff] }
 0x885   : > { %11147 = vmatprep.mubr.msk.f32.mxu1 %vm4688_vm0, %v7189_v61  ;;  %v15637_v61 = vld [vmem:[#allocation95_spill] sm:$0xff] }
 0x886   : > { %v7194_v52 = vmul.f32 %v15637_v61, %v15636_v14  ;;  %v15644_v14 = vld [vmem:[#allocation102_spill] sm:$0xff] }
 0x887   : > { %v7199_v1 = vmul.f32 %v15645_v19, %v15644_v14  ;;  %v15655_v19 = vld [vmem:[#allocation105_spill] sm:$0xff] }
 0x888   : > { %11148 = vmatmul.mubr.msk.f32.gmra.mrb[8].mxu1 %vm4688_vm0, %v7190_v21  ;;  %v15640_v21 = vld [vmem:[#allocation97_spill] sm:$0xff] }
 0x889   : > { %11150 = vmatprep.mubr.msk.f32.mxu1 %vm4688_vm0, %v7191_v30  ;;  %v15639_v30 = vld [vmem:[#allocation85_spill] sm:$0xff] }
 0x88a   : > { %v7196_v35 = vmul.f32 %v15640_v21, %v15639_v30 }
 0x88c   : > { %11151 = vmatmul.mubr.msk.f32.gmra.mrb[10].mxu1 %vm4688_vm0, %v7192_v7  ;;  %v15643_v7 = vld [vmem:[#allocation89_spill] sm:$0xff] }
 0x88d   : > { %11153 = vmatprep.mubr.msk.f32.mxu1 %vm4688_vm0, %v7193_v27  ;;  %v7198_v27 = vmul.f32 %v14537_v42, %v15643_v7  ;;  %v15652_v42 = vld [vmem:[#allocation101_spill] sm:$0xff] }
 0x88e   : > { %v7203_v14 = vmul.f32 %v15652_v42, %v15651_v40 }
 0x890   : > { %11154 = vmatmul.mubr.msk.f32.gmra.mrb[12].mxu1 %vm4688_vm0, %v7194_v52  ;;  %v15646_v52 = vld [vmem:[#allocation94_spill] sm:$0xff] }
 0x891   : > { %11156 = vmatprep.mubr.msk.f32.mxu1 %vm4688_vm0, %v7195_v5  ;;  %v15647_v5 = vld [vmem:[#allocation104_spill] sm:$0xff] }
 0x892   : > { %v7200_v30 = vmul.f32 %v15647_v5, %v15646_v52  ;;  %v15654_v52 = vld [vmem:[#allocation110_spill] sm:$0xff] }
 0x893   : > { %v7205_v54 = vmul.f32 %v15655_v19, %v15654_v52  ;;  %v14893_v52 = vld [vmem:[#allocation3 + $0x119] sm:$0xff] }
 0x894   : > { %11157 = vmatmul.mubr.msk.f32.gmra.mrb[14].mxu1 %vm4688_vm0, %v7196_v35  ;;  %v15649_v35 = vld [vmem:[#allocation98_spill] sm:$0xff]  ;;  %15660 = vst [vmem:[#allocation20_spill] sm:$0xff] %v14893_v52 }
 0x895   : > { %11159 = vmatprep.mubr.msk.f32.mxu1 %vm4688_vm0, %v7197_v59  ;;  %v15650_v59 = vld [vmem:[#allocation106_spill] sm:$0xff] }
 0x896   : > { %v7202_v7 = vmul.f32 %v15650_v59, %v15649_v35  ;;  %v15657_v35 = vld [vmem:[#allocation112_spill] sm:$0xff] }
 0x897   : > { %v7207_v40 = vmul.f32 %v15658_v6, %v15657_v35  ;;  %v7210_v35 = vmul.f32 %v14893_v52, %v14603_v60  ;;  %v8034_v6 = vld [vmem:[#allocation9 + $0x1d0] sm:$0xff]  ;;  %v8036_v60 = vld [vmem:[#allocation9 + $0x1e0] sm:$0xff]  ;;  %v8037_v52 = vld [vmem:[#allocation9 + $0x1e8] sm:$0xff] }
 0x898   : > { %11160 = vmatmul.mubr.msk.f32.gmra.mrb[16].mxu1 %vm4688_vm0, %v7198_v27  ;;  %v15653_v27 = vld [vmem:[#allocation103_spill] sm:$0xff] }
 0x899   : > { %11162 = vmatprep.mubr.msk.f32.mxu1 %vm4688_vm0, %v7199_v1  ;;  %v7204_v1 = vmul.f32 %v14575_v16, %v15653_v27 }
 0x89c   : > { %11163 = vmatmul.mubr.msk.f32.gmra.mrb[18].mxu1 %vm4688_vm0, %v7200_v30  ;;  %v15656_v30 = vld [vmem:[#allocation107_spill] sm:$0xff] }
 0x89d   : > { %11165 = vmatprep.mubr.msk.f32.mxu1 %vm4688_vm0, %v7201_v22  ;;  %v7206_v22 = vmul.f32 %v14589_v37, %v15656_v30 }
 0x8a0   : > { %11166 = vmatmul.mubr.msk.f32.gmra.mrb[20].mxu1 %vm4688_vm0, %v7202_v7  ;;  %v14888_v7 = vld [vmem:[#allocation3 + $0x111] sm:$0xff] }
 0x8a1   : > { %11168 = vmatprep.mubr.msk.f32.mxu1 %vm4688_vm0, %v7203_v14  ;;  %v15659_v14 = vld [vmem:[#allocation111_spill] sm:$0xff] }
 0x8a2   : > { %v7208_v27 = vmul.f32 %v14601_v8, %v15659_v14  ;;  %v5058_v14 = vld [vmem:[#allocation3 + $0x10] sm:$0xff]  ;;  %v5059_v8 = vld [vmem:[#allocation3 + $0x18] sm:$0xff] }
 0x8a3   : > { %10812 = vmatprep.mubr.msk.f32.mxu0 %vm4688_vm0, %v5058_v14  ;;  %v15673_v14 = vld [vmem:[#allocation41_spill] sm:$0xff] }
 0x8a4   : > { %11169 = vmatmul.mubr.msk.f32.gmra.mrb[22].mxu1 %vm4688_vm0, %v7204_v1  ;;  %v15661_v1 = vld [vmem:[#allocation113_spill] sm:$0xff]  ;;  %10813 = vmatmul.mubr.msk.f32.vlgmr.msra.gmra.mrb[32].mxu0 %vm4688_vm0, %v5059_v8 }
 0x8a5   : > { %11171 = vmatprep.mubr.msk.f32.mxu1 %vm4688_vm0, %v7205_v54  ;;  %v7209_v54 = vmul.f32 %v14888_v7, %v15661_v1  ;;  %v7606_v1 = vmul.f32 %v14164_v62, %v14234_v43  ;;  %v11564_v62 = vpack.c.bf16 %v8037_v52, %v8036_v60  ;;  %v8038_v43 = vld [vmem:[#allocation9 + $0x1f0] sm:$0xff]  ;;  %v8459_v60 = vld [vmem:[#allocation9 + $0x208] sm:$0xff] }
 0x8a8   : > { %11172 = vmatmul.mubr.msk.f32.gmra.mrb[24].mxu1 %vm4688_vm0, %v7206_v22  ;;  %v7605_v22 = vmul.f32 %v14043_v50, %v14226_v4  ;;  %v7608_v50 = vmul.f32 %v14047_v23, %v14248_v17  ;;  %v7609_v4 = vmul.f32 %v14049_v46, %v14251_v48  ;;  %v7611_v23 = vmul.f32 %v14053_v36, %v14267_v3  ;;  %v8458_v17 = vld [vmem:[#allocation9 + $0x200] sm:$0xff] }
 0x8a9   : > { %11174 = vmatprep.mubr.msk.f32.mxu1 %vm4688_vm0, %v7207_v40  ;;  %v8035_v40 = vld [vmem:[#allocation9 + $0x1d8] sm:$0xff]  ;;  %v7612_v46 = vmul.f32 %v14055_v39, %v14275_v31  ;;  %v11572_v48 = vpack.c.bf16 %v8459_v60, %v8458_v17  ;;  %v7614_v36 = vmul.f32 %v14061_v29, %v14289_v63  ;;  %v7616_v39 = vmul.f32 %v14074_v0, %v14303_v24  ;;  %v15665_v63 = vld [vmem:[#allocation31_spill] sm:$0xff]  ;;  %v15667_v3 = vld [vmem:[#allocation34_spill] sm:$0xff] }
 0x8aa   : > { %v7618_v29 = vmul.f32 %v14093_v32, %v14313_v53  ;;  %v7620_v0 = vmul.f32 %v14126_v47, %v14327_v55  ;;  %v15662_v24 = vld [vmem:[#allocation56_spill] sm:$0xff]  ;;  %v15670_v55 = vld [vmem:[#allocation63_spill] sm:$0xff]  ;;  %v15684_v60 = vld [vmem:[#allocation74_spill] sm:$0xff] }
 0x8ab   : > { %v15666_v53 = vld [vmem:[#allocation60_spill] sm:$0xff] }
 0x8ac   : > { %11175 = vmatmul.mubr.msk.f32.gmra.mrb[26].mxu1 %vm4688_vm0, %v7208_v27  ;;  %v11560_v27 = vpack.c.bf16 %v8035_v40, %v8034_v6  ;;  %v15669_v31 = vld [vmem:[#allocation36_spill] sm:$0xff]  ;;  %v15672_v6 = vld [vmem:[#allocation65_spill] sm:$0xff] }
 0x8ad   : > { %11177 = vmatprep.mubr.msk.f32.mxu1 %vm4688_vm0, %v7209_v54  ;;  %v7607_v54 = vmul.f32 %v14045_v51, %v14239_v49  ;;  %v8039_v51 = vld [vmem:[#allocation9 + $0x1f8] sm:$0xff]  ;;  %v7610_v49 = vmul.f32 %v14051_v13, %v14264_v9  ;;  %v7613_v13 = vmul.f32 %v14057_v58, %v14280_v15  ;;  %v7615_v9 = vmul.f32 %v14065_v11, %v14292_v18  ;;  %v15663_v18 = vld [vmem:[#allocation23_spill] sm:$0xff] }
 0x8ae   : > { %v11568_v8 = vpack.c.bf16 %v8039_v51, %v8038_v43  ;;  %v7617_v58 = vmul.f32 %v14081_v57, %v14306_v28  ;;  %v7619_v11 = vmul.f32 %v14106_v34, %v14318_v33  ;;  %v7621_v57 = vmul.f32 %v15663_v18, %v15662_v24  ;;  %v15664_v28 = vld [vmem:[#allocation59_spill] sm:$0xff]  ;;  %v15668_v33 = vld [vmem:[#allocation61_spill] sm:$0xff]  ;;  %v15671_v15 = vld [vmem:[#allocation40_spill] sm:$0xff] }
 0x8af   : > { %v7622_v32 = vmul.f32 %v15665_v63, %v15664_v28  ;;  %v7623_v34 = vmul.f32 %v15667_v3, %v15666_v53  ;;  %v7624_v47 = vmul.f32 %v15669_v31, %v15668_v33  ;;  %v7626_v52 = vmul.f32 %v15673_v14, %v15672_v6  ;;  %v15676_v40 = vld [vmem:[#allocation68_spill] sm:$0xff]  ;;  %v15680_v43 = vld [vmem:[#allocation70_spill] sm:$0xff]  ;;  %v15681_v51 = vld [vmem:[#allocation47_spill] sm:$0xff] }
 0x8b0   : > { %11178 = vmatmul.mubr.msk.f32.gmra.mrb[28].mxu1 %vm4688_vm0, %v7210_v35  ;;  %v15675_v35 = vld [vmem:[#allocation44_spill] sm:$0xff]  ;;  %v7604_v24 = vld [vmem:[#allocation3 + $0x127] sm:$0xff]  ;;  %v15691_v28 = vld [vmem:[#allocation53_spill] sm:$0xff] }
 0x8b1   : > { %11196 = vmatprep.mubr.msk.f32.mxu1 %vm4688_vm0, %v7605_v22  ;;  %v15690_v18 = vld [vmem:[#allocation52_spill] sm:$0xff]  ;;  %v7636_v63 = vmul.f32 %v7604_v24, %v15691_v28  ;;  %v15692_v3 = vld [vmem:[#allocation118_spill] sm:$0xff]  ;;  %v15695_v14 = vld [vmem:[#allocation121_spill] sm:$0xff] }
 0x8b2   : > { %v8461_v53 = vld [vmem:[#allocation9 + $0x218] sm:$0xff]  ;;  %v8462_v33 = vld [vmem:[#allocation9 + $0x220] sm:$0xff]  ;;  %v8463_v31 = vld [vmem:[#allocation9 + $0x228] sm:$0xff] }
 0x8b3   : > { %v8465_v6 = vld [vmem:[#allocation9 + $0x238] sm:$0xff]  ;;  %v15701_v24 = vld [vmem:[#allocation18_spill] sm:$0xff] }
 0x8b4   : > { %11197 = vmatmul.mubr.msk.f32.vlgmr.msra.gmra.mrb[30].mxu1 %vm4688_vm0, %v7606_v1  ;;  %v15674_v1 = vld [vmem:[#allocation66_spill] sm:$0xff] }
 0x8b5   : > { %11559 = vmatpush3.bf16.msra.mxu1 %v14822_v25  ;;  %11199 = vmatprep.mubr.msk.f32.mxu1 %vm4688_vm0, %v7607_v54  ;;  %v7625_v25 = vmul.f32 %v15671_v15, %v15670_v55  ;;  %v7627_v22 = vmul.f32 %v15675_v35, %v15674_v1  ;;  %v15694_v55 = vld [vmem:[#allocation120_spill] sm:$0xff]  ;;  %v11580_v15 = vpack.c.bf16 %v8463_v31, %v8462_v33  ;;  %v15697_v35 = vld [vmem:[#allocation123_spill] sm:$0xff]  ;;  %v15702_v28 = vld [vmem:[#allocation54_spill] sm:$0xff] }
 0x8b6   : > { %11561 = vmatprep.subr.bf16.mxu1 %v11560_v27  ;;  %v8397_v33 = vld [vmem:[#allocation3 + $0x51] sm:$0xff]  ;;  %v8428_v31 = vmul.f32 %v14446_v45, %v15619_v10 }
 0x8b7   : > { %v15704_v10 = vld [vmem:[#allocation71_spill] sm:$0xff] }
 0x8b8   : > { %11200 = vmatmul.mubr.msk.f32.gmra.mrb[0].mxu1 %vm4688_vm0, %v7608_v50  ;;  %v15678_v50 = vld [vmem:[#allocation69_spill] sm:$0xff] }
 0x8b9   : > { %11202 = vmatprep.mubr.msk.f32.mxu1 %vm4688_vm0, %v7609_v4  ;;  %11563 = vmatpush3.bf16.msra.mxu1 %v11560_v27  ;;  %v15677_v27 = vld [vmem:[#allocation45_spill] sm:$0xff] }
 0x8ba   : > { %11565 = vmatprep.subr.bf16.mxu1 %v11564_v62  ;;  %v7628_v54 = vmul.f32 %v15677_v27, %v15676_v40  ;;  %v8007_v40 = vld [vmem:[#allocation3 + $0x70] sm:$0xff]  ;;  %v8008_v27 = vld [vmem:[#allocation3 + $0x78] sm:$0xff] }
 0x8bc   : > { %11203 = vmatmul.mubr.msk.f32.gmra.mrb[2].mxu1 %vm4688_vm0, %v7610_v49  ;;  %v7630_v49 = vmul.f32 %v15681_v51, %v15680_v43  ;;  %v8013_v43 = vld [vmem:[#allocation3 + $0xa0] sm:$0xff]  ;;  %v8014_v51 = vld [vmem:[#allocation3 + $0xa8] sm:$0xff] }
 0x8bd   : > { %11205 = vmatprep.mubr.msk.f32.mxu1 %vm4688_vm0, %v7611_v23  ;;  %11567 = vmatpush3.bf16.msra.mxu1 %v11564_v62  ;;  %v15679_v62 = vld [vmem:[#allocation46_spill] sm:$0xff]  ;;  %v15683_v23 = vld [vmem:[#allocation48_spill] sm:$0xff] }
 0x8be   : > { %11569 = vmatprep.subr.bf16.mxu1 %v11568_v8  ;;  %v7629_v4 = vmul.f32 %v15679_v62, %v15678_v50  ;;  %v8010_v50 = vld [vmem:[#allocation3 + $0x88] sm:$0xff]  ;;  %v8011_v62 = vld [vmem:[#allocation3 + $0x90] sm:$0xff] }
 0x8c0   : > { %11206 = vmatmul.mubr.msk.f32.gmra.mrb[4].mxu1 %vm4688_vm0, %v7612_v46  ;;  %v15685_v46 = vld [vmem:[#allocation49_spill] sm:$0xff] }
 0x8c1   : > { %11208 = vmatprep.mubr.msk.f32.mxu1 %vm4688_vm0, %v7613_v13  ;;  %11571 = vmatpush3.bf16.msra.mxu1 %v11568_v8  ;;  %v15682_v8 = vld [vmem:[#allocation72_spill] sm:$0xff]  ;;  %v7632_v13 = vmul.f32 %v15685_v46, %v15684_v60 }
 0x8c2   : > { %11573 = vmatprep.subr.bf16.mxu1 %v11572_v48  ;;  %v7631_v17 = vmul.f32 %v15683_v23, %v15682_v8  ;;  %v8016_v8 = vld [vmem:[#allocation3 + $0xb8] sm:$0xff]  ;;  %v8017_v23 = vld [vmem:[#allocation3 + $0xc0] sm:$0xff]  ;;  %v8019_v60 = vld [vmem:[#allocation3 + $0xd0] sm:$0xff] }
 0x8c3   : > { %v8020_v46 = vld [vmem:[#allocation3 + $0xd8] sm:$0xff] }
 0x8c4   : > { %11209 = vmatmul.mubr.msk.f32.gmra.mrb[6].mxu1 %vm4688_vm0, %v7614_v36  ;;  %v15686_v36 = vld [vmem:[#allocation50_spill] sm:$0xff] }
 0x8c5   : > { %11211 = vmatprep.mubr.msk.f32.mxu1 %vm4688_vm0, %v7615_v9  ;;  %v15687_v9 = vld [vmem:[#allocation116_spill] sm:$0xff] }
 0x8c8   : > { %11212 = vmatmul.mubr.msk.f32.gmra.mrb[8].mxu1 %vm4688_vm0, %v7616_v39  ;;  %v7633_v39 = vmul.f32 %v15687_v9, %v15686_v36  ;;  %v8022_v36 = vld [vmem:[#allocation3 + $0xe8] sm:$0xff]  ;;  %v8023_v9 = vld [vmem:[#allocation3 + $0xf0] sm:$0xff] }
 0x8c9   : > { %11214 = vmatprep.mubr.msk.f32.mxu1 %vm4688_vm0, %v7617_v58  ;;  %v7603_v58 = vld [vmem:[#allocation3 + $0x11f] sm:$0xff] }
 0x8cc   : > { %11215 = vmatmul.mubr.msk.f32.gmra.mrb[10].mxu1 %vm4688_vm0, %v7618_v29  ;;  %v15688_v29 = vld [vmem:[#allocation51_spill] sm:$0xff] }
 0x8cd   : > { %11217 = vmatprep.mubr.msk.f32.mxu1 %vm4688_vm0, %v7619_v11  ;;  %v15689_v11 = vld [vmem:[#allocation117_spill] sm:$0xff] }
 0x8d0   : > { %11218 = vmatmul.mubr.msk.f32.gmra.mrb[12].mxu1 %vm4688_vm0, %v7620_v0  ;;  %v7634_v0 = vmul.f32 %v15689_v11, %v15688_v29  ;;  %v8026_v29 = vld [vmem:[#allocation3 + $0x108] sm:$0xff] }
 0x8d1   : > { %11220 = vmatprep.mubr.msk.f32.mxu1 %vm4688_vm0, %v7621_v57  ;;  %v7635_v57 = vmul.f32 %v7603_v58, %v15690_v18  ;;  %v8025_v58 = vld [vmem:[#allocation3 + $0x100] sm:$0xff]  ;;  %v15700_v11 = vld [vmem:[#allocation19_spill] sm:$0xff] }
 0x8d2   : > { %v8393_v18 = vld [vmem:[#allocation3 + $0x31] sm:$0xff] }
 0x8d4   : > { %11221 = vmatmul.mubr.msk.f32.gmra.mrb[14].mxu1 %vm4688_vm0, %v7622_v32  ;;  %v8460_v32 = vld [vmem:[#allocation9 + $0x210] sm:$0xff] }
 0x8d5   : > { %11223 = vmatprep.mubr.msk.f32.mxu1 %vm4688_vm0, %v7623_v34  ;;  %v11576_v34 = vpack.c.bf16 %v8461_v53, %v8460_v32  ;;  %v8395_v32 = vld [vmem:[#allocation3 + $0x41] sm:$0xff]  ;;  %v12243_v53 = vld [vmem:[#allocation3 + $0x39] sm:$0xff] }
 0x8d8   : > { %11224 = vmatmul.mubr.msk.f32.gmra.mrb[16].mxu1 %vm4688_vm0, %v7624_v47  ;;  %v15693_v47 = vld [vmem:[#allocation119_spill] sm:$0xff] }
 0x8d9   : > { %11226 = vmatprep.mubr.msk.f32.mxu1 %vm4688_vm0, %v7625_v25  ;;  %v8464_v25 = vld [vmem:[#allocation9 + $0x230] sm:$0xff] }
 0x8da   : > { %v11584_v1 = vpack.c.bf16 %v8465_v6, %v8464_v25  ;;  %v15703_v25 = vld [vmem:[#allocation86_spill] sm:$0xff] }
 0x8db   : > { %v8432_v45 = vmul.f32 %v15703_v25, %v14375_v38  ;;  %v8403_v6 = vld [vmem:[#allocation3 + $0x81] sm:$0xff] }
 0x8dc   : > { %11227 = vmatmul.mubr.msk.f32.gmra.mrb[18].mxu1 %vm4688_vm0, %v7626_v52  ;;  %v15696_v52 = vld [vmem:[#allocation122_spill] sm:$0xff] }
 0x8dd   : > { %11229 = vmatprep.mubr.msk.f32.mxu1 %vm4688_vm0, %v7627_v22  ;;  %v15699_v22 = vld [vmem:[#allocation125_spill] sm:$0xff] }
 0x8e0   : > { %11230 = vmatmul.mubr.msk.f32.gmra.mrb[20].mxu1 %vm4688_vm0, %v7628_v54  ;;  %v8009_v54 = vld [vmem:[#allocation3 + $0x80] sm:$0xff] }
 0x8e1   : > { %11232 = vmatprep.mubr.msk.f32.mxu1 %vm4688_vm0, %v7629_v4  ;;  %v8012_v4 = vld [vmem:[#allocation3 + $0x98] sm:$0xff] }
 0x8e4   : > { %11233 = vmatmul.mubr.msk.f32.gmra.mrb[22].mxu1 %vm4688_vm0, %v7630_v49  ;;  %v8015_v49 = vld [vmem:[#allocation3 + $0xb0] sm:$0xff] }
 0x8e5   : > { %11235 = vmatprep.mubr.msk.f32.mxu1 %vm4688_vm0, %v7631_v17  ;;  %v8018_v17 = vld [vmem:[#allocation3 + $0xc8] sm:$0xff] }
 0x8e8   : > { %11236 = vmatmul.mubr.msk.f32.gmra.mrb[24].mxu1 %vm4688_vm0, %v7632_v13  ;;  %v8021_v13 = vld [vmem:[#allocation3 + $0xe0] sm:$0xff] }
 0x8e9   : > { %11238 = vmatprep.mubr.msk.f32.mxu1 %vm4688_vm0, %v7633_v39  ;;  %v8024_v39 = vld [vmem:[#allocation3 + $0xf8] sm:$0xff] }
 0x8ec   : > { %11239 = vmatmul.mubr.msk.f32.gmra.mrb[26].mxu1 %vm4688_vm0, %v7634_v0  ;;  %v8029_v0 = vld [vmem:[#allocation3 + $0x120] sm:$0xff] }
 0x8ed   : > { %11241 = vmatprep.mubr.msk.f32.mxu1 %vm4688_vm0, %v7635_v57  ;;  %v8030_v57 = vld [vmem:[#allocation3 + $0x128] sm:$0xff] }
 0x8f0   : > { %11242 = vmatmul.mubr.msk.f32.gmra.mrb[28].mxu1 %vm4688_vm0, %v7636_v63  ;;  %v8425_v63 = vmul.f32 %v8393_v18, %v15702_v28  ;;  %v8417_v18 = vld [vmem:[#allocation3 + $0xf1] sm:$0xff] }
 0x8f1   : > { %11260 = vmatprep.mubr.msk.f32.mxu1 %vm4688_vm0, %v15692_v3  ;;  %v8426_v3 = vmul.f32 %v12243_v53, %v15616_v20  ;;  %v8430_v20 = vmul.f32 %v14460_v2, %v15622_v44  ;;  %v15706_v44 = vld [vmem:[#allocation75_spill] sm:$0xff]  ;;  %v8449_v28 = vmul.f32 %v8417_v18, %v15652_v42 }
 0x8f4   : > { %11261 = vmatmul.mubr.msk.f32.vlgmr.msra.gmra.mrb[30].mxu1 %vm4688_vm0, %v15693_v47  ;;  %v8429_v47 = vmul.f32 %v8397_v33, %v15621_v12  ;;  %v8423_v33 = vld [vmem:[#allocation3 + $0x121] sm:$0xff] }
 0x8f5   : > { %11575 = vmatpush3.bf16.msra.mxu1 %v11572_v48  ;;  %11263 = vmatprep.mubr.msk.f32.mxu1 %vm4688_vm0, %v15694_v55  ;;  %v15698_v48 = vld [vmem:[#allocation124_spill] sm:$0xff]  ;;  %v8399_v55 = vld [vmem:[#allocation3 + $0x61] sm:$0xff] }
 0x8f6   : > { %11577 = vmatprep.subr.bf16.mxu1 %v11576_v34 }
 0x8f8   : > { %11264 = vmatmul.mubr.msk.f32.gmra.mrb[0].mxu1 %vm4688_vm0, %v15695_v14  ;;  %v15705_v14 = vld [vmem:[#allocation73_spill] sm:$0xff] }
 0x8f9   : > { %11266 = vmatprep.mubr.msk.f32.mxu1 %vm4688_vm0, %v15696_v52  ;;  %11579 = vmatpush3.bf16.msra.mxu1 %v11576_v34  ;;  %v8427_v34 = vmul.f32 %v8395_v32, %v15618_v26  ;;  %v8431_v26 = vmul.f32 %v8399_v55, %v15623_v41  ;;  %v8434_v2 = vmul.f32 %v15630_v56, %v15705_v14  ;;  %v8405_v52 = vld [vmem:[#allocation3 + $0x91] sm:$0xff] }
 0x8fa   : > { %11581 = vmatprep.subr.bf16.mxu1 %v11580_v15  ;;  %v8435_v41 = vmul.f32 %v8403_v6, %v15706_v44  ;;  %v15722_v32 = vld [vmem:[#allocation103_spill] sm:$0xff] }
 0x8fc   : > { %11267 = vmatmul.mubr.msk.f32.gmra.mrb[2].mxu1 %vm4688_vm0, %v15697_v35  ;;  %v15708_v35 = vld [vmem:[#allocation91_spill] sm:$0xff] }
 0x8fd   : > { %11269 = vmatprep.mubr.msk.f32.mxu1 %vm4688_vm0, %v15698_v48  ;;  %11583 = vmatpush3.bf16.msra.mxu1 %v11580_v15  ;;  %v8401_v15 = vld [vmem:[#allocation3 + $0x71] sm:$0xff]  ;;  %v15709_v48 = vld [vmem:[#allocation77_spill] sm:$0xff] }
 0x8fe   : > { %11585 = vmatprep.subr.bf16.mxu1 %v11584_v1  ;;  %v8433_v12 = vmul.f32 %v8401_v15, %v15704_v10 }
 0x900   : > { %11270 = vmatmul.mubr.msk.f32.gmra.mrb[4].mxu1 %vm4688_vm0, %v15699_v22  ;;  %v8437_v22 = vmul.f32 %v8405_v52, %v15709_v48 }
 0x901   : > { %11272 = vmatprep.mubr.msk.f32.mxu1 %vm4688_vm0, %v8007_v40  ;;  %11587 = vmatpush3.bf16.msra.mxu1 %v11584_v1  ;;  %v15707_v1 = vld [vmem:[#allocation76_spill] sm:$0xff]  ;;  %v8407_v40 = vld [vmem:[#allocation3 + $0xa1] sm:$0xff] }
 0x902   : > { %v8436_v38 = vmul.f32 %v15708_v35, %v15707_v1 }
 0x904   : > { %11273 = vmatmul.mubr.msk.f32.gmra.mrb[6].mxu1 %vm4688_vm0, %v8008_v27  ;;  %v15710_v27 = vld [vmem:[#allocation79_spill] sm:$0xff] }
 0x905   : > { %11275 = vmatprep.mubr.msk.f32.mxu1 %vm4688_vm0, %v8009_v54  ;;  %v8438_v56 = vmul.f32 %v15637_v61, %v15710_v27  ;;  %v15711_v54 = vld [vmem:[#allocation81_spill] sm:$0xff] }
 0x908   : > { %11276 = vmatmul.mubr.msk.f32.gmra.mrb[8].mxu1 %vm4688_vm0, %v8010_v50  ;;  %v8439_v50 = vmul.f32 %v8407_v40, %v15711_v54 }
 0x909   : > { %11278 = vmatprep.mubr.msk.f32.mxu1 %vm4688_vm0, %v8011_v62  ;;  %v8409_v62 = vld [vmem:[#allocation3 + $0xb1] sm:$0xff] }
 0x90c   : > { %11279 = vmatmul.mubr.msk.f32.gmra.mrb[10].mxu1 %vm4688_vm0, %v8012_v4  ;;  %v15712_v4 = vld [vmem:[#allocation82_spill] sm:$0xff] }
 0x90d   : > { %11281 = vmatprep.mubr.msk.f32.mxu1 %vm4688_vm0, %v8013_v43  ;;  %v8440_v43 = vmul.f32 %v15640_v21, %v15712_v4 }
 0x910   : > { %11282 = vmatmul.mubr.msk.f32.gmra.mrb[12].mxu1 %vm4688_vm0, %v8014_v51  ;;  %v15713_v51 = vld [vmem:[#allocation83_spill] sm:$0xff] }
 0x911   : > { %11284 = vmatprep.mubr.msk.f32.mxu1 %vm4688_vm0, %v8015_v49  ;;  %v8441_v49 = vmul.f32 %v8409_v62, %v15713_v51 }
 0x914   : > { %11285 = vmatmul.mubr.msk.f32.gmra.mrb[14].mxu1 %vm4688_vm0, %v8016_v8  ;;  %v8411_v8 = vld [vmem:[#allocation3 + $0xc1] sm:$0xff] }
 0x915   : > { %11287 = vmatprep.mubr.msk.f32.mxu1 %vm4688_vm0, %v8017_v23  ;;  %v15714_v23 = vld [vmem:[#allocation85_spill] sm:$0xff] }
 0x918   : > { %11288 = vmatmul.mubr.msk.f32.gmra.mrb[16].mxu1 %vm4688_vm0, %v8018_v17  ;;  %v15715_v17 = vld [vmem:[#allocation100_spill] sm:$0xff] }
 0x919   : > { %11290 = vmatprep.mubr.msk.f32.mxu1 %vm4688_vm0, %v8019_v60  ;;  %v8442_v61 = vmul.f32 %v15715_v17, %v15714_v23  ;;  %v15716_v60 = vld [vmem:[#allocation87_spill] sm:$0xff] }
 0x91c   : > { %11291 = vmatmul.mubr.msk.f32.gmra.mrb[18].mxu1 %vm4688_vm0, %v8020_v46  ;;  %v8443_v46 = vmul.f32 %v8411_v8, %v15716_v60 }
 0x91d   : > { %11293 = vmatprep.mubr.msk.f32.mxu1 %vm4688_vm0, %v8021_v13  ;;  %v8413_v13 = vld [vmem:[#allocation3 + $0xd1] sm:$0xff] }
 0x920   : > { %11294 = vmatmul.mubr.msk.f32.gmra.mrb[20].mxu1 %vm4688_vm0, %v8022_v36  ;;  %v15717_v36 = vld [vmem:[#allocation89_spill] sm:$0xff] }
 0x921   : > { %11296 = vmatprep.mubr.msk.f32.mxu1 %vm4688_vm0, %v8023_v9  ;;  %v8444_v21 = vmul.f32 %v15647_v5, %v15717_v36  ;;  %v15718_v9 = vld [vmem:[#allocation92_spill] sm:$0xff] }
 0x924   : > { %11297 = vmatmul.mubr.msk.f32.gmra.mrb[22].mxu1 %vm4688_vm0, %v8024_v39  ;;  %v8445_v39 = vmul.f32 %v8413_v13, %v15718_v9 }
 0x925   : > { %11299 = vmatprep.mubr.msk.f32.mxu1 %vm4688_vm0, %v8025_v58  ;;  %v8415_v58 = vld [vmem:[#allocation3 + $0xe1] sm:$0xff] }
 0x928   : > { %11300 = vmatmul.mubr.msk.f32.gmra.mrb[24].mxu1 %vm4688_vm0, %v8026_v29  ;;  %v15719_v29 = vld [vmem:[#allocation94_spill] sm:$0xff] }
 0x929   : > { %11302 = vmatprep.mubr.msk.f32.mxu1 %vm4688_vm0, %v15700_v11  ;;  %v8446_v11 = vmul.f32 %v15650_v59, %v15719_v29  ;;  %v8450_v59 = vmul.f32 %v14589_v37, %v15722_v32  ;;  %v15726_v37 = vld [vmem:[#allocation20_spill] sm:$0xff] }
 0x92c   : > { %11303 = vmatmul.mubr.msk.f32.gmra.mrb[26].mxu1 %vm4688_vm0, %v15701_v24 }
 0x92d   : > { %11305 = vmatprep.mubr.msk.f32.mxu1 %vm4688_vm0, %v8029_v0  ;;  %v15720_v0 = vld [vmem:[#allocation96_spill] sm:$0xff] }
 0x92e   : > { %v8447_v24 = vmul.f32 %v8415_v58, %v15720_v0 }
 0x930   : > { %11306 = vmatmul.mubr.msk.f32.gmra.mrb[28].mxu1 %vm4688_vm0, %v8030_v57  ;;  %v15721_v57 = vld [vmem:[#allocation98_spill] sm:$0xff] }
 0x931   : > { %11324 = vmatprep.mubr.msk.f32.mxu1 %vm4688_vm0, %v8425_v63  ;;  %v8448_v5 = vmul.f32 %v14575_v16, %v15721_v57  ;;  %v8419_v63 = vld [vmem:[#allocation3 + $0x101] sm:$0xff] }
 0x932   : > { %v8451_v53 = vmul.f32 %v8419_v63, %v15655_v19  ;;  %v15727_v19 = vld [vmem:[#allocation113_spill] sm:$0xff] }
 0x933   : > { %v8455_v55 = vmul.f32 %v8423_v33, %v15727_v19 }
 0x934   : > { %11325 = vmatmul.mubr.msk.f32.vlgmr.msra.gmra.mrb[30].mxu1 %vm4688_vm0, %v8426_v3  ;;  %v15723_v3 = vld [vmem:[#allocation114_spill] sm:$0xff] }
 0x935   : > { %11327 = vmatprep.mubr.msk.f32.mxu1 %vm4688_vm0, %v8427_v34  ;;  %v8452_v16 = vmul.f32 %v15723_v3, %v15656_v30  ;;  %v15724_v34 = vld [vmem:[#allocation109_spill] sm:$0xff] }
 0x936   : > { %v8453_v42 = vmul.f32 %v14888_v7, %v15724_v34 }
 0x938   : > { %11328 = vmatmul.mubr.msk.f32.gmra.mrb[0].mxu1 %vm4688_vm0, %v8428_v31  ;;  %v15725_v31 = vld [vmem:[#allocation111_spill] sm:$0xff] }
 0x939   : > { %11330 = vmatprep.mubr.msk.f32.mxu1 %vm4688_vm0, %v8429_v47  ;;  %v8454_v47 = vmul.f32 %v15726_v37, %v15725_v31 }
 0x93c   : > { %11331 = vmatmul.mubr.msk.f32.gmra.mrb[2].mxu1 %vm4688_vm0, %v8430_v20  ;;  %v8424_v20 = vld [vmem:[#allocation3 + $0x129] sm:$0xff] }
 0x93d   : > { %11333 = vmatprep.mubr.msk.f32.mxu1 %vm4688_vm0, %v8431_v26  ;;  %v15728_v26 = vld [vmem:[#allocation115_spill] sm:$0xff] }
 0x93e   : > { %v8456_v30 = vmul.f32 %v8424_v20, %v15728_v26 }
 0x940   : > { %11334 = vmatmul.mubr.msk.f32.gmra.mrb[4].mxu1 %vm4688_vm0, %v8432_v45 }
 0x941   : > { %11336 = vmatprep.mubr.msk.f32.mxu1 %vm4688_vm0, %v8433_v12 }
 0x944   : > { %11337 = vmatmul.mubr.msk.f32.gmra.mrb[6].mxu1 %vm4688_vm0, %v8434_v2 }
 0x945   : > { %11339 = vmatprep.mubr.msk.f32.mxu1 %vm4688_vm0, %v8435_v41 }
 0x948   : > { %11340 = vmatmul.mubr.msk.f32.gmra.mrb[8].mxu1 %vm4688_vm0, %v8436_v38 }
 0x949   : > { %11342 = vmatprep.mubr.msk.f32.mxu1 %vm4688_vm0, %v8437_v22 }
 0x94c   : > { %11343 = vmatmul.mubr.msk.f32.gmra.mrb[10].mxu1 %vm4688_vm0, %v8438_v56 }
 0x94d   : > { %11345 = vmatprep.mubr.msk.f32.mxu1 %vm4688_vm0, %v8439_v50 }
 0x950   : > { %11346 = vmatmul.mubr.msk.f32.gmra.mrb[12].mxu1 %vm4688_vm0, %v8440_v43 }
 0x951   : > { %11348 = vmatprep.mubr.msk.f32.mxu1 %vm4688_vm0, %v8441_v49 }
 0x954   : > { %11349 = vmatmul.mubr.msk.f32.gmra.mrb[14].mxu1 %vm4688_vm0, %v8442_v61 }
 0x955   : > { %11351 = vmatprep.mubr.msk.f32.mxu1 %vm4688_vm0, %v8443_v46 }
 0x958   : > { %11352 = vmatmul.mubr.msk.f32.gmra.mrb[16].mxu1 %vm4688_vm0, %v8444_v21 }
 0x959   : > { %11354 = vmatprep.mubr.msk.f32.mxu1 %vm4688_vm0, %v8445_v39 }
 0x95c   : > { %11355 = vmatmul.mubr.msk.f32.gmra.mrb[18].mxu1 %vm4688_vm0, %v8446_v11 }
 0x95d   : > { %11357 = vmatprep.mubr.msk.f32.mxu1 %vm4688_vm0, %v8447_v24 }
 0x960   : > { %11358 = vmatmul.mubr.msk.f32.gmra.mrb[20].mxu1 %vm4688_vm0, %v8448_v5 }
 0x961   : > { %11360 = vmatprep.mubr.msk.f32.mxu1 %vm4688_vm0, %v8449_v28 }
 0x964   : > { %11361 = vmatmul.mubr.msk.f32.gmra.mrb[22].mxu1 %vm4688_vm0, %v8450_v59 }
 0x965   : > { %11363 = vmatprep.mubr.msk.f32.mxu1 %vm4688_vm0, %v8451_v53 }
 0x968   : > { %11364 = vmatmul.mubr.msk.f32.gmra.mrb[24].mxu1 %vm4688_vm0, %v8452_v16 }
 0x969   : > { %11366 = vmatprep.mubr.msk.f32.mxu1 %vm4688_vm0, %v8453_v42 }
 0x96c   : > { %11367 = vmatmul.mubr.msk.f32.gmra.mrb[26].mxu1 %vm4688_vm0, %v8454_v47 }
 0x96d   : > { %11369 = vmatprep.mubr.msk.f32.mxu1 %vm4688_vm0, %v8455_v55 }
 0x970   : > { %11370 = vmatmul.mubr.msk.f32.gmra.mrb[28].mxu1 %vm4688_vm0, %v8456_v30 }
 0x977   : > { %v10814_v7 = vpop.f32.mrb[32].mxu0 }
 0x978   : > { %v5261_v15 = vpop.f32.mrb[33].mxu0 }
 0xa07   : > { %v11326_v25 = vpop.f32.mrb[30].mxu1 }
 0xa08   : > { %v11596_v45 = vadd.f32 %v11326_v25, %v10814_v7  ;;  %v8628_v10 = vpop.f32.mrb[31].mxu1 }
 0xa09   : > { %v11597_v12 = vadd.f32 %v8628_v10, %v5261_v15 }
 0xa0a   : > { %v8820_v6 = vmax.f32 %v11596_v45, 0.0 }
 0xa0b   : > { %v8819_v14 = vmax.f32 %v11597_v12, 0.0  ;;  %v11329_v2 = vpop.f32.mrb[0].mxu1 }
 0xa0c   : > { %8852 = vst.msk [vmem:[%s15121_s13 + $0x8] sm:$0xff] %vm4688_vm0, %v8820_v6  ;;  %v8822_v44 = vmax.f32 %v11329_v2, 0.0  ;;  %v8638_v41 = vpop.f32.mrb[1].mxu1 }
 0xa0d   : > { %8851 = vst.msk [vmem:[%s15121_s13] sm:$0xff] %vm4688_vm0, %v8819_v14  ;;  %v8821_v52 = vmax.f32 %v8638_v41, 0.0 }
 0xa0e   : > { %8854 = vst.msk [vmem:[%s15121_s13 + $0x18] sm:$0xff] %vm4688_vm0, %v8822_v44 }
 0xa0f   : > { %8853 = vst.msk [vmem:[%s15121_s13 + $0x10] sm:$0xff] %vm4688_vm0, %v8821_v52  ;;  %v11332_v1 = vpop.f32.mrb[2].mxu1 }
 0xa10   : > { %v8824_v35 = vmax.f32 %v11332_v1, 0.0  ;;  %v8648_v38 = vpop.f32.mrb[3].mxu1 }
 0xa11   : > { %v8823_v48 = vmax.f32 %v8648_v38, 0.0 }
 0xa12   : > { %8856 = vst.msk [vmem:[%s15121_s13 + $0x28] sm:$0xff] %vm4688_vm0, %v8824_v35 }
 0xa13   : > { %8855 = vst.msk [vmem:[%s15121_s13 + $0x20] sm:$0xff] %vm4688_vm0, %v8823_v48  ;;  %v11335_v22 = vpop.f32.mrb[4].mxu1 }
 0xa14   : > { %v8826_v40 = vmax.f32 %v11335_v22, 0.0  ;;  %v8658_v27 = vpop.f32.mrb[5].mxu1 }
 0xa15   : > { %v8825_v56 = vmax.f32 %v8658_v27, 0.0 }
 0xa16   : > { %8858 = vst.msk [vmem:[%s15121_s13 + $0x38] sm:$0xff] %vm4688_vm0, %v8826_v40 }
 0xa17   : > { %8857 = vst.msk [vmem:[%s15121_s13 + $0x30] sm:$0xff] %vm4688_vm0, %v8825_v56  ;;  %v11338_v54 = vpop.f32.mrb[6].mxu1 }
 0xa18   : > { %v8828_v50 = vmax.f32 %v11338_v54, 0.0  ;;  %v8668_v62 = vpop.f32.mrb[7].mxu1 }
 0xa19   : > { %v8827_v4 = vmax.f32 %v8668_v62, 0.0 }
 0xa1a   : > { %8860 = vst.msk [vmem:[%s15121_s13 + $0x48] sm:$0xff] %vm4688_vm0, %v8828_v50 }
 0xa1b   : > { %8859 = vst.msk [vmem:[%s15121_s13 + $0x40] sm:$0xff] %vm4688_vm0, %v8827_v4  ;;  %v11341_v43 = vpop.f32.mrb[8].mxu1 }
 0xa1c   : > { %v8830_v51 = vmax.f32 %v11341_v43, 0.0  ;;  %v8678_v49 = vpop.f32.mrb[9].mxu1 }
 0xa1d   : > { %v8829_v8 = vmax.f32 %v8678_v49, 0.0 }
 0xa1e   : > { %8862 = vst.msk [vmem:[%s15121_s13 + $0x58] sm:$0xff] %vm4688_vm0, %v8830_v51 }
 0xa1f   : > { %8861 = vst.msk [vmem:[%s15121_s13 + $0x50] sm:$0xff] %vm4688_vm0, %v8829_v8  ;;  %v11344_v23 = vpop.f32.mrb[10].mxu1 }
 0xa20   : > { %v8832_v17 = vmax.f32 %v11344_v23, 0.0  ;;  %v8688_v61 = vpop.f32.mrb[11].mxu1 }
 0xa21   : > { %v8831_v60 = vmax.f32 %v8688_v61, 0.0 }
 0xa22   : > { %8864 = vst.msk [vmem:[%s15121_s13 + $0x68] sm:$0xff] %vm4688_vm0, %v8832_v17 }
 0xa23   : > { %8863 = vst.msk [vmem:[%s15121_s13 + $0x60] sm:$0xff] %vm4688_vm0, %v8831_v60  ;;  %v11347_v46 = vpop.f32.mrb[12].mxu1 }
 0xa24   : > { %v8834_v13 = vmax.f32 %v11347_v46, 0.0  ;;  %v8698_v36 = vpop.f32.mrb[13].mxu1 }
 0xa25   : > { %v8833_v21 = vmax.f32 %v8698_v36, 0.0 }
 0xa26   : > { %8866 = vst.msk [vmem:[%s15121_s13 + $0x78] sm:$0xff] %vm4688_vm0, %v8834_v13 }
 0xa27   : > { %8865 = vst.msk [vmem:[%s15121_s13 + $0x70] sm:$0xff] %vm4688_vm0, %v8833_v21  ;;  %v11350_v9 = vpop.f32.mrb[14].mxu1 }
 0xa28   : > { %v8836_v39 = vmax.f32 %v11350_v9, 0.0  ;;  %v8708_v58 = vpop.f32.mrb[15].mxu1 }
 0xa29   : > { %v8835_v29 = vmax.f32 %v8708_v58, 0.0 }
 0xa2a   : > { %8868 = vst.msk [vmem:[%s15121_s13 + $0x88] sm:$0xff] %vm4688_vm0, %v8836_v39 }
 0xa2b   : > { %8867 = vst.msk [vmem:[%s15121_s13 + $0x80] sm:$0xff] %vm4688_vm0, %v8835_v29  ;;  %v11353_v11 = vpop.f32.mrb[16].mxu1 }
 0xa2c   : > { %v8838_v0 = vmax.f32 %v11353_v11, 0.0  ;;  %v8718_v24 = vpop.f32.mrb[17].mxu1 }
 0xa2d   : > { %v8837_v18 = vmax.f32 %v8718_v24, 0.0 }
 0xa2e   : > { %8870 = vst.msk [vmem:[%s15121_s13 + $0x98] sm:$0xff] %vm4688_vm0, %v8838_v0 }
 0xa2f   : > { %8869 = vst.msk [vmem:[%s15121_s13 + $0x90] sm:$0xff] %vm4688_vm0, %v8837_v18  ;;  %v11356_v57 = vpop.f32.mrb[18].mxu1 }
 0xa30   : > { %v8840_v5 = vmax.f32 %v11356_v57, 0.0  ;;  %v8728_v28 = vpop.f32.mrb[19].mxu1 }
 0xa31   : > { %v8839_v63 = vmax.f32 %v8728_v28, 0.0 }
 0xa32   : > { %8872 = vst.msk [vmem:[%s15121_s13 + $0xa8] sm:$0xff] %vm4688_vm0, %v8840_v5 }
 0xa33   : > { %8871 = vst.msk [vmem:[%s15121_s13 + $0xa0] sm:$0xff] %vm4688_vm0, %v8839_v63  ;;  %v11359_v32 = vpop.f32.mrb[20].mxu1 }
 0xa34   : > { %v8842_v59 = vmax.f32 %v11359_v32, 0.0  ;;  %v8738_v53 = vpop.f32.mrb[21].mxu1 }
 0xa35   : > { %v8841_v3 = vmax.f32 %v8738_v53, 0.0 }
 0xa36   : > { %8874 = vst.msk [vmem:[%s15121_s13 + $0xb8] sm:$0xff] %vm4688_vm0, %v8842_v59 }
 0xa37   : > { %8873 = vst.msk [vmem:[%s15121_s13 + $0xb0] sm:$0xff] %vm4688_vm0, %v8841_v3  ;;  %v11362_v16 = vpop.f32.mrb[22].mxu1 }
 0xa38   : > { %v8844_v34 = vmax.f32 %v11362_v16, 0.0  ;;  %v8748_v42 = vpop.f32.mrb[23].mxu1 }
 0xa39   : > { %v8843_v33 = vmax.f32 %v8748_v42, 0.0 }
 0xa3a   : > { %8876 = vst.msk [vmem:[%s15121_s13 + $0xc8] sm:$0xff] %vm4688_vm0, %v8844_v34 }
 0xa3b   : > { %8875 = vst.msk [vmem:[%s15121_s13 + $0xc0] sm:$0xff] %vm4688_vm0, %v8843_v33  ;;  %v11365_v31 = vpop.f32.mrb[24].mxu1 }
 0xa3c   : > { %v8846_v37 = vmax.f32 %v11365_v31, 0.0  ;;  %v8758_v47 = vpop.f32.mrb[25].mxu1 }
 0xa3d   : > { %v8845_v19 = vmax.f32 %v8758_v47, 0.0 }
 0xa3e   : > { %8878 = vst.msk [vmem:[%s15121_s13 + $0xd8] sm:$0xff] %vm4688_vm0, %v8846_v37 }
 0xa3f   : > { %8877 = vst.msk [vmem:[%s15121_s13 + $0xd0] sm:$0xff] %vm4688_vm0, %v8845_v19  ;;  %v11368_v55 = vpop.f32.mrb[26].mxu1 }
 0xa40   : > { %v8848_v20 = vmax.f32 %v11368_v55, 0.0  ;;  %v8768_v26 = vpop.f32.mrb[27].mxu1 }
 0xa41   : > { %v8847_v30 = vmax.f32 %v8768_v26, 0.0 }
 0xa42   : > { %8880 = vst.msk [vmem:[%s15121_s13 + $0xe8] sm:$0xff] %vm4688_vm0, %v8848_v20 }
 0xa43   : > { %8879 = vst.msk [vmem:[%s15121_s13 + $0xe0] sm:$0xff] %vm4688_vm0, %v8847_v30  ;;  %v11371_v7 = vpop.f32.mrb[28].mxu1 }
 0xa44   : > { %v8850_v15 = vmax.f32 %v11371_v7, 0.0  ;;  %v8778_v25 = vpop.f32.mrb[29].mxu1 }
 0xa45   : > { %v8849_v45 = vmax.f32 %v8778_v25, 0.0 }
 0xa46   : > { %8882 = vst.msk [vmem:[%s15121_s13 + $0xf8] sm:$0xff] %vm4688_vm0, %v8850_v15 }
 0xa47   : > { %8881 = vst.msk [vmem:[%s15121_s13 + $0xf0] sm:$0xff] %vm4688_vm0, %v8849_v45 }
 0xa48   : > { %12399 = shalt.err (!%p12396_p13)
}
 0xa49   : > { %s12400_s23 = scalar_lea.hbm %s15188_s17, 4096  ;;  %s12404_s9 = scalar_lea.hbm %s15243_s5, 8192 }
 0xa4a   : > { %p12401_p9 = scmp.ne.s32.totalorder %s15188_s17, %s12400_s23  ;;  %p12405_p6 = scmp.lt.u32.totalorder %s15188_s17, %s15243_s5 }
 0xa4b   : > { %p12406_p4 = scmp.lt.u32.totalorder %s12404_s9, %s12400_s23  ;;  %p12408_p10 = scmp.lt.u32.totalorder %s12400_s23, %s15188_s17 }
 0xa4c   : > { %p12402_p0 = pnand %p12401_p9, %p12691_p3 }
 0xa4d   : > { %p12407_p8 = por %p12406_p4, %p12405_p6 }
 0xa4e   : > { %p12403_p11 = pneg %p12402_p0 }
 0xa4f   : > { %p12409_p5 = por %p12408_p10, %p12407_p8 }
 0xa51   : > { %p12410_p7 = pnand %p12409_p5, %p12403_p11 }
 0xa53   : > { %12413 = shalt.err (!%p12410_p7)
}
 0xa54   : > { %s12484_s6 = smov 128   ;;  %s12485_s15 = smov 8  }
 0xa55   : > { %12126 = dma.vmem_to_hbm [thread:$0]  (%p12691_p3), %s15190_s14, 4096, %s15188_s17, %s8884_s22, %s12484_s6, %s12484_s6, %s12485_s15  }
 0xa56 PF: > { %s8912_s10 = sand.u32 1, %s12448_s18   ;;  %p15729_p12 = scmp.ne.s32.totalorder %s15428_s25, 0 }
 0xa57   : > { %p15730_p1 = scmp.ge.s32.totalorder %s12460_s21, 2  ;;  %s8913_s24 = scalar_lea.sflag [#allocation6], %s8912_s10 }
 0xa59   : > { %p12146_p2 = pnand %p15730_p1, %p15729_p12 }
 0xa5b   : > { %12443 = dma.done.wait (!%p12146_p2), %s8913_s24, 4096  }
 0xa5c   : > { %12445 = vsyncadd (!%p12146_p2), %s8913_s24, 4294963200  ;;  %p20_p13 = scmp.ge.s32.totalorder %s12678_s29, 4   ;;  %s15731_s18 = smov %s12452_s19 }
 0xa5d   : > { %s15732_s19 = smov %s12456_s20  ;;  %s15733_s20 = smov %s12687_s27 }
 0xa5e   : > { %s15734_s21 = smov %s12678_s29  ;;  %22 = sbr.rel (!%p20_p13) target bundleno = 7 (0x7), region = 119 }
 0xa65   :  { %8918 = vsyncpa [#allocation5], 1 }
 0xa66   :  { %8920 = vsyncpa [#allocation5 + $0x1], 1 }
 0xa67   :  { %8921 = vsyncpa [#allocation8], 1 }
 0xa68   :  { %8922 = vsyncpa [#allocation11], 1 }
 0xa69   :  { %8923 = vsyncpa [#allocation6], 1 }
 0xa6a   :  { %8925 = vsyncpa [#allocation6 + $0x1], 1 }

</bundles_post_ra>
